<compile_context>
chip_gen: v7x
topology: tpu7x:2x2x1
jax: 0.10.0
libtpu: 0.0.40
codegen_flags: <defaults>
</compile_context>

<pallas_src>
import functools

import jax
import jax.numpy as jnp
from jax.experimental import pallas as pl
from jax.experimental.pallas import tpu as pltpu

EPS = 1e-5
LANE = 128


# ----------------------------------------------------------------------------
# small helpers
# ----------------------------------------------------------------------------
def _round_up(x, m):
    return (x + m - 1) // m * m


def _largest_divisor_tile(m, cap, step=8):
    """Largest multiple-of-`step` divisor of m that is <= cap (fallback m)."""
    t = min(cap, m)
    t -= t % step
    while t >= step:
        if m % t == 0:
            return t
        t -= step
    return m


def _largest_divisor(n, cap):
    for t in range(min(cap, n), 0, -1):
        if n % t == 0:
            return t
    return n


def _pad_axis(a, size, axis):
    pads = [(0, 0)] * a.ndim
    pads[axis] = (0, size - a.shape[axis])
    return jnp.pad(a, pads)


def _vmem_limit(block_bytes, extra_bytes=0):
    """Per-call VMEM budget: 2x (double-buffer) blocks + scratch + headroom."""
    est = 2 * block_bytes + extra_bytes + (4 << 20)
    return int(min(max(est, 16 << 20), 64 << 20))


def _bn_scale_shift(psum, psumsq, count, gamma, beta):
    """Fold training-mode BN into y*scale + shift from per-tile partial stats."""
    s = jnp.sum(psum, axis=tuple(range(psum.ndim - 1)))       # (C,)
    ss = jnp.sum(psumsq, axis=tuple(range(psumsq.ndim - 1)))  # (C,)
    mean = s / count
    var = jnp.maximum(ss / count - mean * mean, 0.0)
    scale = gamma * jax.lax.rsqrt(var + EPS)
    shift = beta - mean * scale
    return scale[None], shift[None]                           # (1, C) each


# ----------------------------------------------------------------------------
# kernels
# ----------------------------------------------------------------------------
def _mm_stats_kernel(x_ref, w_ref, o_ref, sum_ref, ssq_ref):
    """1x1 conv tile: y = x @ w (bf16 in, f32 acc) + per-tile partial stats."""
    acc = jnp.dot(x_ref[...], w_ref[...], preferred_element_type=jnp.float32)
    o_ref[...] = acc.astype(o_ref.dtype)
    sum_ref[...] = jnp.sum(acc, axis=0).reshape(1, 1, -1)
    ssq_ref[...] = jnp.sum(acc * acc, axis=0).reshape(1, 1, -1)


def _bn_relu_mm_stats_kernel(y_ref, s_ref, h_ref, w_ref,
                             o_ref, sum_ref, ssq_ref):
    """Fused relu(y*scale+shift) -> 1x1 conv + per-tile partial stats."""
    a = jnp.maximum(y_ref[...].astype(jnp.float32) * s_ref[...] + h_ref[...],
                    0.0)
    acc = jnp.dot(a.astype(jnp.bfloat16), w_ref[...],
                  preferred_element_type=jnp.float32)
    o_ref[...] = acc.astype(o_ref.dtype)
    sum_ref[...] = jnp.sum(acc, axis=0).reshape(1, 1, -1)
    ssq_ref[...] = jnp.sum(acc * acc, axis=0).reshape(1, 1, -1)


def _conv3x3_fused_kernel(yc_ref, yt_ref, yb_ref, s_ref, h_ref, w_ref,
                          y2_ref, sum_ref, ssq_ref, xpad_ref):
    """Row-tiled 3x3 conv (stride 1, pad 1) with fused BN1+ReLU on the input.

    yc_ref: (1, tr, W, C) bf16 raw conv1 output rows of this tile
    yt/yb_ref: (1, 1, W, C) bf16 neighbour halo rows (clamped index maps)
    s/h_ref: (1, C) f32 folded bn1 scale/shift;  w_ref: (9*C, Cout) bf16
    y2_ref: (1, tr, W, Cout) bf16;  sum/ssq_ref: (1, 1, 1, Cout) f32 partials
    xpad_ref: (tr+2, W+2, C) bf16 halo scratch
    """
    r = pl.program_id(1)
    nr = pl.num_programs(1)
    _, tr, wd, c = yc_ref.shape
    cout = w_ref.shape[1]

    def bn_relu(v):
        v = v.astype(jnp.float32) * s_ref[...] + h_ref[...]
        return jnp.maximum(v, 0.0).astype(jnp.bfloat16)

    # Stateless per grid step (megacore-safe): rebuild the zero halo frame,
    # then fill the interior and the real neighbour rows.
    xpad_ref[...] = jnp.zeros_like(xpad_ref)
    xpad_ref[1:tr + 1, 1:wd + 1, :] = bn_relu(yc_ref[0])

    @pl.when(r > 0)
    def _():
        xpad_ref[0, 1:wd + 1, :] = bn_relu(yt_ref[0, 0])

    @pl.when(r < nr - 1)
    def _():
        xpad_ref[tr + 1, 1:wd + 1, :] = bn_relu(yb_ref[0, 0])

    # 9 shifted-view matmuls accumulated in f32 (no materialised im2col).
    acc = jnp.zeros((tr * wd, cout), jnp.float32)
    for kh in range(3):
        for kw in range(3):
            k = kh * 3 + kw
            lhs = xpad_ref[kh:kh + tr, kw:kw + wd, :].reshape(tr * wd, c)
            acc = acc + jnp.dot(lhs, w_ref[k * c:(k + 1) * c, :],
                                preferred_element_type=jnp.float32)

    y2_ref[...] = acc.reshape(1, tr, wd, cout).astype(y2_ref.dtype)
    sum_ref[...] = jnp.sum(acc, axis=0).reshape(1, 1, 1, cout)
    ssq_ref[...] = jnp.sum(acc * acc, axis=0).reshape(1, 1, 1, cout)


def _bn_add_relu_kernel(y_ref, res_ref, s_ref, h_ref, o_ref):
    """Final: bn3 scale/shift + residual add + relu, unpadded-channel store."""
    cout = o_ref.shape[1]
    v = y_ref[...].astype(jnp.float32) * s_ref[...] + h_ref[...]
    v = v + res_ref[...].astype(jnp.float32)
    o_ref[...] = jnp.maximum(v, 0.0)[:, :cout]


# ----------------------------------------------------------------------------
# pallas_call wrappers
# ----------------------------------------------------------------------------
def _conv1x1_stats(x2d, w, tile_m):
    m, cin = x2d.shape
    cout = w.shape[1]
    nt = m // tile_m
    blk = (tile_m * cin + cin * cout + tile_m * cout) * 2 + 2 * cout * 4
    return pl.pallas_call(
        _mm_stats_kernel,
        out_shape=(jax.ShapeDtypeStruct((m, cout), jnp.bfloat16),
                   jax.ShapeDtypeStruct((nt, 1, cout), jnp.float32),
                   jax.ShapeDtypeStruct((nt, 1, cout), jnp.float32)),
        grid=(nt,),
        in_specs=[pl.BlockSpec((tile_m, cin), lambda i: (i, 0)),
                  pl.BlockSpec((cin, cout), lambda i: (0, 0))],     # resident
        out_specs=(pl.BlockSpec((tile_m, cout), lambda i: (i, 0)),
                   pl.BlockSpec((1, 1, cout), lambda i: (i, 0, 0)),
                   pl.BlockSpec((1, 1, cout), lambda i: (i, 0, 0))),
        compiler_params=pltpu.CompilerParams(
            dimension_semantics=("parallel",),
            vmem_limit_bytes=_vmem_limit(blk, tile_m * cout * 4)),
    )(x2d, w)


def _bn_relu_conv1x1_stats(y, scale, shift, w, tile_m):
    m, cin = y.shape
    cout = w.shape[1]
    nt = m // tile_m
    blk = ((tile_m * cin + cin * cout + tile_m * cout) * 2
           + 2 * cin * 4 + 2 * cout * 4)
    return pl.pallas_call(
        _bn_relu_mm_stats_kernel,
        out_shape=(jax.ShapeDtypeStruct((m, cout), jnp.bfloat16),
                   jax.ShapeDtypeStruct((nt, 1, cout), jnp.float32),
                   jax.ShapeDtypeStruct((nt, 1, cout), jnp.float32)),
        grid=(nt,),
        in_specs=[pl.BlockSpec((tile_m, cin), lambda i: (i, 0)),
                  pl.BlockSpec((1, cin), lambda i: (0, 0)),
                  pl.BlockSpec((1, cin), lambda i: (0, 0)),
                  pl.BlockSpec((cin, cout), lambda i: (0, 0))],
        out_specs=(pl.BlockSpec((tile_m, cout), lambda i: (i, 0)),
                   pl.BlockSpec((1, 1, cout), lambda i: (i, 0, 0)),
                   pl.BlockSpec((1, 1, cout), lambda i: (i, 0, 0))),
        compiler_params=pltpu.CompilerParams(
            dimension_semantics=("parallel",),
            vmem_limit_bytes=_vmem_limit(blk, tile_m * (cin + cout) * 4)),
    )(y, scale, shift, w)


def _bn_relu_conv3x3_stats(y1_img, scale, shift, w, tr):
    n, h, wd, c = y1_img.shape
    cout = w.shape[1]
    nr = h // tr
    blk = ((tr + 2) * wd * c + 9 * c * cout + tr * wd * cout) * 2 \
        + 2 * c * 4 + 2 * cout * 4
    scratch = (tr + 2) * (wd + 2) * c * 2 + tr * wd * cout * 4
    return pl.pallas_call(
        _conv3x3_fused_kernel,
        out_shape=(jax.ShapeDtypeStruct((n, h, wd, cout), jnp.bfloat16),
                   jax.ShapeDtypeStruct((n, nr, 1, cout), jnp.float32),
                   jax.ShapeDtypeStruct((n, nr, 1, cout), jnp.float32)),
        grid=(n, nr),
        in_specs=[
            pl.BlockSpec((1, tr, wd, c), lambda b, r: (b, r, 0, 0)),
            # 1-row halos: clamped row indices, boundary rows zeroed in-kernel.
            pl.BlockSpec((1, 1, wd, c),
                         lambda b, r: (b, jnp.maximum(r * tr - 1, 0), 0, 0)),
            pl.BlockSpec((1, 1, wd, c),
                         lambda b, r: (b, jnp.minimum(r * tr + tr, h - 1), 0, 0)),
            pl.BlockSpec((1, c), lambda b, r: (0, 0)),
            pl.BlockSpec((1, c), lambda b, r: (0, 0)),
            pl.BlockSpec((9 * c, cout), lambda b, r: (0, 0)),
        ],
        out_specs=(pl.BlockSpec((1, tr, wd, cout), lambda b, r: (b, r, 0, 0)),
                   pl.BlockSpec((1, 1, 1, cout), lambda b, r: (b, r, 0, 0)),
                   pl.BlockSpec((1, 1, 1, cout), lambda b, r: (b, r, 0, 0))),
        scratch_shapes=[pltpu.VMEM((tr + 2, wd + 2, c), jnp.bfloat16)],
        compiler_params=pltpu.CompilerParams(
            dimension_semantics=("parallel", "parallel"),
            vmem_limit_bytes=_vmem_limit(blk, scratch)),
    )(y1_img, y1_img, y1_img, scale, shift, w)


def _bn_add_relu(y3, res, scale, shift, tile_m, cout):
    m, cp = y3.shape
    nt = m // tile_m
    blk = tile_m * cp * 2 * 2 + 2 * cp * 4 + tile_m * cout * 4
    return pl.pallas_call(
        _bn_add_relu_kernel,
        out_shape=jax.ShapeDtypeStruct((m, cout), jnp.float32),
        grid=(nt,),
        in_specs=[pl.BlockSpec((tile_m, cp), lambda i: (i, 0)),
                  pl.BlockSpec((tile_m, cp), lambda i: (i, 0)),
                  pl.BlockSpec((1, cp), lambda i: (0, 0)),
                  pl.BlockSpec((1, cp), lambda i: (0, 0))],
        out_specs=pl.BlockSpec((tile_m, cout), lambda i: (i, 0)),
        compiler_params=pltpu.CompilerParams(
            dimension_semantics=("parallel",),
            vmem_limit_bytes=_vmem_limit(blk)),
    )(y3, res, scale, shift)


# ----------------------------------------------------------------------------
# forward
# ----------------------------------------------------------------------------
def bottleneck_forward(x_nchw, params, tile_m_cap=2048, conv_rows_cap=32):
    """x_nchw: (N, inplanes, H, W) f32 -> (N, inplanes, H, W) f32."""
    n, cin, h, w = x_nchw.shape
    cmid = params["w1"].shape[1]
    cout = params["w3"].shape[1]
    assert cout == cin, "downsample=None requires inplanes == planes * 4"

    m = n * h * w
    cin_p = _round_up(cin, LANE)
    cmid_p = _round_up(cmid, LANE)
    cout_p = _round_up(cout, LANE)
    tile_m = _largest_divisor_tile(m, tile_m_cap)
    tr = _largest_divisor(h, conv_rows_cap)

    # NCHW -> NHWC -> (M, Cpad) bf16. Single padded copy of x in HBM; it is
    # both the stage-1 matmul input and the residual for the final kernel.
    x_nhwc = jnp.transpose(x_nchw, (0, 2, 3, 1))
    x2d = _pad_axis(x_nhwc.reshape(m, cin), cin_p, 1).astype(jnp.bfloat16)

    # Weights / BN params in matmul-ready, channel-padded layouts. Padded
    # gamma/beta = 0 => padded output channels stay exactly 0.
    w1 = _pad_axis(_pad_axis(params["w1"], cin_p, 0), cmid_p, 1
                   ).astype(jnp.bfloat16)
    w2 = params["w2"].reshape(9, cmid, cmid)                 # [kh*3+kw, cin, cout]
    w2 = jnp.zeros((9, cmid_p, cmid_p), jnp.float32).at[:, :cmid, :cmid].set(w2)
    w2 = w2.reshape(9 * cmid_p, cmid_p).astype(jnp.bfloat16)
    w3 = _pad_axis(_pad_axis(params["w3"], cmid_p, 0), cout_p, 1
                   ).astype(jnp.bfloat16)
    g1 = _pad_axis(params["g1"], cmid_p, 0); b1 = _pad_axis(params["b1"], cmid_p, 0)
    g2 = _pad_axis(params["g2"], cmid_p, 0); b2 = _pad_axis(params["b2"], cmid_p, 0)
    g3 = _pad_axis(params["g3"], cout_p, 0); b3 = _pad_axis(params["b3"], cout_p, 0)

    # stage 1: conv1x1 + per-tile partial BN1 stats ("parallel" M grid).
    y1, s1, ss1 = _conv1x1_stats(x2d, w1, tile_m)
    sc1, sh1 = _bn_scale_shift(s1, ss1, m, g1, b1)

    # stage 2: fused (bn1+relu) -> row-tiled conv3x3 (halo in-kernel)
    #          + per-tile partial BN2 stats.
    y2, s2, ss2 = _bn_relu_conv3x3_stats(
        y1.reshape(n, h, w, cmid_p), sc1, sh1, w2, tr)
    sc2, sh2 = _bn_scale_shift(s2, ss2, m, g2, b2)

    # stage 3: fused (bn2+relu) -> conv1x1 (x4 expand) + partial BN3 stats.
    y3, s3, ss3 = _bn_relu_conv1x1_stats(
        y2.reshape(m, cmid_p), sc2, sh2, w3, tile_m)
    sc3, sh3 = _bn_scale_shift(s3, ss3, m, g3, b3)

    # final: bn3 scale/shift + residual add + relu; writes only unpadded C.
    out = _bn_add_relu(y3, x2d, sc3, sh3, tile_m, cout)

    return jnp.transpose(out.reshape(n, h, w, cout), (0, 3, 1, 2))  # -> NCHW


# ----------------------------------------------------------------------------
# parameters & pure-JAX reference
# ----------------------------------------------------------------------------
def init_params(key, inplanes, planes):
    """Synthetic params; canonical layouts: w1 (Cin,Cmid), w2 (3,3,Cmid,Cmid)
    [kh,kw,cin,cout] (= HWIO), w3 (Cmid,Cout), BN gamma/beta 1-D."""
    expansion = 4
    ks = jax.random.split(key, 9)
    return {
        "w1": 0.1 * jax.random.normal(ks[0], (inplanes, planes), jnp.float32),
        "w2": 0.1 * jax.random.normal(ks[1], (3, 3, planes, planes), jnp.float32),
        "w3": 0.1 * jax.random.normal(ks[2], (planes, planes * expansion),
                                      jnp.float32),
        "g1": 1.0 + 0.1 * jax.random.normal(ks[3], (planes,), jnp.float32),
        "b1": 0.1 * jax.random.normal(ks[4], (planes,), jnp.float32),
        "g2": 1.0 + 0.1 * jax.random.normal(ks[5], (planes,), jnp.float32),
        "b2": 0.1 * jax.random.normal(ks[6], (planes,), jnp.float32),
        "g3": 1.0 + 0.1 * jax.random.normal(ks[7], (planes * expansion,),
                                            jnp.float32),
        "b3": 0.1 * jax.random.normal(ks[8], (planes * expansion,), jnp.float32),
    }


def bottleneck_reference(x_nchw, params):
    x = jnp.transpose(x_nchw, (0, 2, 3, 1))

    def bn(y, g, b):
        mean = jnp.mean(y, axis=(0, 1, 2))
        var = jnp.mean((y - mean) ** 2, axis=(0, 1, 2))
        return (y - mean) * jax.lax.rsqrt(var + EPS) * g + b

    y1 = jnp.einsum("nhwc,cd->nhwd", x, params["w1"])
    a1 = jax.nn.relu(bn(y1, params["g1"], params["b1"]))
    y2 = jax.lax.conv_general_dilated(
        a1, params["w2"], window_strides=(1, 1), padding="SAME",
        dimension_numbers=("NHWC", "HWIO", "NHWC"))
    a2 = jax.nn.relu(bn(y2, params["g2"], params["b2"]))
    y3 = jnp.einsum("nhwc,cd->nhwd", a2, params["w3"])
    out = jax.nn.relu(bn(y3, params["g3"], params["b3"]) + x)
    return jnp.transpose(out, (0, 3, 1, 2))


if __name__ == "__main__":
    # Small shapes: batch=2, planes=8 => inplanes = planes*4 = 32, spatial 16x16.
    # tile_m_cap=128 -> 4 M-tiles; conv_rows_cap=8 -> 2 row-tiles/image, so the
    # multi-tile pipeline, per-tile partial stats, and the row halo path are
    # all exercised.
    n, planes, h, w = 2, 8, 16, 16
    inplanes = planes * 4

    key = jax.random.PRNGKey(0)
    k_x, k_p = jax.random.split(key)
    x = jax.random.normal(k_x, (n, inplanes, h, w), jnp.float32)
    params = init_params(k_p, inplanes, planes)

    fwd = jax.jit(functools.partial(bottleneck_forward,
                                    tile_m_cap=128, conv_rows_cap=8))
    out = fwd(x, params)
    jax.block_until_ready(out)

    assert out.shape == (n, inplanes, h, w)
    assert bool(jnp.all(out >= 0.0))        # final ReLU

    # Loose tolerance: bf16 matmul inputs + bf16 residual (f32 accumulation).
    ref = bottleneck_reference(x, params)
    err = float(jnp.max(jnp.abs(out - ref)))
    assert err < 0.2, f"max abs diff vs f32 reference too large: {err}"
    print("KERNEL_OK")
</pallas_src>

<mosaic_0001>
module attributes {stable_mosaic.version = 11 : i64} {
  func.func @_mm_stats_kernel(%arg0: i32, %arg1: memref<128x128xbf16, #tpu.memory_space<vmem>>, %arg2: memref<128x128xbf16, #tpu.memory_space<vmem>>, %arg3: memref<128x128xbf16, #tpu.memory_space<vmem>>, %arg4: memref<1x1x128xf32, #tpu.memory_space<vmem>>, %arg5: memref<1x1x128xf32, #tpu.memory_space<vmem>>) attributes {dimension_semantics = [#tpu.dimension_semantics<parallel>], iteration_bounds = array<i64: 4>, scalar_prefetch = 0 : i64, scratch_operands = 0 : i64, tpu.core_type = #tpu.core_type<tc>, window_params = [{transform_indices = @transform_0, window_bounds = array<i64: 128, 128>}, {pipeline_mode = #tpu.pipeline_mode<synchronous>, transform_indices = @transform_1, window_bounds = array<i64: 128, 128>}, {transform_indices = @transform_2, window_bounds = array<i64: 128, 128>}, {transform_indices = @transform_3, window_bounds = array<i64: 1, 1, 128>}, {transform_indices = @transform_4, window_bounds = array<i64: 1, 1, 128>}]} {
    %c0 = arith.constant 0 : index
    %c0_0 = arith.constant 0 : index
    %0 = vector.load %arg1[%c0, %c0_0] : memref<128x128xbf16, #tpu.memory_space<vmem>>, vector<128x128xbf16>
    %c0_1 = arith.constant 0 : index
    %c0_2 = arith.constant 0 : index
    %1 = vector.load %arg2[%c0_1, %c0_2] : memref<128x128xbf16, #tpu.memory_space<vmem>>, vector<128x128xbf16>
    %cst = arith.constant dense<0.000000e+00> : vector<128x128xf32>
    %2 = tpu.matmul %0, %1, %cst {dimension_numbers = #tpu.dot_dimension_numbers<[1], [0], [0], [1], [0, 0, 1, 1], [], []>} : vector<128x128xbf16>, vector<128x128xbf16>, vector<128x128xf32> -> vector<128x128xf32>
    %3 = arith.truncf %2 : vector<128x128xf32> to vector<128x128xbf16>
    %c0_3 = arith.constant 0 : index
    %c0_4 = arith.constant 0 : index
    %4 = vector.load %arg3[%c0_3, %c0_4] : memref<128x128xbf16, #tpu.memory_space<vmem>>, vector<128x128xbf16>
    tpu.vector_store %arg3[%c0_3, %c0_4], %3 {strides = array<i32>} : memref<128x128xbf16, #tpu.memory_space<vmem>>, vector<128x128xbf16>,
    %cst_5 = arith.constant dense<0.000000e+00> : vector<128xf32>
    %5 = vector.multi_reduction <add>, %2, %cst_5 [0] : vector<128x128xf32> to vector<128xf32>
    %6 = vector.shape_cast %5 : vector<128xf32> to vector<1x1x128xf32>
    %c0_6 = arith.constant 0 : index
    %c0_7 = arith.constant 0 : index
    %c0_8 = arith.constant 0 : index
    %7 = vector.load %arg4[%c0_6, %c0_7, %c0_8] : memref<1x1x128xf32, #tpu.memory_space<vmem>>, vector<1x1x128xf32>
    tpu.vector_store %arg4[%c0_6, %c0_7, %c0_8], %6 {strides = array<i32>} : memref<1x1x128xf32, #tpu.memory_space<vmem>>, vector<1x1x128xf32>,
    %8 = arith.mulf %2, %2 : vector<128x128xf32>
    %cst_9 = arith.constant dense<0.000000e+00> : vector<128xf32>
    %9 = vector.multi_reduction <add>, %8, %cst_9 [0] : vector<128x128xf32> to vector<128xf32>
    %10 = vector.shape_cast %9 : vector<128xf32> to vector<1x1x128xf32>
    %c0_10 = arith.constant 0 : index
    %c0_11 = arith.constant 0 : index
    %c0_12 = arith.constant 0 : index
    %11 = vector.load %arg5[%c0_10, %c0_11, %c0_12] : memref<1x1x128xf32, #tpu.memory_space<vmem>>, vector<1x1x128xf32>
    tpu.vector_store %arg5[%c0_10, %c0_11, %c0_12], %10 {strides = array<i32>} : memref<1x1x128xf32, #tpu.memory_space<vmem>>, vector<1x1x128xf32>,
    return
  }
  func.func @transform_0(%arg0: i32) -> (i32, i32) {
    %c0_i32 = arith.constant 0 : i32
    %c0_i32_0 = arith.constant 0 : i32
    return %arg0, %c0_i32 : i32, i32
  }
  func.func @transform_1(%arg0: i32) -> (i32, i32) {
    %c0_i32 = arith.constant 0 : i32
    %c0_i32_0 = arith.constant 0 : i32
    %c0_i32_1 = arith.constant 0 : i32
    return %c0_i32, %c0_i32_0 : i32, i32
  }
  func.func @transform_2(%arg0: i32) -> (i32, i32) {
    %c0_i32 = arith.constant 0 : i32
    %c0_i32_0 = arith.constant 0 : i32
    return %arg0, %c0_i32 : i32, i32
  }
  func.func @transform_3(%arg0: i32) -> (i32, i32, i32) {
    %c0_i32 = arith.constant 0 : i32
    %c0_i32_0 = arith.constant 0 : i32
    %c0_i32_1 = arith.constant 0 : i32
    return %arg0, %c0_i32, %c0_i32_0 : i32, i32, i32
  }
  func.func @transform_4(%arg0: i32) -> (i32, i32, i32) {
    %c0_i32 = arith.constant 0 : i32
    %c0_i32_0 = arith.constant 0 : i32
    %c0_i32_1 = arith.constant 0 : i32
    return %arg0, %c0_i32, %c0_i32_0 : i32, i32, i32
  }
}

module attributes {stable_mosaic.version = 11 : i64} {
  func.func @_conv3x3_fused_kernel(%arg0: i32, %arg1: i32, %arg2: memref<1x8x16x128xbf16, #tpu.memory_space<vmem>>, %arg3: memref<1x1x16x128xbf16, #tpu.memory_space<vmem>>, %arg4: memref<1x1x16x128xbf16, #tpu.memory_space<vmem>>, %arg5: memref<1x128xf32, #tpu.memory_space<vmem>>, %arg6: memref<1x128xf32, #tpu.memory_space<vmem>>, %arg7: memref<1152x128xbf16, #tpu.memory_space<vmem>>, %arg8: memref<1x8x16x128xbf16, #tpu.memory_space<vmem>>, %arg9: memref<1x1x1x128xf32, #tpu.memory_space<vmem>>, %arg10: memref<1x1x1x128xf32, #tpu.memory_space<vmem>>, %arg11: memref<10x18x128xbf16, #tpu.memory_space<vmem>>) attributes {dimension_semantics = [#tpu.dimension_semantics<parallel>, #tpu.dimension_semantics<parallel>], iteration_bounds = array<i64: 2, 2>, scalar_prefetch = 0 : i64, scratch_operands = 1 : i64, tpu.core_type = #tpu.core_type<tc>, window_params = [{transform_indices = @transform_0, window_bounds = array<i64: 1, 8, 16, 128>}, {transform_indices = @transform_1, window_bounds = array<i64: 1, 1, 16, 128>}, {transform_indices = @transform_2, window_bounds = array<i64: 1, 1, 16, 128>}, {pipeline_mode = #tpu.pipeline_mode<synchronous>, transform_indices = @transform_3, window_bounds = array<i64: 1, 128>}, {pipeline_mode = #tpu.pipeline_mode<synchronous>, transform_indices = @transform_4, window_bounds = array<i64: 1, 128>}, {pipeline_mode = #tpu.pipeline_mode<synchronous>, transform_indices = @transform_5, window_bounds = array<i64: 1152, 128>}, {transform_indices = @transform_6, window_bounds = array<i64: 1, 8, 16, 128>}, {transform_indices = @transform_7, window_bounds = array<i64: 1, 1, 1, 128>}, {transform_indices = @transform_8, window_bounds = array<i64: 1, 1, 1, 128>}]} {
    %cst = arith.constant 0.000000e+00 : bf16
    %0 = vector.broadcast %cst : bf16 to vector<10x18x128xbf16>
    %c0 = arith.constant 0 : index
    %c0_0 = arith.constant 0 : index
    %c0_1 = arith.constant 0 : index
    %1 = vector.load %arg11[%c0, %c0_0, %c0_1] : memref<10x18x128xbf16, #tpu.memory_space<vmem>>, vector<10x18x128xbf16>
    tpu.vector_store %arg11[%c0, %c0_0, %c0_1], %0 {strides = array<i32>} : memref<10x18x128xbf16, #tpu.memory_space<vmem>>, vector<10x18x128xbf16>,
    %c0_2 = arith.constant 0 : index
    %c0_3 = arith.constant 0 : index
    %c0_4 = arith.constant 0 : index
    %c0_5 = arith.constant 0 : index
    %2 = vector.load %arg2[%c0_2, %c0_3, %c0_4, %c0_5] : memref<1x8x16x128xbf16, #tpu.memory_space<vmem>>, vector<1x8x16x128xbf16>
    %3 = vector.shape_cast %2 : vector<1x8x16x128xbf16> to vector<8x16x128xbf16>
    %4 = arith.extf %3 : vector<8x16x128xbf16> to vector<8x16x128xf32>
    %c0_6 = arith.constant 0 : index
    %c0_7 = arith.constant 0 : index
    %5 = vector.load %arg5[%c0_6, %c0_7] : memref<1x128xf32, #tpu.memory_space<vmem>>, vector<1x128xf32>
    %6 = vector.shape_cast %5 : vector<1x128xf32> to vector<1x1x128xf32>
    %7 = vector.broadcast %6 : vector<1x1x128xf32> to vector<8x16x128xf32>
    %8 = arith.mulf %4, %7 : vector<8x16x128xf32>
    %c0_8 = arith.constant 0 : index
    %c0_9 = arith.constant 0 : index
    %9 = vector.load %arg6[%c0_8, %c0_9] : memref<1x128xf32, #tpu.memory_space<vmem>>, vector<1x128xf32>
    %10 = vector.shape_cast %9 : vector<1x128xf32> to vector<1x1x128xf32>
    %11 = vector.broadcast %10 : vector<1x1x128xf32> to vector<8x16x128xf32>
    %12 = arith.addf %8, %11 : vector<8x16x128xf32>
    %cst_10 = arith.constant 0.000000e+00 : f32
    %13 = vector.broadcast %cst_10 : f32 to vector<8x16x128xf32>
    %14 = arith.maximumf %12, %13 : vector<8x16x128xf32>
    %15 = arith.truncf %14 : vector<8x16x128xf32> to vector<8x16x128xbf16>
    %c1 = arith.constant 1 : index
    %c1_11 = arith.constant 1 : index
    %c0_12 = arith.constant 0 : index
    %16 = vector.load %arg11[%c1, %c1_11, %c0_12] : memref<10x18x128xbf16, #tpu.memory_space<vmem>>, vector<8x16x128xbf16>
    tpu.vector_store %arg11[%c1, %c1_11, %c0_12], %15 {strides = array<i32>} : memref<10x18x128xbf16, #tpu.memory_space<vmem>>, vector<8x16x128xbf16>,
    %c0_i32 = arith.constant 0 : i32
    %17 = arith.cmpi sgt, %arg1, %c0_i32 : i32
    %18 = arith.extui %17 : i1 to i32
    %c0_i32_13 = arith.constant 0 : i32
    %19 = arith.cmpi ne, %18, %c0_i32_13 : i32
    scf.if %19 {
      %c0_75 = arith.constant 0 : index
      %c0_76 = arith.constant 0 : index
      %c0_77 = arith.constant 0 : index
      %c0_78 = arith.constant 0 : index
      %79 = vector.load %arg3[%c0_75, %c0_76, %c0_77, %c0_78] : memref<1x1x16x128xbf16, #tpu.memory_space<vmem>>, vector<1x1x16x128xbf16>
      %80 = vector.shape_cast %79 : vector<1x1x16x128xbf16> to vector<16x128xbf16>
      %81 = arith.extf %80 : vector<16x128xbf16> to vector<16x128xf32>
      %c0_79 = arith.constant 0 : index
      %c0_80 = arith.constant 0 : index
      %82 = vector.load %arg5[%c0_79, %c0_80] : memref<1x128xf32, #tpu.memory_space<vmem>>, vector<1x128xf32>
      %83 = vector.broadcast %82 : vector<1x128xf32> to vector<16x128xf32>
      %84 = arith.mulf %81, %83 : vector<16x128xf32>
      %c0_81 = arith.constant 0 : index
      %c0_82 = arith.constant 0 : index
      %85 = vector.load %arg6[%c0_81, %c0_82] : memref<1x128xf32, #tpu.memory_space<vmem>>, vector<1x128xf32>
      %86 = vector.broadcast %85 : vector<1x128xf32> to vector<16x128xf32>
      %87 = arith.addf %84, %86 : vector<16x128xf32>
      %cst_83 = arith.constant 0.000000e+00 : f32
      %88 = vector.broadcast %cst_83 : f32 to vector<16x128xf32>
      %89 = arith.maximumf %87, %88 : vector<16x128xf32>
      %90 = arith.truncf %89 : vector<16x128xf32> to vector<16x128xbf16>
      %c0_84 = arith.constant 0 : index
      %c1_85 = arith.constant 1 : index
      %c0_86 = arith.constant 0 : index
      %91 = vector.load %arg11[%c0_84, %c1_85, %c0_86] : memref<10x18x128xbf16, #tpu.memory_space<vmem>>, vector<1x16x128xbf16>
      %92 = vector.shape_cast %91 : vector<1x16x128xbf16> to vector<16x128xbf16>
      %93 = vector.shape_cast %90 : vector<16x128xbf16> to vector<1x16x128xbf16>
      tpu.vector_store %arg11[%c0_84, %c1_85, %c0_86], %93 {strides = array<i32>} : memref<10x18x128xbf16, #tpu.memory_space<vmem>>, vector<1x16x128xbf16>,
    } else {
    }
    %c1_i32 = arith.constant 1 : i32
    %20 = arith.cmpi slt, %arg1, %c1_i32 : i32
    %21 = arith.extui %20 : i1 to i32
    %c0_i32_14 = arith.constant 0 : i32
    %22 = arith.cmpi ne, %21, %c0_i32_14 : i32
    scf.if %22 {
      %c0_75 = arith.constant 0 : index
      %c0_76 = arith.constant 0 : index
      %c0_77 = arith.constant 0 : index
      %c0_78 = arith.constant 0 : index
      %79 = vector.load %arg4[%c0_75, %c0_76, %c0_77, %c0_78] : memref<1x1x16x128xbf16, #tpu.memory_space<vmem>>, vector<1x1x16x128xbf16>
      %80 = vector.shape_cast %79 : vector<1x1x16x128xbf16> to vector<16x128xbf16>
      %81 = arith.extf %80 : vector<16x128xbf16> to vector<16x128xf32>
      %c0_79 = arith.constant 0 : index
      %c0_80 = arith.constant 0 : index
      %82 = vector.load %arg5[%c0_79, %c0_80] : memref<1x128xf32, #tpu.memory_space<vmem>>, vector<1x128xf32>
      %83 = vector.broadcast %82 : vector<1x128xf32> to vector<16x128xf32>
      %84 = arith.mulf %81, %83 : vector<16x128xf32>
      %c0_81 = arith.constant 0 : index
      %c0_82 = arith.constant 0 : index
      %85 = vector.load %arg6[%c0_81, %c0_82] : memref<1x128xf32, #tpu.memory_space<vmem>>, vector<1x128xf32>
      %86 = vector.broadcast %85 : vector<1x128xf32> to vector<16x128xf32>
      %87 = arith.addf %84, %86 : vector<16x128xf32>
      %cst_83 = arith.constant 0.000000e+00 : f32
      %88 = vector.broadcast %cst_83 : f32 to vector<16x128xf32>
      %89 = arith.maximumf %87, %88 : vector<16x128xf32>
      %90 = arith.truncf %89 : vector<16x128xf32> to vector<16x128xbf16>
      %c9 = arith.constant 9 : index
      %c1_84 = arith.constant 1 : index
      %c0_85 = arith.constant 0 : index
      %91 = vector.load %arg11[%c9, %c1_84, %c0_85] : memref<10x18x128xbf16, #tpu.memory_space<vmem>>, vector<1x16x128xbf16>
      %92 = vector.shape_cast %91 : vector<1x16x128xbf16> to vector<16x128xbf16>
      %93 = vector.shape_cast %90 : vector<16x128xbf16> to vector<1x16x128xbf16>
      tpu.vector_store %arg11[%c9, %c1_84, %c0_85], %93 {strides = array<i32>} : memref<10x18x128xbf16, #tpu.memory_space<vmem>>, vector<1x16x128xbf16>,
    } else {
    }
    %cst_15 = arith.constant 0.000000e+00 : f32
    %23 = vector.broadcast %cst_15 : f32 to vector<128x128xf32>
    %c0_16 = arith.constant 0 : index
    %c0_17 = arith.constant 0 : index
    %c0_18 = arith.constant 0 : index
    %24 = vector.load %arg11[%c0_16, %c0_17, %c0_18] : memref<10x18x128xbf16, #tpu.memory_space<vmem>>, vector<8x16x128xbf16>
    %25 = vector.shape_cast %24 : vector<8x16x128xbf16> to vector<128x128xbf16>
    %c0_19 = arith.constant 0 : index
    %c0_20 = arith.constant 0 : index
    %26 = vector.load %arg7[%c0_19, %c0_20] : memref<1152x128xbf16, #tpu.memory_space<vmem>>, vector<128x128xbf16>
    %cst_21 = arith.constant dense<0.000000e+00> : vector<128x128xf32>
    %27 = tpu.matmul %25, %26, %cst_21 {dimension_numbers = #tpu.dot_dimension_numbers<[1], [0], [0], [1], [0, 0, 1, 1], [], []>} : vector<128x128xbf16>, vector<128x128xbf16>, vector<128x128xf32> -> vector<128x128xf32>
    %28 = arith.addf %23, %27 : vector<128x128xf32>
    %c0_22 = arith.constant 0 : index
    %c1_23 = arith.constant 1 : index
    %c0_24 = arith.constant 0 : index
    %29 = vector.load %arg11[%c0_22, %c1_23, %c0_24] : memref<10x18x128xbf16, #tpu.memory_space<vmem>>, vector<8x16x128xbf16>
    %30 = vector.shape_cast %29 : vector<8x16x128xbf16> to vector<128x128xbf16>
    %c128 = arith.constant 128 : index
    %c0_25 = arith.constant 0 : index
    %31 = vector.load %arg7[%c128, %c0_25] : memref<1152x128xbf16, #tpu.memory_space<vmem>>, vector<128x128xbf16>
    %cst_26 = arith.constant dense<0.000000e+00> : vector<128x128xf32>
    %32 = tpu.matmul %30, %31, %cst_26 {dimension_numbers = #tpu.dot_dimension_numbers<[1], [0], [0], [1], [0, 0, 1, 1], [], []>} : vector<128x128xbf16>, vector<128x128xbf16>, vector<128x128xf32> -> vector<128x128xf32>
    %33 = arith.addf %28, %32 : vector<128x128xf32>
    %c0_27 = arith.constant 0 : index
    %c2 = arith.constant 2 : index
    %c0_28 = arith.constant 0 : index
    %34 = vector.load %arg11[%c0_27, %c2, %c0_28] : memref<10x18x128xbf16, #tpu.memory_space<vmem>>, vector<8x16x128xbf16>
    %35 = vector.shape_cast %34 : vector<8x16x128xbf16> to vector<128x128xbf16>
    %c256 = arith.constant 256 : index
    %c0_29 = arith.constant 0 : index
    %36 = vector.load %arg7[%c256, %c0_29] : memref<1152x128xbf16, #tpu.memory_space<vmem>>, vector<128x128xbf16>
    %cst_30 = arith.constant dense<0.000000e+00> : vector<128x128xf32>
    %37 = tpu.matmul %35, %36, %cst_30 {dimension_numbers = #tpu.dot_dimension_numbers<[1], [0], [0], [1], [0, 0, 1, 1], [], []>} : vector<128x128xbf16>, vector<128x128xbf16>, vector<128x128xf32> -> vector<128x128xf32>
    %38 = arith.addf %33, %37 : vector<128x128xf32>
    %c1_31 = arith.constant 1 : index
    %c0_32 = arith.constant 0 : index
    %c0_33 = arith.constant 0 : index
    %39 = vector.load %arg11[%c1_31, %c0_32, %c0_33] : memref<10x18x128xbf16, #tpu.memory_space<vmem>>, vector<8x16x128xbf16>
    %40 = vector.shape_cast %39 : vector<8x16x128xbf16> to vector<128x128xbf16>
    %c384 = arith.constant 384 : index
    %c0_34 = arith.constant 0 : index
    %41 = vector.load %arg7[%c384, %c0_34] : memref<1152x128xbf16, #tpu.memory_space<vmem>>, vector<128x128xbf16>
    %cst_35 = arith.constant dense<0.000000e+00> : vector<128x128xf32>
    %42 = tpu.matmul %40, %41, %cst_35 {dimension_numbers = #tpu.dot_dimension_numbers<[1], [0], [0], [1], [0, 0, 1, 1], [], []>} : vector<128x128xbf16>, vector<128x128xbf16>, vector<128x128xf32> -> vector<128x128xf32>
    %43 = arith.addf %38, %42 : vector<128x128xf32>
    %c1_36 = arith.constant 1 : index
    %c1_37 = arith.constant 1 : index
    %c0_38 = arith.constant 0 : index
    %44 = vector.load %arg11[%c1_36, %c1_37, %c0_38] : memref<10x18x128xbf16, #tpu.memory_space<vmem>>, vector<8x16x128xbf16>
    %45 = vector.shape_cast %44 : vector<8x16x128xbf16> to vector<128x128xbf16>
    %c512 = arith.constant 512 : index
    %c0_39 = arith.constant 0 : index
    %46 = vector.load %arg7[%c512, %c0_39] : memref<1152x128xbf16, #tpu.memory_space<vmem>>, vector<128x128xbf16>
    %cst_40 = arith.constant dense<0.000000e+00> : vector<128x128xf32>
    %47 = tpu.matmul %45, %46, %cst_40 {dimension_numbers = #tpu.dot_dimension_numbers<[1], [0], [0], [1], [0, 0, 1, 1], [], []>} : vector<128x128xbf16>, vector<128x128xbf16>, vector<128x128xf32> -> vector<128x128xf32>
    %48 = arith.addf %43, %47 : vector<128x128xf32>
    %c1_41 = arith.constant 1 : index
    %c2_42 = arith.constant 2 : index
    %c0_43 = arith.constant 0 : index
    %49 = vector.load %arg11[%c1_41, %c2_42, %c0_43] : memref<10x18x128xbf16, #tpu.memory_space<vmem>>, vector<8x16x128xbf16>
    %50 = vector.shape_cast %49 : vector<8x16x128xbf16> to vector<128x128xbf16>
    %c640 = arith.constant 640 : index
    %c0_44 = arith.constant 0 : index
    %51 = vector.load %arg7[%c640, %c0_44] : memref<1152x128xbf16, #tpu.memory_space<vmem>>, vector<128x128xbf16>
    %cst_45 = arith.constant dense<0.000000e+00> : vector<128x128xf32>
    %52 = tpu.matmul %50, %51, %cst_45 {dimension_numbers = #tpu.dot_dimension_numbers<[1], [0], [0], [1], [0, 0, 1, 1], [], []>} : vector<128x128xbf16>, vector<128x128xbf16>, vector<128x128xf32> -> vector<128x128xf32>
    %53 = arith.addf %48, %52 : vector<128x128xf32>
    %c2_46 = arith.constant 2 : index
    %c0_47 = arith.constant 0 : index
    %c0_48 = arith.constant 0 : index
    %54 = vector.load %arg11[%c2_46, %c0_47, %c0_48] : memref<10x18x128xbf16, #tpu.memory_space<vmem>>, vector<8x16x128xbf16>
    %55 = vector.shape_cast %54 : vector<8x16x128xbf16> to vector<128x128xbf16>
    %c768 = arith.constant 768 : index
    %c0_49 = arith.constant 0 : index
    %56 = vector.load %arg7[%c768, %c0_49] : memref<1152x128xbf16, #tpu.memory_space<vmem>>, vector<128x128xbf16>
    %cst_50 = arith.constant dense<0.000000e+00> : vector<128x128xf32>
    %57 = tpu.matmul %55, %56, %cst_50 {dimension_numbers = #tpu.dot_dimension_numbers<[1], [0], [0], [1], [0, 0, 1, 1], [], []>} : vector<128x128xbf16>, vector<128x128xbf16>, vector<128x128xf32> -> vector<128x128xf32>
    %58 = arith.addf %53, %57 : vector<128x128xf32>
    %c2_51 = arith.constant 2 : index
    %c1_52 = arith.constant 1 : index
    %c0_53 = arith.constant 0 : index
    %59 = vector.load %arg11[%c2_51, %c1_52, %c0_53] : memref<10x18x128xbf16, #tpu.memory_space<vmem>>, vector<8x16x128xbf16>
    %60 = vector.shape_cast %59 : vector<8x16x128xbf16> to vector<128x128xbf16>
    %c896 = arith.constant 896 : index
    %c0_54 = arith.constant 0 : index
    %61 = vector.load %arg7[%c896, %c0_54] : memref<1152x128xbf16, #tpu.memory_space<vmem>>, vector<128x128xbf16>
    %cst_55 = arith.constant dense<0.000000e+00> : vector<128x128xf32>
    %62 = tpu.matmul %60, %61, %cst_55 {dimension_numbers = #tpu.dot_dimension_numbers<[1], [0], [0], [1], [0, 0, 1, 1], [], []>} : vector<128x128xbf16>, vector<128x128xbf16>, vector<128x128xf32> -> vector<128x128xf32>
    %63 = arith.addf %58, %62 : vector<128x128xf32>
    %c2_56 = arith.constant 2 : index
    %c2_57 = arith.constant 2 : index
    %c0_58 = arith.constant 0 : index
    %64 = vector.load %arg11[%c2_56, %c2_57, %c0_58] : memref<10x18x128xbf16, #tpu.memory_space<vmem>>, vector<8x16x128xbf16>
    %65 = vector.shape_cast %64 : vector<8x16x128xbf16> to vector<128x128xbf16>
    %c1024 = arith.constant 1024 : index
    %c0_59 = arith.constant 0 : index
    %66 = vector.load %arg7[%c1024, %c0_59] : memref<1152x128xbf16, #tpu.memory_space<vmem>>, vector<128x128xbf16>
    %cst_60 = arith.constant dense<0.000000e+00> : vector<128x128xf32>
    %67 = tpu.matmul %65, %66, %cst_60 {dimension_numbers = #tpu.dot_dimension_numbers<[1], [0], [0], [1], [0, 0, 1, 1], [], []>} : vector<128x128xbf16>, vector<128x128xbf16>, vector<128x128xf32> -> vector<128x128xf32>
    %68 = arith.addf %63, %67 : vector<128x128xf32>
    %69 = vector.shape_cast %68 : vector<128x128xf32> to vector<1x8x16x128xf32>
    %70 = arith.truncf %69 : vector<1x8x16x128xf32> to vector<1x8x16x128xbf16>
    %c0_61 = arith.constant 0 : index
    %c0_62 = arith.constant 0 : index
    %c0_63 = arith.constant 0 : index
    %c0_64 = arith.constant 0 : index
    %71 = vector.load %arg8[%c0_61, %c0_62, %c0_63, %c0_64] : memref<1x8x16x128xbf16, #tpu.memory_space<vmem>>, vector<1x8x16x128xbf16>
    tpu.vector_store %arg8[%c0_61, %c0_62, %c0_63, %c0_64], %70 {strides = array<i32>} : memref<1x8x16x128xbf16, #tpu.memory_space<vmem>>, vector<1x8x16x128xbf16>,
    %cst_65 = arith.constant dense<0.000000e+00> : vector<128xf32>
    %72 = vector.multi_reduction <add>, %68, %cst_65 [0] : vector<128x128xf32> to vector<128xf32>
    %73 = vector.shape_cast %72 : vector<128xf32> to vector<1x1x1x128xf32>
    %c0_66 = arith.constant 0 : index
    %c0_67 = arith.constant 0 : index
    %c0_68 = arith.constant 0 : index
    %c0_69 = arith.constant 0 : index
    %74 = vector.load %arg9[%c0_66, %c0_67, %c0_68, %c0_69] : memref<1x1x1x128xf32, #tpu.memory_space<vmem>>, vector<1x1x1x128xf32>
    tpu.vector_store %arg9[%c0_66, %c0_67, %c0_68, %c0_69], %73 {strides = array<i32>} : memref<1x1x1x128xf32, #tpu.memory_space<vmem>>, vector<1x1x1x128xf32>,
    %75 = arith.mulf %68, %68 : vector<128x128xf32>
    %cst_70 = arith.constant dense<0.000000e+00> : vector<128xf32>
    %76 = vector.multi_reduction <add>, %75, %cst_70 [0] : vector<128x128xf32> to vector<128xf32>
    %77 = vector.shape_cast %76 : vector<128xf32> to vector<1x1x1x128xf32>
    %c0_71 = arith.constant 0 : index
    %c0_72 = arith.constant 0 : index
    %c0_73 = arith.constant 0 : index
    %c0_74 = arith.constant 0 : index
    %78 = vector.load %arg10[%c0_71, %c0_72, %c0_73, %c0_74] : memref<1x1x1x128xf32, #tpu.memory_space<vmem>>, vector<1x1x1x128xf32>
    tpu.vector_store %arg10[%c0_71, %c0_72, %c0_73, %c0_74], %77 {strides = array<i32>} : memref<1x1x1x128xf32, #tpu.memory_space<vmem>>, vector<1x1x1x128xf32>,
    return
  }
  func.func @transform_0(%arg0: i32, %arg1: i32) -> (i32, i32, i32, i32) {
    %c0_i32 = arith.constant 0 : i32
    %c0_i32_0 = arith.constant 0 : i32
    %c0_i32_1 = arith.constant 0 : i32
    return %arg0, %arg1, %c0_i32, %c0_i32_0 : i32, i32, i32, i32
  }
  func.func @transform_1(%arg0: i32, %arg1: i32) -> (i32, i32, i32, i32) {
    %c8_i32 = arith.constant 8 : i32
    %0 = arith.muli %arg1, %c8_i32 : i32
    %c1_i32 = arith.constant 1 : i32
    %1 = arith.subi %0, %c1_i32 : i32
    %c0_i32 = arith.constant 0 : i32
    %2 = arith.maxsi %1, %c0_i32 : i32
    %c0_i32_0 = arith.constant 0 : i32
    %c0_i32_1 = arith.constant 0 : i32
    %c0_i32_2 = arith.constant 0 : i32
    return %arg0, %2, %c0_i32_0, %c0_i32_1 : i32, i32, i32, i32
  }
  func.func @transform_2(%arg0: i32, %arg1: i32) -> (i32, i32, i32, i32) {
    %c8_i32 = arith.constant 8 : i32
    %0 = arith.muli %arg1, %c8_i32 : i32
    %c8_i32_0 = arith.constant 8 : i32
    %1 = arith.addi %0, %c8_i32_0 : i32
    %c15_i32 = arith.constant 15 : i32
    %2 = arith.minsi %1, %c15_i32 : i32
    %c0_i32 = arith.constant 0 : i32
    %c0_i32_1 = arith.constant 0 : i32
    %c0_i32_2 = arith.constant 0 : i32
    return %arg0, %2, %c0_i32, %c0_i32_1 : i32, i32, i32, i32
  }
  func.func @transform_3(%arg0: i32, %arg1: i32) -> (i32, i32) {
    %c0_i32 = arith.constant 0 : i32
    %c0_i32_0 = arith.constant 0 : i32
    %c0_i32_1 = arith.constant 0 : i32
    return %c0_i32, %c0_i32_0 : i32, i32
  }
  func.func @transform_4(%arg0: i32, %arg1: i32) -> (i32, i32) {
    %c0_i32 = arith.constant 0 : i32
    %c0_i32_0 = arith.constant 0 : i32
    %c0_i32_1 = arith.constant 0 : i32
    return %c0_i32, %c0_i32_0 : i32, i32
  }
  func.func @transform_5(%arg0: i32, %arg1: i32) -> (i32, i32) {
    %c0_i32 = arith.constant 0 : i32
    %c0_i32_0 = arith.constant 0 : i32
    %c0_i32_1 = arith.constant 0 : i32
    return %c0_i32, %c0_i32_0 : i32, i32
  }
  func.func @transform_6(%arg0: i32, %arg1: i32) -> (i32, i32, i32, i32) {
    %c0_i32 = arith.constant 0 : i32
    %c0_i32_0 = arith.constant 0 : i32
    %c0_i32_1 = arith.constant 0 : i32
    return %arg0, %arg1, %c0_i32, %c0_i32_0 : i32, i32, i32, i32
  }
  func.func @transform_7(%arg0: i32, %arg1: i32) -> (i32, i32, i32, i32) {
    %c0_i32 = arith.constant 0 : i32
    %c0_i32_0 = arith.constant 0 : i32
    %c0_i32_1 = arith.constant 0 : i32
    return %arg0, %arg1, %c0_i32, %c0_i32_0 : i32, i32, i32, i32
  }
  func.func @transform_8(%arg0: i32, %arg1: i32) -> (i32, i32, i32, i32) {
    %c0_i32 = arith.constant 0 : i32
    %c0_i32_0 = arith.constant 0 : i32
    %c0_i32_1 = arith.constant 0 : i32
    return %arg0, %arg1, %c0_i32, %c0_i32_0 : i32, i32, i32, i32
  }
}

module attributes {stable_mosaic.version = 11 : i64} {
  func.func @_bn_relu_mm_stats_kernel(%arg0: i32, %arg1: memref<128x128xbf16, #tpu.memory_space<vmem>>, %arg2: memref<1x128xf32, #tpu.memory_space<vmem>>, %arg3: memref<1x128xf32, #tpu.memory_space<vmem>>, %arg4: memref<128x128xbf16, #tpu.memory_space<vmem>>, %arg5: memref<128x128xbf16, #tpu.memory_space<vmem>>, %arg6: memref<1x1x128xf32, #tpu.memory_space<vmem>>, %arg7: memref<1x1x128xf32, #tpu.memory_space<vmem>>) attributes {dimension_semantics = [#tpu.dimension_semantics<parallel>], iteration_bounds = array<i64: 4>, scalar_prefetch = 0 : i64, scratch_operands = 0 : i64, tpu.core_type = #tpu.core_type<tc>, window_params = [{transform_indices = @transform_0, window_bounds = array<i64: 128, 128>}, {pipeline_mode = #tpu.pipeline_mode<synchronous>, transform_indices = @transform_1, window_bounds = array<i64: 1, 128>}, {pipeline_mode = #tpu.pipeline_mode<synchronous>, transform_indices = @transform_2, window_bounds = array<i64: 1, 128>}, {pipeline_mode = #tpu.pipeline_mode<synchronous>, transform_indices = @transform_3, window_bounds = array<i64: 128, 128>}, {transform_indices = @transform_4, window_bounds = array<i64: 128, 128>}, {transform_indices = @transform_5, window_bounds = array<i64: 1, 1, 128>}, {transform_indices = @transform_6, window_bounds = array<i64: 1, 1, 128>}]} {
    %c0 = arith.constant 0 : index
    %c0_0 = arith.constant 0 : index
    %0 = vector.load %arg1[%c0, %c0_0] : memref<128x128xbf16, #tpu.memory_space<vmem>>, vector<128x128xbf16>
    %1 = arith.extf %0 : vector<128x128xbf16> to vector<128x128xf32>
    %c0_1 = arith.constant 0 : index
    %c0_2 = arith.constant 0 : index
    %2 = vector.load %arg2[%c0_1, %c0_2] : memref<1x128xf32, #tpu.memory_space<vmem>>, vector<1x128xf32>
    %3 = vector.broadcast %2 : vector<1x128xf32> to vector<128x128xf32>
    %4 = arith.mulf %1, %3 : vector<128x128xf32>
    %c0_3 = arith.constant 0 : index
    %c0_4 = arith.constant 0 : index
    %5 = vector.load %arg3[%c0_3, %c0_4] : memref<1x128xf32, #tpu.memory_space<vmem>>, vector<1x128xf32>
    %6 = vector.broadcast %5 : vector<1x128xf32> to vector<128x128xf32>
    %7 = arith.addf %4, %6 : vector<128x128xf32>
    %cst = arith.constant 0.000000e+00 : f32
    %8 = vector.broadcast %cst : f32 to vector<128x128xf32>
    %9 = arith.maximumf %7, %8 : vector<128x128xf32>
    %10 = arith.truncf %9 : vector<128x128xf32> to vector<128x128xbf16>
    %c0_5 = arith.constant 0 : index
    %c0_6 = arith.constant 0 : index
    %11 = vector.load %arg4[%c0_5, %c0_6] : memref<128x128xbf16, #tpu.memory_space<vmem>>, vector<128x128xbf16>
    %cst_7 = arith.constant dense<0.000000e+00> : vector<128x128xf32>
    %12 = tpu.matmul %10, %11, %cst_7 {dimension_numbers = #tpu.dot_dimension_numbers<[1], [0], [0], [1], [0, 0, 1, 1], [], []>} : vector<128x128xbf16>, vector<128x128xbf16>, vector<128x128xf32> -> vector<128x128xf32>
    %13 = arith.truncf %12 : vector<128x128xf32> to vector<128x128xbf16>
    %c0_8 = arith.constant 0 : index
    %c0_9 = arith.constant 0 : index
    %14 = vector.load %arg5[%c0_8, %c0_9] : memref<128x128xbf16, #tpu.memory_space<vmem>>, vector<128x128xbf16>
    tpu.vector_store %arg5[%c0_8, %c0_9], %13 {strides = array<i32>} : memref<128x128xbf16, #tpu.memory_space<vmem>>, vector<128x128xbf16>,
    %cst_10 = arith.constant dense<0.000000e+00> : vector<128xf32>
    %15 = vector.multi_reduction <add>, %12, %cst_10 [0] : vector<128x128xf32> to vector<128xf32>
    %16 = vector.shape_cast %15 : vector<128xf32> to vector<1x1x128xf32>
    %c0_11 = arith.constant 0 : index
    %c0_12 = arith.constant 0 : index
    %c0_13 = arith.constant 0 : index
    %17 = vector.load %arg6[%c0_11, %c0_12, %c0_13] : memref<1x1x128xf32, #tpu.memory_space<vmem>>, vector<1x1x128xf32>
    tpu.vector_store %arg6[%c0_11, %c0_12, %c0_13], %16 {strides = array<i32>} : memref<1x1x128xf32, #tpu.memory_space<vmem>>, vector<1x1x128xf32>,
    %18 = arith.mulf %12, %12 : vector<128x128xf32>
    %cst_14 = arith.constant dense<0.000000e+00> : vector<128xf32>
    %19 = vector.multi_reduction <add>, %18, %cst_14 [0] : vector<128x128xf32> to vector<128xf32>
    %20 = vector.shape_cast %19 : vector<128xf32> to vector<1x1x128xf32>
    %c0_15 = arith.constant 0 : index
    %c0_16 = arith.constant 0 : index
    %c0_17 = arith.constant 0 : index
    %21 = vector.load %arg7[%c0_15, %c0_16, %c0_17] : memref<1x1x128xf32, #tpu.memory_space<vmem>>, vector<1x1x128xf32>
    tpu.vector_store %arg7[%c0_15, %c0_16, %c0_17], %20 {strides = array<i32>} : memref<1x1x128xf32, #tpu.memory_space<vmem>>, vector<1x1x128xf32>,
    return
  }
  func.func @transform_0(%arg0: i32) -> (i32, i32) {
    %c0_i32 = arith.constant 0 : i32
    %c0_i32_0 = arith.constant 0 : i32
    return %arg0, %c0_i32 : i32, i32
  }
  func.func @transform_1(%arg0: i32) -> (i32, i32) {
    %c0_i32 = arith.constant 0 : i32
    %c0_i32_0 = arith.constant 0 : i32
    %c0_i32_1 = arith.constant 0 : i32
    return %c0_i32, %c0_i32_0 : i32, i32
  }
  func.func @transform_2(%arg0: i32) -> (i32, i32) {
    %c0_i32 = arith.constant 0 : i32
    %c0_i32_0 = arith.constant 0 : i32
    %c0_i32_1 = arith.constant 0 : i32
    return %c0_i32, %c0_i32_0 : i32, i32
  }
  func.func @transform_3(%arg0: i32) -> (i32, i32) {
    %c0_i32 = arith.constant 0 : i32
    %c0_i32_0 = arith.constant 0 : i32
    %c0_i32_1 = arith.constant 0 : i32
    return %c0_i32, %c0_i32_0 : i32, i32
  }
  func.func @transform_4(%arg0: i32) -> (i32, i32) {
    %c0_i32 = arith.constant 0 : i32
    %c0_i32_0 = arith.constant 0 : i32
    return %arg0, %c0_i32 : i32, i32
  }
  func.func @transform_5(%arg0: i32) -> (i32, i32, i32) {
    %c0_i32 = arith.constant 0 : i32
    %c0_i32_0 = arith.constant 0 : i32
    %c0_i32_1 = arith.constant 0 : i32
    return %arg0, %c0_i32, %c0_i32_0 : i32, i32, i32
  }
  func.func @transform_6(%arg0: i32) -> (i32, i32, i32) {
    %c0_i32 = arith.constant 0 : i32
    %c0_i32_0 = arith.constant 0 : i32
    %c0_i32_1 = arith.constant 0 : i32
    return %arg0, %c0_i32, %c0_i32_0 : i32, i32, i32
  }
}

module attributes {stable_mosaic.version = 11 : i64} {
  func.func @_bn_add_relu_kernel(%arg0: i32, %arg1: memref<128x128xbf16, #tpu.memory_space<vmem>>, %arg2: memref<128x128xbf16, #tpu.memory_space<vmem>>, %arg3: memref<1x128xf32, #tpu.memory_space<vmem>>, %arg4: memref<1x128xf32, #tpu.memory_space<vmem>>, %arg5: memref<128x32xf32, #tpu.memory_space<vmem>>) attributes {dimension_semantics = [#tpu.dimension_semantics<parallel>], iteration_bounds = array<i64: 4>, scalar_prefetch = 0 : i64, scratch_operands = 0 : i64, tpu.core_type = #tpu.core_type<tc>, window_params = [{transform_indices = @transform_0, window_bounds = array<i64: 128, 128>}, {transform_indices = @transform_1, window_bounds = array<i64: 128, 128>}, {pipeline_mode = #tpu.pipeline_mode<synchronous>, transform_indices = @transform_2, window_bounds = array<i64: 1, 128>}, {pipeline_mode = #tpu.pipeline_mode<synchronous>, transform_indices = @transform_3, window_bounds = array<i64: 1, 128>}, {transform_indices = @transform_4, window_bounds = array<i64: 128, 32>}]} {
    %c0 = arith.constant 0 : index
    %c0_0 = arith.constant 0 : index
    %0 = vector.load %arg1[%c0, %c0_0] : memref<128x128xbf16, #tpu.memory_space<vmem>>, vector<128x128xbf16>
    %1 = arith.extf %0 : vector<128x128xbf16> to vector<128x128xf32>
    %c0_1 = arith.constant 0 : index
    %c0_2 = arith.constant 0 : index
    %2 = vector.load %arg3[%c0_1, %c0_2] : memref<1x128xf32, #tpu.memory_space<vmem>>, vector<1x128xf32>
    %3 = vector.broadcast %2 : vector<1x128xf32> to vector<128x128xf32>
    %4 = arith.mulf %1, %3 : vector<128x128xf32>
    %c0_3 = arith.constant 0 : index
    %c0_4 = arith.constant 0 : index
    %5 = vector.load %arg4[%c0_3, %c0_4] : memref<1x128xf32, #tpu.memory_space<vmem>>, vector<1x128xf32>
    %6 = vector.broadcast %5 : vector<1x128xf32> to vector<128x128xf32>
    %7 = arith.addf %4, %6 : vector<128x128xf32>
    %c0_5 = arith.constant 0 : index
    %c0_6 = arith.constant 0 : index
    %8 = vector.load %arg2[%c0_5, %c0_6] : memref<128x128xbf16, #tpu.memory_space<vmem>>, vector<128x128xbf16>
    %9 = arith.extf %8 : vector<128x128xbf16> to vector<128x128xf32>
    %10 = arith.addf %7, %9 : vector<128x128xf32>
    %cst = arith.constant 0.000000e+00 : f32
    %11 = vector.broadcast %cst : f32 to vector<128x128xf32>
    %12 = arith.maximumf %10, %11 : vector<128x128xf32>
    %13 = vector.extract_strided_slice %12 {offsets = [0, 0], sizes = [128, 32], strides = [1, 1]} : vector<128x128xf32> to vector<128x32xf32>
    %c0_7 = arith.constant 0 : index
    %c0_8 = arith.constant 0 : index
    %14 = vector.load %arg5[%c0_7, %c0_8] : memref<128x32xf32, #tpu.memory_space<vmem>>, vector<128x32xf32>
    tpu.vector_store %arg5[%c0_7, %c0_8], %13 {strides = array<i32>} : memref<128x32xf32, #tpu.memory_space<vmem>>, vector<128x32xf32>,
    return
  }
  func.func @transform_0(%arg0: i32) -> (i32, i32) {
    %c0_i32 = arith.constant 0 : i32
    %c0_i32_0 = arith.constant 0 : i32
    return %arg0, %c0_i32 : i32, i32
  }
  func.func @transform_1(%arg0: i32) -> (i32, i32) {
    %c0_i32 = arith.constant 0 : i32
    %c0_i32_0 = arith.constant 0 : i32
    return %arg0, %c0_i32 : i32, i32
  }
  func.func @transform_2(%arg0: i32) -> (i32, i32) {
    %c0_i32 = arith.constant 0 : i32
    %c0_i32_0 = arith.constant 0 : i32
    %c0_i32_1 = arith.constant 0 : i32
    return %c0_i32, %c0_i32_0 : i32, i32
  }
  func.func @transform_3(%arg0: i32) -> (i32, i32) {
    %c0_i32 = arith.constant 0 : i32
    %c0_i32_0 = arith.constant 0 : i32
    %c0_i32_1 = arith.constant 0 : i32
    return %c0_i32, %c0_i32_0 : i32, i32
  }
  func.func @transform_4(%arg0: i32) -> (i32, i32) {
    %c0_i32 = arith.constant 0 : i32
    %c0_i32_0 = arith.constant 0 : i32
    return %arg0, %c0_i32 : i32, i32
  }
}

</mosaic_0001>

<bundles_post_ra>
// kernel: bottleneck_forward.7
= control target key start
LH: loop header
LB: loop body
LE: loop exit
PB: predicated region body
PF: predicated region fallthrough
CT: control target
= control target key end

     0   :  { %9 = vsyncpa [#allocation3], 0  ;;  %s902_s0 = inlined_call_operand.vmem [shape: bf16[512,128], index: 0, kind: input, shape index: {}]   ;;  %s903_s1 = inlined_call_operand.vmem [shape: bf16[512,128], index: 1, kind: input, shape index: {}]   ;;  %s904_s2 = inlined_call_operand.vmem [shape: f32[1,128], index: 2, kind: input, shape index: {}]   ;;  %s905_s3 = inlined_call_operand.vmem [shape: f32[1,128], index: 3, kind: input, shape index: {}]   ;;  %s906_s4 = inlined_call_operand.hbm [shape: f32[512,32], index: 4, kind: output, shape index: {}]  }
   0x1   :  { %11 = vsyncpa [#allocation3 + $0x1], 0  ;;  %s696_s15 = smov 0   ;;  %s698_s16 = smov 0  }
   0x2   :  { %s700_s17 = smov 0   ;;  %s702_s18 = smov 0  }
   0x3 LB: > { %s717_s19 = sadd.s32 4294967295, %s666_s18   ;;  %s468_s20 = sadd.s32 4294967294, %s666_s18   ;;  %s666_s18 = sphi %s702_s18, %s912_s18   ;;  %s662_s17 = sphi %s700_s17, %s911_s17   ;;  %s658_s16 = sphi %s698_s16, %s910_s16   ;;  %s654_s15 = sphi %s696_s15, %s909_s15  }
   0x4   : > { %s721_s21 = sadd.s32 1, %s666_s18   ;;  %s118_s22 = sadd.s32 1, %s662_s17 }
   0x5   : > { %s115_s23 = ssub.s32 %s666_s18, %s721_s21  ;;  %p128_p0 = scmp.ne.s32.totalorder %s662_s17, %s658_s16 }
   0x6   : > { %p116_p1 = scmp.eq.s32.totalorder %s115_s23, 0  ;;  %p129_p2 = scmp.eq.s32.totalorder %s717_s19, 3 }
   0x7   : > { %p134_p3 = scmp.ne.s32.totalorder %s658_s16, %s654_s15  ;;  %p135_p4 = scmp.eq.s32.totalorder %s468_s20, 3 }
   0x8   : > { %s732_s24 = scalar_select %p116_p1, %s662_s17, %s118_s22  }
   0x9   : > { %p734_p5 = por %p129_p2, %p128_p0  ;;  %p738_p6 = por %p135_p4, %p134_p3 }
   0xa   : > { %p471_p7 = scmp.ge.s32.totalorder %s666_s18, 1  ;;  %p177_p8 = scmp.lt.s32.totalorder %s666_s18, 5 }
   0xc   : > { %p178_p9 = pnand %p471_p7, %p177_p8 }
   0xd   : > { %s473_s27 = sshll.u32 (!%p178_p9), %s717_s19, 4  ;;  %v758_v0 = vld [vmem:[%s904_s2] ss:$0 sm:$0xff] (!%p178_p9)  ;;  %vm363_vm0 = vcmask (!%p178_p9), 261120   ;;  %s205_s11 = sand.u32 (!%p178_p9), 1, %s658_s16  }
   0xe   : > { %181 = sbr.rel (%p178_p9) target bundleno = 70 (0x46), region = 36  ;;  %p209_p10 = scmp.lt.s32.totalorder (!%p178_p9), %s473_s27, 63  ;;  %v770_v11 = vld [vmem:[%s905_s3] ss:$0 sm:$0xff] (!%p178_p9) }
   0xf   : > { %s472_s14 = sshll.u32 (!%p178_p9), %s205_s11, 7  ;;  %s484_s22 = sshll.u32 (!%p178_p9), %s717_s19, 11 }
  0x10   : > { %s794_s20 = scalar_lea.vmem (!%p178_p9), [#allocation2], %s472_s14  ;;  %s853_s29 = scalar_lea.hbm (!%p178_p9), %s906_s4, %s484_s22 }
  0x11   : > { %s394_s23 = sshll.u32 (!%p178_p9), %s794_s20, 4  ;;  %s861_s19 = scalar_lea.sflag (!%p178_p9), [#allocation3], %s205_s11  ;;  %s855_s23 = int_to_ptr.vmem [resolvable:$true] %s394_s23 }
  0x12   : > { %s604_s30 = scalar_lea.vmem (!%p178_p9), %s855_s23, 2048 }
  0x13   : > { %p605_p11 = scmp.ne.s32.totalorder (!%p178_p9), %s855_s23, %s604_s30 }
  0x15   : > { %s914_s27 = smov (!%p209_p10, %s473_s27), 63  ;;  %p606_p12 = pnand %p605_p11, %p734_p5 }
  0x16   : > { %s474_s28 = sshll.u32 %s914_s27, 2 }
  0x17   : > { %s748_s5 = scalar_lea.vmem %s902_s0, %s474_s28  ;;  %s753_s8 = scalar_lea.vmem %s903_s1, %s474_s28 }
  0x18   : > { %v486_v1 = vld [vmem:[%s748_s5] sm:$0xff]   ;;  %v549_v3 = vld [vmem:[%s748_s5 + $0x8] sm:$0xff]   ;;  %v550_v9 = vld [vmem:[%s748_s5 + $0x10] sm:$0xff]   ;;  %p607_p13 = pneg %p606_p12 }
  0x19   : > { %v518_v2 = vld [vmem:[%s753_s8] sm:$0xff]   ;;  %v487_v4 = vunpack.c.l.bf16 %v486_v1  ;;  %v488_v6 = vunpack.c.h.bf16 %v486_v1  ;;  %v556_v8 = vld [vmem:[%s753_s8 + $0x8] sm:$0xff]   ;;  %v557_v10 = vld [vmem:[%s753_s8 + $0x10] sm:$0xff]   ;;  %v491_v12 = vunpack.c.l.bf16 %v549_v3  ;;  %v492_v14 = vunpack.c.h.bf16 %v549_v3 }
  0x1a   : > { %v519_v5 = vunpack.c.l.bf16 %v518_v2  ;;  %v520_v7 = vunpack.c.h.bf16 %v518_v2  ;;  %v523_v13 = vunpack.c.l.bf16 %v556_v8  ;;  %v524_v15 = vunpack.c.h.bf16 %v556_v8  ;;  %v551_v16 = vld [vmem:[%s748_s5 + $0x18] sm:$0xff]   ;;  %v552_v42 = vld [vmem:[%s748_s5 + $0x20] sm:$0xff]   ;;  %v553_v52 = vld [vmem:[%s748_s5 + $0x28] sm:$0xff]  }
  0x1b   : > { %v260_v17 = vmul.f32 %v487_v4, %v758_v0  ;;  %v261_v18 = vmul.f32 %v488_v6, %v758_v0  ;;  %v495_v19 = vunpack.c.l.bf16 %v550_v9  ;;  %v527_v20 = vunpack.c.l.bf16 %v557_v10  ;;  %v558_v21 = vld [vmem:[%s753_s8 + $0x18] sm:$0xff]   ;;  %v559_v47 = vld [vmem:[%s753_s8 + $0x20] sm:$0xff]   ;;  %v560_v57 = vld [vmem:[%s753_s8 + $0x28] sm:$0xff]  }
  0x1c   : > { %v262_v22 = vmul.f32 %v491_v12, %v758_v0  ;;  %v263_v23 = vmul.f32 %v492_v14, %v758_v0  ;;  %v496_v24 = vunpack.c.h.bf16 %v550_v9  ;;  %v528_v25 = vunpack.c.h.bf16 %v557_v10  ;;  %v554_v62 = vld [vmem:[%s748_s5 + $0x30] sm:$0xff]   ;;  %v555_v14 = vld [vmem:[%s748_s5 + $0x38] sm:$0xff]   ;;  %s668_s5 = smov [#allocation2]  }
  0x1d   : > { %v283_v26 = vadd.f32 %v770_v11, %v260_v17  ;;  %v284_v27 = vadd.f32 %v770_v11, %v261_v18  ;;  %v264_v28 = vmul.f32 %v495_v19, %v758_v0  ;;  %v499_v29 = vunpack.c.l.bf16 %v551_v16  ;;  %v561_v4 = vld [vmem:[%s753_s8 + $0x30] sm:$0xff]   ;;  %s608_s6 = sshll.u32 %s668_s5, 4  ;;  %s609_s6 = int_to_ptr.vmem [resolvable:$false] %s608_s6 }
  0x1e   : > { %v285_v30 = vadd.f32 %v770_v11, %v262_v22  ;;  %v286_v31 = vadd.f32 %v770_v11, %v263_v23  ;;  %v265_v32 = vmul.f32 %v496_v24, %v758_v0  ;;  %v531_v33 = vunpack.c.l.bf16 %v558_v21  ;;  %v562_v23 = vld [vmem:[%s753_s8 + $0x38] sm:$0xff]   ;;  %s610_s7 = scalar_lea.vmem %s609_s6, 4096  ;;  %p611_p0 = scmp.lt.s32.totalorder %s855_s23, %s609_s6 }
  0x1f   : > { %v331_v34 = vadd.f32 %v519_v5, %v283_v26  ;;  %v332_v35 = vadd.f32 %v520_v7, %v284_v27  ;;  %v287_v36 = vadd.f32 %v770_v11, %v264_v28  ;;  %v266_v37 = vmul.f32 %v499_v29, %v758_v0  ;;  %p612_p1 = scmp.lt.s32.totalorder %s610_s7, %s604_s30 }
  0x20   : > { %v333_v38 = vadd.f32 %v523_v13, %v285_v30  ;;  %v334_v39 = vadd.f32 %v524_v15, %v286_v31  ;;  %v288_v40 = vadd.f32 %v770_v11, %v265_v32  ;;  %v500_v41 = vunpack.c.h.bf16 %v551_v16 }
  0x21   : > { %v347_v43 = vmax.f32 %v331_v34, 0.0  ;;  %v348_v44 = vmax.f32 %v332_v35, 0.0  ;;  %v335_v45 = vadd.f32 %v527_v20, %v287_v36  ;;  %v289_v46 = vadd.f32 %v770_v11, %v266_v37  ;;  %p613_p2 = por %p612_p1, %p611_p0 }
  0x22   : > { %v349_v48 = vmax.f32 %v333_v38, 0.0  ;;  %v350_v49 = vmax.f32 %v334_v39, 0.0  ;;  %v336_v50 = vadd.f32 %v528_v25, %v288_v40  ;;  %v267_v51 = vmul.f32 %v500_v41, %v758_v0 }
  0x23   : > { %364 = vst.msk [vmem:[%s794_s20] sm:$0xff] %vm363_vm0, %v347_v43  ;;  %365 = vst.msk [vmem:[%s794_s20 + $0x8] sm:$0xff] %vm363_vm0, %v348_v44  ;;  %v351_v53 = vmax.f32 %v335_v45, 0.0  ;;  %v337_v54 = vadd.f32 %v531_v33, %v289_v46  ;;  %v532_v55 = vunpack.c.h.bf16 %v558_v21  ;;  %v503_v56 = vunpack.c.l.bf16 %v552_v42  ;;  %p614_p3 = pnand %p613_p2, %p607_p13 }
  0x24   : > { %366 = vst.msk [vmem:[%s794_s20 + $0x10] sm:$0xff] %vm363_vm0, %v349_v48  ;;  %367 = vst.msk [vmem:[%s794_s20 + $0x18] sm:$0xff] %vm363_vm0, %v350_v49  ;;  %v352_v58 = vmax.f32 %v336_v50, 0.0  ;;  %v290_v59 = vadd.f32 %v770_v11, %v267_v51  ;;  %v535_v60 = vunpack.c.l.bf16 %v559_v47  ;;  %v504_v61 = vunpack.c.h.bf16 %v552_v42 }
  0x25   : > { %368 = vst.msk [vmem:[%s794_s20 + $0x20] sm:$0xff] %vm363_vm0, %v351_v53  ;;  %v353_v63 = vmax.f32 %v337_v54, 0.0  ;;  %v268_v1 = vmul.f32 %v503_v56, %v758_v0  ;;  %v536_v2 = vunpack.c.h.bf16 %v559_v47  ;;  %v507_v3 = vunpack.c.l.bf16 %v553_v52 }
  0x26   : > { %369 = vst.msk [vmem:[%s794_s20 + $0x28] sm:$0xff] %vm363_vm0, %v352_v58  ;;  %v338_v5 = vadd.f32 %v532_v55, %v290_v59  ;;  %v269_v6 = vmul.f32 %v504_v61, %v758_v0  ;;  %v539_v7 = vunpack.c.l.bf16 %v560_v57  ;;  %v508_v8 = vunpack.c.h.bf16 %v553_v52 }
  0x27   : > { %370 = vst.msk [vmem:[%s794_s20 + $0x30] sm:$0xff] %vm363_vm0, %v353_v63  ;;  %v291_v9 = vadd.f32 %v770_v11, %v268_v1  ;;  %v270_v10 = vmul.f32 %v507_v3, %v758_v0  ;;  %v540_v12 = vunpack.c.h.bf16 %v560_v57  ;;  %v511_v13 = vunpack.c.l.bf16 %v554_v62 }
  0x28   : > { %v354_v15 = vmax.f32 %v338_v5, 0.0  ;;  %v292_v16 = vadd.f32 %v770_v11, %v269_v6  ;;  %v271_v17 = vmul.f32 %v508_v8, %v758_v0  ;;  %v543_v18 = vunpack.c.l.bf16 %v561_v4 }
  0x29   : > { %v339_v19 = vadd.f32 %v535_v60, %v291_v9  ;;  %v293_v20 = vadd.f32 %v770_v11, %v270_v10  ;;  %v272_v21 = vmul.f32 %v511_v13, %v758_v0  ;;  %v512_v22 = vunpack.c.h.bf16 %v554_v62 }
  0x2a   : > { %371 = vst.msk [vmem:[%s794_s20 + $0x38] sm:$0xff] %vm363_vm0, %v354_v15  ;;  %v340_v24 = vadd.f32 %v536_v2, %v292_v16  ;;  %v294_v25 = vadd.f32 %v770_v11, %v271_v17  ;;  %v544_v26 = vunpack.c.h.bf16 %v561_v4  ;;  %v515_v27 = vunpack.c.l.bf16 %v555_v14 }
  0x2b   : > { %v355_v28 = vmax.f32 %v339_v19, 0.0  ;;  %v341_v29 = vadd.f32 %v539_v7, %v293_v20  ;;  %v295_v30 = vadd.f32 %v770_v11, %v272_v21  ;;  %v273_v31 = vmul.f32 %v512_v22, %v758_v0 }
  0x2c   : > { %v356_v32 = vmax.f32 %v340_v24, 0.0  ;;  %v342_v33 = vadd.f32 %v540_v12, %v294_v25  ;;  %v274_v34 = vmul.f32 %v515_v27, %v758_v0  ;;  %v547_v35 = vunpack.c.l.bf16 %v562_v23 }
  0x2d   : > { %372 = vst.msk [vmem:[%s794_s20 + $0x40] sm:$0xff] %vm363_vm0, %v355_v28  ;;  %v357_v36 = vmax.f32 %v341_v29, 0.0  ;;  %v343_v37 = vadd.f32 %v543_v18, %v295_v30  ;;  %v296_v38 = vadd.f32 %v770_v11, %v273_v31  ;;  %v516_v39 = vunpack.c.h.bf16 %v555_v14 }
  0x2e   : > { %373 = vst.msk [vmem:[%s794_s20 + $0x48] sm:$0xff] %vm363_vm0, %v356_v32  ;;  %v358_v40 = vmax.f32 %v342_v33, 0.0  ;;  %v297_v41 = vadd.f32 %v770_v11, %v274_v34  ;;  %v548_v45 = vunpack.c.h.bf16 %v562_v23 }
  0x2f   : > { %374 = vst.msk [vmem:[%s794_s20 + $0x50] sm:$0xff] %vm363_vm0, %v357_v36  ;;  %v359_v42 = vmax.f32 %v343_v37, 0.0  ;;  %v344_v43 = vadd.f32 %v544_v26, %v296_v38  ;;  %v275_v44 = vmul.f32 %v516_v39, %v758_v0 }
  0x30   : > { %375 = vst.msk [vmem:[%s794_s20 + $0x58] sm:$0xff] %vm363_vm0, %v358_v40  ;;  %v345_v46 = vadd.f32 %v547_v35, %v297_v41 }
  0x31   : > { %376 = vst.msk [vmem:[%s794_s20 + $0x60] sm:$0xff] %vm363_vm0, %v359_v42  ;;  %v360_v47 = vmax.f32 %v344_v43, 0.0  ;;  %v298_v48 = vadd.f32 %v770_v11, %v275_v44 }
  0x32   : > { %v361_v49 = vmax.f32 %v345_v46, 0.0 }
  0x33   : > { %377 = vst.msk [vmem:[%s794_s20 + $0x68] sm:$0xff] %vm363_vm0, %v360_v47  ;;  %v346_v50 = vadd.f32 %v548_v45, %v298_v48 }
  0x34   : > { %378 = vst.msk [vmem:[%s794_s20 + $0x70] sm:$0xff] %vm363_vm0, %v361_v49 }
  0x35   : > { %v362_v0 = vmax.f32 %v346_v50, 0.0 }
  0x37   : > { %379 = vst.msk [vmem:[%s794_s20 + $0x78] sm:$0xff] %vm363_vm0, %v362_v0 }
  0x38   : > { %617 = shalt.err (!%p614_p3)
}
  0x39   : > { %s618_s8 = scalar_lea.hbm %s853_s29, 2048  ;;  %s622_s11 = scalar_lea.hbm %s906_s4, 8192 }
  0x3a   : > { %p619_p4 = scmp.ne.s32.totalorder %s853_s29, %s618_s8  ;;  %p623_p9 = scmp.lt.u32.totalorder %s853_s29, %s906_s4 }
  0x3b   : > { %p624_p10 = scmp.lt.u32.totalorder %s622_s11, %s618_s8  ;;  %p626_p12 = scmp.lt.u32.totalorder %s618_s8, %s853_s29 }
  0x3c   : > { %p620_p7 = pnand %p619_p4, %p734_p5 }
  0x3d   : > { %p625_p11 = por %p624_p10, %p623_p9 }
  0x3e   : > { %p621_p8 = pneg %p620_p7 }
  0x3f   : > { %p627_p13 = por %p626_p12, %p625_p11 }
  0x41   : > { %p628_p0 = pnand %p627_p13, %p621_p8 }
  0x43   : > { %631 = shalt.err (!%p628_p0)
}
  0x44   : > { %s669_s14 = smov 128   ;;  %s670_s20 = smov 8  }
  0x45   : > { %563 = dma.vmem_to_hbm [thread:$0]  (%p734_p5), %s855_s23, 2048, %s853_s29, %s861_s19, %s669_s14, %s669_s14, %s670_s20  }
  0x46 PF: > { %p569_p1 = scmp.ge.s32.totalorder %s666_s18, 2  ;;  %s409_s22 = sand.u32 1, %s654_s15  }
  0x47   : > { %s410_s27 = scalar_lea.sflag [#allocation3], %s409_s22 }
  0x48   : > { %p566_p2 = pnand %p569_p1, %p738_p6 }
  0x4a   : > { %649 = dma.done.wait (!%p566_p2), %s410_s27, 2048  }
  0x4b   : > { %651 = vsyncadd (!%p566_p2), %s410_s27, 4294965248  ;;  %p14_p3 = scmp.ge.s32.totalorder %s721_s21, 6   ;;  %s909_s15 = smov %s658_s16 }
  0x4c   : > { %s910_s16 = smov %s662_s17  ;;  %s911_s17 = smov %s732_s24 }
  0x4d   : > { %s912_s18 = smov %s721_s21  ;;  %16 = sbr.rel (!%p14_p3) target bundleno = 3 (0x3), region = 74 }
  0x54   :  { %415 = vsyncpa [#allocation3], 1 }
  0x55   :  { %417 = vsyncpa [#allocation3 + $0x1], 1 }

// kernel: bottleneck_forward.6
= control target key start
LH: loop header
LB: loop body
LE: loop exit
PB: predicated region body
PF: predicated region fallthrough
CT: control target
= control target key end

     0   :  { %s1044_s21 = smov 0   ;;  %s1165_s0 = inlined_call_operand.vmem [shape: bf16[512,128], index: 0, kind: input, shape index: {}]   ;;  %s1166_s1 = inlined_call_operand.vmem [shape: f32[1,128], index: 1, kind: input, shape index: {}]   ;;  %s1167_s2 = inlined_call_operand.vmem [shape: f32[1,128], index: 2, kind: input, shape index: {}]   ;;  %s1168_s3 = inlined_call_operand.vmem [shape: bf16[128,128], index: 3, kind: input, shape index: {}]   ;;  %s1169_s4 = inlined_call_operand.vmem [shape: bf16[512,128], index: 4, kind: output, shape index: {0}]   ;;  %s1170_s5 = inlined_call_operand.vmem [shape: f32[4,1,128], index: 5, kind: output, shape index: {1}]   ;;  %s1171_s6 = inlined_call_operand.vmem [shape: f32[4,1,128], index: 6, kind: output, shape index: {2}]  }
   0x1 LB: > { %s1050_s22 = sadd.s32 4294967295, %s1007_s21   ;;  %p786_p0 = scmp.ge.s32.totalorder %s1007_s21, 1  ;;  %s1007_s21 = sphi %s1044_s21, %s17_s21  }
   0x2   : > { %p218_p1 = scmp.lt.s32.totalorder %s1007_s21, 5 }
   0x4   : > { %p219_p2 = pnand %p786_p0, %p218_p1 }
   0x5   : > { %v993_v0 = vld [vmem:[%s1168_s3] sm:$0xff] (!%p219_p2)   ;;  %s787_s25 = sshll.u32 (!%p219_p2), %s1050_s22, 4  ;;  %v994_v1 = vld [vmem:[%s1168_s3 + $0x8] sm:$0xff] (!%p219_p2)   ;;  %v995_v2 = vld [vmem:[%s1168_s3 + $0x10] sm:$0xff] (!%p219_p2)   ;;  %p266_p4 = scmp.lt.s32.totalorder (!%p219_p2), %s1050_s22, 3 }
   0x6   : > { %222 = sbr.rel (%p219_p2) target bundleno = 299 (0x12b), region = 36  ;;  %p255_p3 = scmp.lt.s32.totalorder (!%p219_p2), %s787_s25, 63  ;;  %937 = vmatprep.subr.bf16.mxu0 (!%p219_p2), %v993_v0  ;;  %969 = vmatprep.subr.bf16.mxu1 (!%p219_p2), %v993_v0  ;;  %v996_v3 = vld [vmem:[%s1168_s3 + $0x18] sm:$0xff] (!%p219_p2)   ;;  %v1081_v5 = vld [vmem:[%s1166_s1] ss:$0 sm:$0xff] (!%p219_p2)  ;;  %v998_v28 = vld [vmem:[%s1168_s3 + $0x28] sm:$0xff] (!%p219_p2)  }
   0x7   : > { %938 = vmatpush3.bf16.msra.mxu0 (!%p219_p2), %v993_v0  ;;  %977 = vmatpush3.bf16.msra.mxu1 (!%p219_p2), %v993_v0  ;;  %v1088_v10 = vld [vmem:[%s1167_s2] ss:$0 sm:$0xff] (!%p219_p2)  ;;  %v999_v44 = vld [vmem:[%s1168_s3 + $0x30] sm:$0xff] (!%p219_p2)   ;;  %v1000_v61 = vld [vmem:[%s1168_s3 + $0x38] sm:$0xff] (!%p219_p2)  }
   0x8   : > { %939 = vmatprep.subr.bf16.mxu0 (!%p219_p2), %v994_v1  ;;  %970 = vmatprep.subr.bf16.mxu1 (!%p219_p2), %v994_v1  ;;  %v997_v16 = vld [vmem:[%s1168_s3 + $0x20] sm:$0xff] (!%p219_p2)  }
   0xb   : > { %940 = vmatpush3.bf16.msra.mxu0 (!%p219_p2), %v994_v1  ;;  %978 = vmatpush3.bf16.msra.mxu1 (!%p219_p2), %v994_v1 }
   0xc   : > { %941 = vmatprep.subr.bf16.mxu0 (!%p219_p2), %v995_v2  ;;  %971 = vmatprep.subr.bf16.mxu1 (!%p219_p2), %v995_v2 }
   0xd   : > { %s1173_s25 = smov (!%p255_p3, %s787_s25), 63  ;;  %s1175_s22 = smov (!%p266_p4, %s1050_s22), 3 }
   0xe   : > { %s788_s30 = sshll.u32 %s1173_s25, 2  ;;  %s268_s7 = scalar_lea.vmem %s1170_s5, %s1175_s22 }
   0xf   : > { %s1072_s9 = scalar_lea.vmem %s1165_s0, %s788_s30  ;;  %942 = vmatpush3.bf16.msra.mxu0 %v995_v2  ;;  %979 = vmatpush3.bf16.msra.mxu1 %v995_v2  ;;  %s1144_s29 = scalar_lea.vmem %s1169_s4, %s788_s30 }
  0x10   : > { %v836_v4 = vld [vmem:[%s1072_s9] sm:$0xff]   ;;  %v907_v8 = vld [vmem:[%s1072_s9 + $0x8] sm:$0xff]   ;;  %v908_v9 = vld [vmem:[%s1072_s9 + $0x10] sm:$0xff]   ;;  %943 = vmatprep.subr.bf16.mxu0 %v996_v3  ;;  %972 = vmatprep.subr.bf16.mxu1 %v996_v3  ;;  %s271_s10 = scalar_lea.vmem %s1171_s6, %s1175_s22 }
  0x11   : > { %v837_v6 = vunpack.c.l.bf16 %v836_v4  ;;  %v838_v7 = vunpack.c.h.bf16 %v836_v4  ;;  %v841_v11 = vunpack.c.l.bf16 %v907_v8  ;;  %v842_v14 = vunpack.c.h.bf16 %v907_v8  ;;  %v910_v15 = vld [vmem:[%s1072_s9 + $0x20] sm:$0xff]   ;;  %v909_v22 = vld [vmem:[%s1072_s9 + $0x18] sm:$0xff]   ;;  %v911_v27 = vld [vmem:[%s1072_s9 + $0x28] sm:$0xff]  }
  0x12   : > { %v845_v17 = vunpack.c.l.bf16 %v908_v9  ;;  %v846_v21 = vunpack.c.h.bf16 %v908_v9  ;;  %v853_v23 = vunpack.c.l.bf16 %v910_v15  ;;  %v912_v30 = vld [vmem:[%s1072_s9 + $0x30] sm:$0xff]   ;;  %v849_v32 = vunpack.c.l.bf16 %v909_v22  ;;  %v913_v39 = vld [vmem:[%s1072_s9 + $0x38] sm:$0xff]  }
  0x13   : > { %v312_v12 = vmul.f32 %v837_v6, %v1081_v5  ;;  %v313_v13 = vmul.f32 %v838_v7, %v1081_v5  ;;  %v314_v20 = vmul.f32 %v841_v11, %v1081_v5  ;;  %944 = vmatpush3.bf16.msra.mxu0 %v996_v3  ;;  %980 = vmatpush3.bf16.msra.mxu1 %v996_v3  ;;  %v850_v33 = vunpack.c.h.bf16 %v909_v22 }
  0x14   : > { %v315_v26 = vmul.f32 %v842_v14, %v1081_v5  ;;  %945 = vmatprep.subr.bf16.mxu0 %v997_v16  ;;  %973 = vmatprep.subr.bf16.mxu1 %v997_v16  ;;  %v316_v29 = vmul.f32 %v845_v17, %v1081_v5  ;;  %v854_v34 = vunpack.c.h.bf16 %v910_v15  ;;  %v317_v36 = vmul.f32 %v846_v21, %v1081_v5 }
  0x15   : > { %v335_v18 = vadd.f32 %v1088_v10, %v312_v12  ;;  %v336_v19 = vadd.f32 %v1088_v10, %v313_v13  ;;  %v337_v35 = vadd.f32 %v1088_v10, %v314_v20  ;;  %v320_v37 = vmul.f32 %v853_v23, %v1081_v5 }
  0x16   : > { %v857_v38 = vunpack.c.l.bf16 %v911_v27  ;;  %v338_v40 = vadd.f32 %v1088_v10, %v315_v26  ;;  %v321_v41 = vmul.f32 %v854_v34, %v1081_v5  ;;  %v858_v42 = vunpack.c.h.bf16 %v911_v27 }
  0x17   : > { %v351_v24 = vmax.f32 %v335_v18, 0.0  ;;  %v352_v25 = vmax.f32 %v336_v19, 0.0  ;;  %946 = vmatpush3.bf16.msra.mxu0 %v997_v16  ;;  %981 = vmatpush3.bf16.msra.mxu1 %v997_v16  ;;  %v861_v43 = vunpack.c.l.bf16 %v912_v30  ;;  %v339_v45 = vadd.f32 %v1088_v10, %v316_v29 }
  0x18   : > { %947 = vmatprep.subr.bf16.mxu0 %v998_v28  ;;  %v343_v46 = vadd.f32 %v1088_v10, %v320_v37  ;;  %v322_v47 = vmul.f32 %v857_v38, %v1081_v5  ;;  %v862_v48 = vunpack.c.h.bf16 %v912_v30  ;;  %974 = vmatprep.subr.bf16.mxu1 %v998_v28  ;;  %v344_v49 = vadd.f32 %v1088_v10, %v321_v41 }
  0x19   : > { %v367_v31 = vpack.c.bf16 %v352_v25, %v351_v24  ;;  %v323_v50 = vmul.f32 %v858_v42, %v1081_v5  ;;  %v324_v51 = vmul.f32 %v861_v43, %v1081_v5  ;;  %v865_v52 = vunpack.c.l.bf16 %v913_v39 }
  0x1a   : > { %v359_v53 = vmax.f32 %v343_v46, 0.0  ;;  %v345_v54 = vadd.f32 %v1088_v10, %v322_v47  ;;  %v325_v55 = vmul.f32 %v862_v48, %v1081_v5  ;;  %v866_v56 = vunpack.c.h.bf16 %v913_v39 }
  0x1b   : > { %953 = vmatprep.mubr.bf16.mxu0 %v367_v31  ;;  %948 = vmatpush3.bf16.msra.mxu0 %v998_v28  ;;  %v340_v57 = vadd.f32 %v1088_v10, %v317_v36  ;;  %v360_v58 = vmax.f32 %v344_v49, 0.0  ;;  %v346_v59 = vadd.f32 %v1088_v10, %v323_v50  ;;  %v347_v60 = vadd.f32 %v1088_v10, %v324_v51 }
  0x1c   : > { %982 = vmatpush3.bf16.msra.mxu1 %v998_v28  ;;  %949 = vmatprep.subr.bf16.mxu0 %v999_v44  ;;  %v318_v62 = vmul.f32 %v849_v32, %v1081_v5  ;;  %v348_v63 = vadd.f32 %v1088_v10, %v325_v55  ;;  %v353_v0 = vmax.f32 %v337_v35, 0.0  ;;  %v354_v1 = vmax.f32 %v338_v40, 0.0 }
  0x1d   : > { %975 = vmatprep.subr.bf16.mxu1 %v999_v44  ;;  %v319_v2 = vmul.f32 %v850_v33, %v1081_v5  ;;  %v371_v3 = vpack.c.bf16 %v360_v58, %v359_v53  ;;  %v361_v4 = vmax.f32 %v345_v54, 0.0  ;;  %v362_v6 = vmax.f32 %v346_v59, 0.0 }
  0x1e   : > { %v326_v7 = vmul.f32 %v865_v52, %v1081_v5  ;;  %v327_v8 = vmul.f32 %v866_v56, %v1081_v5  ;;  %v355_v9 = vmax.f32 %v339_v45, 0.0  ;;  %v356_v11 = vmax.f32 %v340_v57, 0.0 }
  0x1f   : > { %950 = vmatpush3.bf16.msra.mxu0 %v999_v44  ;;  %v363_v12 = vmax.f32 %v347_v60, 0.0  ;;  %v364_v13 = vmax.f32 %v348_v63, 0.0  ;;  %v341_v14 = vadd.f32 %v1088_v10, %v318_v62  ;;  %v342_v15 = vadd.f32 %v1088_v10, %v319_v2  ;;  %961 = vmatprep.mubr.bf16.mxu1 %v371_v3 }
  0x20   : > { %983 = vmatpush3.bf16.msra.mxu1 %v999_v44  ;;  %951 = vmatprep.subr.bf16.mxu0 %v1000_v61  ;;  %v368_v16 = vpack.c.bf16 %v354_v1, %v353_v0  ;;  %v372_v17 = vpack.c.bf16 %v362_v6, %v361_v4  ;;  %v349_v18 = vadd.f32 %v1088_v10, %v326_v7 }
  0x21   : > { %976 = vmatprep.subr.bf16.mxu1 %v1000_v61  ;;  %v350_v19 = vadd.f32 %v1088_v10, %v327_v8  ;;  %v369_v5 = vpack.c.bf16 %v356_v11, %v355_v9  ;;  %v373_v20 = vpack.c.bf16 %v364_v13, %v363_v12  ;;  %v357_v21 = vmax.f32 %v341_v14, 0.0 }
  0x22   : > { %v358_v22 = vmax.f32 %v342_v15, 0.0  ;;  %v365_v23 = vmax.f32 %v349_v18, 0.0 }
  0x23   : > { %952 = vmatpush3.bf16.msra.mxu0 %v1000_v61  ;;  %v366_v24 = vmax.f32 %v350_v19, 0.0 }
  0x24   : > { %984 = vmatpush3.bf16.msra.mxu1 %v1000_v61  ;;  %v370_v25 = vpack.c.bf16 %v358_v22, %v357_v21 }
  0x25   : > { %v374_v26 = vpack.c.bf16 %v366_v24, %v365_v23 }
  0x26   : > { %954 = vmatmul.mubr.bf16.vlgmr.msra.gmra.mrb[0].mxu0 %v368_v16 }
  0x27   : > { %962 = vmatmul.mubr.bf16.vlgmr.msra.gmra.mrb[0].mxu1 %v372_v17  ;;  %957 = vmatprep.mubr.bf16.mxu0 %v369_v5 }
  0x28   : > { %965 = vmatprep.mubr.bf16.mxu1 %v373_v20 }
  0x2e   : > { %958 = vmatmul.mubr.bf16.gmra.mrb[4].mxu0 %v370_v25 }
  0x2f   : > { %966 = vmatmul.mubr.bf16.gmra.mrb[4].mxu1 %v374_v26 }
  0xf9   : > { %v955_v27 = vpop.f32.mrb[0].mxu0 }
  0xfa   : > { %v963_v28 = vpop.f32.mrb[0].mxu1  ;;  %v473_v10 = vpop.f32.mrb[1].mxu0  ;;  %v640_v41 = vmul.f32 %v955_v27, %v955_v27 }
  0xfb   : > { %v505_v29 = vpop.f32.mrb[1].mxu1  ;;  %v956_v30 = vpop.f32.mrb[2].mxu0  ;;  %v638_v32 = vmul.f32 %v473_v10, %v473_v10  ;;  %v648_v15 = vmul.f32 %v963_v28, %v963_v28 }
  0xfc   : > { %v964_v31 = vpop.f32.mrb[2].mxu1  ;;  %v875_v33 = vpack.c.bf16 %v956_v30, %v955_v27  ;;  %v476_v34 = vpop.f32.mrb[3].mxu0  ;;  %v641_v44 = vmul.f32 %v956_v30, %v956_v30  ;;  %v646_v8 = vmul.f32 %v505_v29, %v505_v29 }
  0xfd   : > { %v895_v35 = vpack.c.bf16 %v964_v31, %v963_v28  ;;  %v508_v36 = vpop.f32.mrb[3].mxu1  ;;  %v870_v37 = vpack.c.bf16 %v476_v34, %v473_v10  ;;  %v616_v38 = vadd.f32 %v476_v34, %v473_v10  ;;  %v639_v39 = vmul.f32 %v476_v34, %v476_v34 }
  0xfe   : > { %v890_v40 = vpack.c.bf16 %v508_v36, %v505_v29  ;;  %914 = vst [vmem:[%s1144_s29 + $0x8] sm:$0xff] %v875_v33   ;;  %v647_v14 = vmul.f32 %v508_v36, %v508_v36  ;;  %v649_v18 = vmul.f32 %v964_v31, %v964_v31 }
  0xff   : > { %918 = vst [vmem:[%s1144_s29 + $0x28] sm:$0xff] %v895_v35   ;;  %871 = vst [vmem:[%s1144_s29] sm:$0xff] %v870_v37   ;;  %v617_v42 = vadd.f32 %v955_v27, %v616_v38  ;;  %v654_v43 = vadd.f32 %v639_v39, %v638_v32 }
 0x100   : > { %917 = vst [vmem:[%s1144_s29 + $0x20] sm:$0xff] %v890_v40  }
 0x101   : > { %v655_v45 = vadd.f32 %v654_v43, %v640_v41  ;;  %v959_v46 = vpop.f32.mrb[4].mxu0  ;;  %v618_v47 = vadd.f32 %v956_v30, %v617_v42 }
 0x102   : > { %v967_v48 = vpop.f32.mrb[4].mxu1  ;;  %v489_v49 = vpop.f32.mrb[5].mxu0  ;;  %v644_v1 = vmul.f32 %v959_v46, %v959_v46 }
 0x103   : > { %v521_v50 = vpop.f32.mrb[5].mxu1  ;;  %v619_v51 = vadd.f32 %v618_v47, %v489_v49  ;;  %v642_v52 = vmul.f32 %v489_v49, %v489_v49  ;;  %v656_v53 = vadd.f32 %v655_v45, %v641_v44  ;;  %v960_v54 = vpop.f32.mrb[6].mxu0  ;;  %v652_v26 = vmul.f32 %v967_v48, %v967_v48 }
 0x104   : > { %v968_v55 = vpop.f32.mrb[6].mxu1  ;;  %v885_v56 = vpack.c.bf16 %v960_v54, %v959_v46  ;;  %v492_v57 = vpop.f32.mrb[7].mxu0  ;;  %v645_v4 = vmul.f32 %v960_v54, %v960_v54  ;;  %v650_v20 = vmul.f32 %v521_v50, %v521_v50 }
 0x105   : > { %v905_v58 = vpack.c.bf16 %v968_v55, %v967_v48  ;;  %v524_v59 = vpop.f32.mrb[7].mxu1  ;;  %v657_v60 = vadd.f32 %v656_v53, %v642_v52  ;;  %v880_v61 = vpack.c.bf16 %v492_v57, %v489_v49  ;;  %v620_v62 = vadd.f32 %v619_v51, %v492_v57 }
 0x106   : > { %v643_v63 = vmul.f32 %v492_v57, %v492_v57  ;;  %916 = vst [vmem:[%s1144_s29 + $0x18] sm:$0xff] %v885_v56   ;;  %v900_v0 = vpack.c.bf16 %v524_v59, %v521_v50  ;;  %v651_v25 = vmul.f32 %v524_v59, %v524_v59 }
 0x107   : > { %920 = vst [vmem:[%s1144_s29 + $0x38] sm:$0xff] %v905_v58   ;;  %915 = vst [vmem:[%s1144_s29 + $0x10] sm:$0xff] %v880_v61   ;;  %v621_v2 = vadd.f32 %v959_v46, %v620_v62 }
 0x108   : > { %v658_v3 = vadd.f32 %v657_v60, %v643_v63  ;;  %919 = vst [vmem:[%s1144_s29 + $0x30] sm:$0xff] %v900_v0  }
 0x109   : > { %v622_v7 = vadd.f32 %v960_v54, %v621_v2 }
 0x10a   : > { %v659_v6 = vadd.f32 %v658_v3, %v644_v1 }
 0x10b   : > { %v623_v9 = vadd.f32 %v622_v7, %v505_v29  ;;  %v653_v29 = vmul.f32 %v968_v55, %v968_v55 }
 0x10c   : > { %v660_v11 = vadd.f32 %v659_v6, %v645_v4 }
 0x10d   : > { %v624_v13 = vadd.f32 %v623_v9, %v508_v36 }
 0x10e   : > { %v661_v12 = vadd.f32 %v660_v11, %v646_v8 }
 0x10f   : > { %v625_v16 = vadd.f32 %v963_v28, %v624_v13 }
 0x110   : > { %v662_v17 = vadd.f32 %v661_v12, %v647_v14 }
 0x111   : > { %v626_v5 = vadd.f32 %v964_v31, %v625_v16 }
 0x112   : > { %v663_v19 = vadd.f32 %v662_v17, %v648_v15 }
 0x113   : > { %v627_v21 = vadd.f32 %v626_v5, %v521_v50 }
 0x114   : > { %v664_v22 = vadd.f32 %v663_v19, %v649_v18 }
 0x115   : > { %v628_v24 = vadd.f32 %v627_v21, %v524_v59 }
 0x116   : > { %v665_v23 = vadd.f32 %v664_v22, %v650_v20 }
 0x117   : > { %v629_v27 = vadd.f32 %v967_v48, %v628_v24 }
 0x118   : > { %v666_v10 = vadd.f32 %v665_v23, %v651_v25 }
 0x119   : > { %v630_v30 = vadd.f32 %v968_v55, %v629_v27 }
 0x11a   : > { %v667_v32 = vadd.f32 %v666_v10, %v652_v26 }
 0x11b   : > { %v631_v33 = vrot.slane %v630_v30, 4 }
 0x11c   : > { %v668_v28 = vadd.f32 %v667_v32, %v653_v29 }
 0x11d   : > { %v632_v34 = vadd.f32 %v631_v33, %v630_v30 }
 0x11e   : > { %v669_v35 = vrot.slane %v668_v28, 4 }
 0x11f   : > { %v633_v36 = vrot.slane %v632_v34, 2 }
 0x120   : > { %v670_v31 = vadd.f32 %v669_v35, %v668_v28 }
 0x121   : > { %v634_v37 = vadd.f32 %v633_v36, %v632_v34 }
 0x122   : > { %v671_v38 = vrot.slane %v670_v31, 2 }
 0x123   : > { %v635_v39 = vrot.slane %v634_v37, 1 }
 0x124   : > { %v672_v40 = vadd.f32 %v671_v38, %v670_v31 }
 0x125   : > { %v636_v41 = vadd.f32 %v635_v39, %v634_v37 }
 0x126   : > { %v673_v42 = vrot.slane %v672_v40, 1 }
 0x127   : > { %637 = vst [vmem:[%s268_s7] sm:$0x1] %v636_v41 }
 0x128   : > { %v674_v43 = vadd.f32 %v673_v42, %v672_v40 }
 0x12a   : > { %675 = vst [vmem:[%s271_s10] sm:$0x1] %v674_v43 }
 0x12b PF: > { %s17_s21 = sadd.s32 1, %s1007_s21  }
 0x12c   : > { %p14_p5 = scmp.ge.s32.totalorder %s17_s21, 6  }
 0x12e   :  { %16 = sbr.rel (!%p14_p5) target bundleno = 1 (0x1), region = 90 }

// kernel: bottleneck_forward.4
= control target key start
LH: loop header
LB: loop body
LE: loop exit
PB: predicated region body
PF: predicated region fallthrough
CT: control target
= control target key end

     0   :  { %s917_s15 = smov 0   ;;  %s996_s0 = inlined_call_operand.vmem [shape: bf16[512,128], index: 0, kind: input, shape index: {}]   ;;  %s997_s1 = inlined_call_operand.vmem [shape: bf16[128,128], index: 1, kind: input, shape index: {}]   ;;  %s998_s2 = inlined_call_operand.vmem [shape: bf16[512,128], index: 2, kind: output, shape index: {0}]   ;;  %s999_s3 = inlined_call_operand.vmem [shape: f32[4,1,128], index: 3, kind: output, shape index: {1}]   ;;  %s1000_s4 = inlined_call_operand.vmem [shape: f32[4,1,128], index: 4, kind: output, shape index: {2}]  }
   0x1 LB: > { %s923_s16 = sadd.s32 4294967295, %s890_s15   ;;  %p694_p0 = scmp.ge.s32.totalorder %s890_s15, 1  ;;  %s890_s15 = sphi %s917_s15, %s15_s15  }
   0x2   : > { %p168_p1 = scmp.lt.s32.totalorder %s890_s15, 5 }
   0x4   : > { %p169_p2 = pnand %p694_p0, %p168_p1 }
   0x5   : > { %v868_v0 = vld [vmem:[%s997_s1] sm:$0xff] (!%p169_p2)   ;;  %s695_s19 = sshll.u32 (!%p169_p2), %s923_s16, 4  ;;  %v869_v1 = vld [vmem:[%s997_s1 + $0x8] sm:$0xff] (!%p169_p2)   ;;  %v870_v2 = vld [vmem:[%s997_s1 + $0x10] sm:$0xff] (!%p169_p2)   ;;  %p212_p4 = scmp.lt.s32.totalorder (!%p169_p2), %s923_s16, 3 }
   0x6   : > { %172 = sbr.rel (%p169_p2) target bundleno = 298 (0x12a), region = 28  ;;  %p201_p3 = scmp.lt.s32.totalorder (!%p169_p2), %s695_s19, 63  ;;  %812 = vmatprep.subr.bf16.mxu0 (!%p169_p2), %v868_v0  ;;  %844 = vmatprep.subr.bf16.mxu1 (!%p169_p2), %v868_v0  ;;  %v871_v3 = vld [vmem:[%s997_s1 + $0x18] sm:$0xff] (!%p169_p2)   ;;  %v872_v5 = vld [vmem:[%s997_s1 + $0x20] sm:$0xff] (!%p169_p2)   ;;  %v873_v7 = vld [vmem:[%s997_s1 + $0x28] sm:$0xff] (!%p169_p2)  }
   0x7   : > { %813 = vmatpush3.bf16.msra.mxu0 (!%p169_p2), %v868_v0  ;;  %852 = vmatpush3.bf16.msra.mxu1 (!%p169_p2), %v868_v0  ;;  %v874_v8 = vld [vmem:[%s997_s1 + $0x30] sm:$0xff] (!%p169_p2)   ;;  %v875_v9 = vld [vmem:[%s997_s1 + $0x38] sm:$0xff] (!%p169_p2)  }
   0x8   : > { %814 = vmatprep.subr.bf16.mxu0 (!%p169_p2), %v869_v1  ;;  %845 = vmatprep.subr.bf16.mxu1 (!%p169_p2), %v869_v1 }
   0xb   : > { %815 = vmatpush3.bf16.msra.mxu0 (!%p169_p2), %v869_v1  ;;  %853 = vmatpush3.bf16.msra.mxu1 (!%p169_p2), %v869_v1 }
   0xc   : > { %816 = vmatprep.subr.bf16.mxu0 (!%p169_p2), %v870_v2  ;;  %846 = vmatprep.subr.bf16.mxu1 (!%p169_p2), %v870_v2 }
   0xd   : > { %s1002_s19 = smov (!%p201_p3, %s695_s19), 63  ;;  %s1004_s16 = smov (!%p212_p4, %s923_s16), 3 }
   0xe   : > { %s696_s24 = sshll.u32 %s1002_s19, 2  ;;  %s214_s19 = scalar_lea.vmem %s999_s3, %s1004_s16 }
   0xf   : > { %s945_s27 = scalar_lea.vmem %s996_s0, %s696_s24  ;;  %817 = vmatpush3.bf16.msra.mxu0 %v870_v2  ;;  %854 = vmatpush3.bf16.msra.mxu1 %v870_v2  ;;  %s975_s14 = scalar_lea.vmem %s998_s2, %s696_s24 }
  0x10   : > { %v876_v4 = vld [vmem:[%s945_s27] sm:$0xff]   ;;  %818 = vmatprep.subr.bf16.mxu0 %v871_v3  ;;  %847 = vmatprep.subr.bf16.mxu1 %v871_v3  ;;  %v877_v10 = vld [vmem:[%s945_s27 + $0x8] sm:$0xff]   ;;  %v878_v12 = vld [vmem:[%s945_s27 + $0x10] sm:$0xff]   ;;  %s217_s22 = scalar_lea.vmem %s1000_s4, %s1004_s16 }
  0x11   : > { %828 = vmatprep.mubr.bf16.mxu0 %v876_v4  ;;  %v880_v6 = vld [vmem:[%s945_s27 + $0x20] sm:$0xff]   ;;  %v881_v11 = vld [vmem:[%s945_s27 + $0x28] sm:$0xff]   ;;  %v882_v13 = vld [vmem:[%s945_s27 + $0x30] sm:$0xff]  }
  0x12   : > { %836 = vmatprep.mubr.bf16.mxu1 %v880_v6  ;;  %v879_v14 = vld [vmem:[%s945_s27 + $0x18] sm:$0xff]  }
  0x13   : > { %819 = vmatpush3.bf16.msra.mxu0 %v871_v3  ;;  %855 = vmatpush3.bf16.msra.mxu1 %v871_v3  ;;  %v883_v15 = vld [vmem:[%s945_s27 + $0x38] sm:$0xff]  }
  0x14   : > { %820 = vmatprep.subr.bf16.mxu0 %v872_v5  ;;  %848 = vmatprep.subr.bf16.mxu1 %v872_v5 }
  0x17   : > { %821 = vmatpush3.bf16.msra.mxu0 %v872_v5  ;;  %856 = vmatpush3.bf16.msra.mxu1 %v872_v5 }
  0x18   : > { %822 = vmatprep.subr.bf16.mxu0 %v873_v7  ;;  %849 = vmatprep.subr.bf16.mxu1 %v873_v7 }
  0x1b   : > { %823 = vmatpush3.bf16.msra.mxu0 %v873_v7  ;;  %857 = vmatpush3.bf16.msra.mxu1 %v873_v7 }
  0x1c   : > { %824 = vmatprep.subr.bf16.mxu0 %v874_v8  ;;  %850 = vmatprep.subr.bf16.mxu1 %v874_v8 }
  0x1f   : > { %825 = vmatpush3.bf16.msra.mxu0 %v874_v8  ;;  %858 = vmatpush3.bf16.msra.mxu1 %v874_v8 }
  0x20   : > { %826 = vmatprep.subr.bf16.mxu0 %v875_v9  ;;  %851 = vmatprep.subr.bf16.mxu1 %v875_v9 }
  0x23   : > { %827 = vmatpush3.bf16.msra.mxu0 %v875_v9  ;;  %859 = vmatpush3.bf16.msra.mxu1 %v875_v9 }
  0x26   : > { %829 = vmatmul.mubr.bf16.vlgmr.msra.gmra.mrb[0].mxu0 %v877_v10  ;;  %837 = vmatmul.mubr.bf16.vlgmr.msra.gmra.mrb[0].mxu1 %v881_v11 }
  0x27   : > { %832 = vmatprep.mubr.bf16.mxu0 %v878_v12  ;;  %840 = vmatprep.mubr.bf16.mxu1 %v882_v13 }
  0x2e   : > { %833 = vmatmul.mubr.bf16.gmra.mrb[4].mxu0 %v879_v14  ;;  %841 = vmatmul.mubr.bf16.gmra.mrb[4].mxu1 %v883_v15 }
  0xf9   : > { %v830_v16 = vpop.f32.mrb[0].mxu0  ;;  %v838_v17 = vpop.f32.mrb[0].mxu1 }
  0xfa   : > { %v381_v18 = vpop.f32.mrb[1].mxu0  ;;  %v413_v19 = vpop.f32.mrb[1].mxu1  ;;  %v548_v31 = vmul.f32 %v830_v16, %v830_v16  ;;  %v556_v3 = vmul.f32 %v838_v17, %v838_v17 }
  0xfb   : > { %v831_v20 = vpop.f32.mrb[2].mxu0  ;;  %v839_v21 = vpop.f32.mrb[2].mxu1  ;;  %v546_v22 = vmul.f32 %v381_v18, %v381_v18  ;;  %v554_v61 = vmul.f32 %v413_v19, %v413_v19 }
  0xfc   : > { %v757_v23 = vpack.c.bf16 %v831_v20, %v830_v16  ;;  %v384_v24 = vpop.f32.mrb[3].mxu0  ;;  %v777_v25 = vpack.c.bf16 %v839_v21, %v838_v17  ;;  %v416_v26 = vpop.f32.mrb[3].mxu1  ;;  %v549_v34 = vmul.f32 %v831_v20, %v831_v20  ;;  %v557_v6 = vmul.f32 %v839_v21, %v839_v21 }
  0xfd   : > { %v752_v27 = vpack.c.bf16 %v384_v24, %v381_v18  ;;  %v524_v28 = vadd.f32 %v384_v24, %v381_v18  ;;  %v547_v29 = vmul.f32 %v384_v24, %v384_v24  ;;  %v772_v30 = vpack.c.bf16 %v416_v26, %v413_v19 }
  0xfe   : > { %789 = vst [vmem:[%s975_s14 + $0x8] sm:$0xff] %v757_v23   ;;  %793 = vst [vmem:[%s975_s14 + $0x28] sm:$0xff] %v777_v25   ;;  %v555_v2 = vmul.f32 %v416_v26, %v416_v26 }
  0xff   : > { %753 = vst [vmem:[%s975_s14] sm:$0xff] %v752_v27   ;;  %v525_v32 = vadd.f32 %v830_v16, %v524_v28  ;;  %v562_v33 = vadd.f32 %v547_v29, %v546_v22  ;;  %792 = vst [vmem:[%s975_s14 + $0x20] sm:$0xff] %v772_v30  }
 0x101   : > { %v563_v35 = vadd.f32 %v562_v33, %v548_v31  ;;  %v834_v36 = vpop.f32.mrb[4].mxu0  ;;  %v526_v37 = vadd.f32 %v831_v20, %v525_v32  ;;  %v842_v38 = vpop.f32.mrb[4].mxu1 }
 0x102   : > { %v397_v39 = vpop.f32.mrb[5].mxu0  ;;  %v429_v40 = vpop.f32.mrb[5].mxu1  ;;  %v552_v55 = vmul.f32 %v834_v36, %v834_v36  ;;  %v560_v15 = vmul.f32 %v842_v38, %v842_v38 }
 0x103   : > { %v527_v41 = vadd.f32 %v526_v37, %v397_v39  ;;  %v550_v42 = vmul.f32 %v397_v39, %v397_v39  ;;  %v564_v43 = vadd.f32 %v563_v35, %v549_v34  ;;  %v835_v44 = vpop.f32.mrb[6].mxu0  ;;  %v843_v45 = vpop.f32.mrb[6].mxu1  ;;  %v558_v9 = vmul.f32 %v429_v40, %v429_v40 }
 0x104   : > { %v767_v46 = vpack.c.bf16 %v835_v44, %v834_v36  ;;  %v400_v47 = vpop.f32.mrb[7].mxu0  ;;  %v787_v48 = vpack.c.bf16 %v843_v45, %v842_v38  ;;  %v432_v49 = vpop.f32.mrb[7].mxu1  ;;  %v553_v58 = vmul.f32 %v835_v44, %v835_v44 }
 0x105   : > { %v565_v50 = vadd.f32 %v564_v43, %v550_v42  ;;  %v762_v51 = vpack.c.bf16 %v400_v47, %v397_v39  ;;  %v528_v52 = vadd.f32 %v527_v41, %v400_v47  ;;  %v551_v53 = vmul.f32 %v400_v47, %v400_v47 }
 0x106   : > { %791 = vst [vmem:[%s975_s14 + $0x18] sm:$0xff] %v767_v46   ;;  %795 = vst [vmem:[%s975_s14 + $0x38] sm:$0xff] %v787_v48   ;;  %v782_v54 = vpack.c.bf16 %v432_v49, %v429_v40  ;;  %v559_v14 = vmul.f32 %v432_v49, %v432_v49 }
 0x107   : > { %790 = vst [vmem:[%s975_s14 + $0x10] sm:$0xff] %v762_v51   ;;  %v529_v56 = vadd.f32 %v834_v36, %v528_v52  ;;  %v566_v57 = vadd.f32 %v565_v50, %v551_v53 }
 0x108   : > { %794 = vst [vmem:[%s975_s14 + $0x30] sm:$0xff] %v782_v54  }
 0x109   : > { %v567_v59 = vadd.f32 %v566_v57, %v552_v55  ;;  %v530_v60 = vadd.f32 %v835_v44, %v529_v56 }
 0x10b   : > { %v531_v62 = vadd.f32 %v530_v60, %v413_v19  ;;  %v568_v63 = vadd.f32 %v567_v59, %v553_v58  ;;  %v561_v19 = vmul.f32 %v843_v45, %v843_v45 }
 0x10d   : > { %v569_v0 = vadd.f32 %v568_v63, %v554_v61  ;;  %v532_v1 = vadd.f32 %v531_v62, %v416_v26 }
 0x10f   : > { %v533_v4 = vadd.f32 %v838_v17, %v532_v1  ;;  %v570_v5 = vadd.f32 %v569_v0, %v555_v2 }
 0x111   : > { %v571_v7 = vadd.f32 %v570_v5, %v556_v3  ;;  %v534_v8 = vadd.f32 %v839_v21, %v533_v4 }
 0x113   : > { %v535_v10 = vadd.f32 %v534_v8, %v429_v40  ;;  %v572_v11 = vadd.f32 %v571_v7, %v557_v6 }
 0x115   : > { %v573_v12 = vadd.f32 %v572_v11, %v558_v9  ;;  %v536_v13 = vadd.f32 %v535_v10, %v432_v49 }
 0x117   : > { %v537_v16 = vadd.f32 %v842_v38, %v536_v13  ;;  %v574_v18 = vadd.f32 %v573_v12, %v559_v14 }
 0x119   : > { %v538_v20 = vadd.f32 %v843_v45, %v537_v16  ;;  %v575_v22 = vadd.f32 %v574_v18, %v560_v15 }
 0x11b   : > { %v539_v23 = vrot.slane %v538_v20, 4  ;;  %v576_v17 = vadd.f32 %v575_v22, %v561_v19 }
 0x11d   : > { %v540_v24 = vadd.f32 %v539_v23, %v538_v20  ;;  %v577_v25 = vrot.slane %v576_v17, 4 }
 0x11f   : > { %v541_v26 = vrot.slane %v540_v24, 2  ;;  %v578_v21 = vadd.f32 %v577_v25, %v576_v17 }
 0x121   : > { %v542_v27 = vadd.f32 %v541_v26, %v540_v24  ;;  %v579_v28 = vrot.slane %v578_v21, 2 }
 0x123   : > { %v543_v29 = vrot.slane %v542_v27, 1  ;;  %v580_v30 = vadd.f32 %v579_v28, %v578_v21 }
 0x125   : > { %v544_v31 = vadd.f32 %v543_v29, %v542_v27  ;;  %v581_v32 = vrot.slane %v580_v30, 1 }
 0x127   : > { %545 = vst [vmem:[%s214_s19] sm:$0x1] %v544_v31  ;;  %v582_v33 = vadd.f32 %v581_v32, %v580_v30 }
 0x129   : > { %583 = vst [vmem:[%s217_s22] sm:$0x1] %v582_v33 }
 0x12a PF: > { %s15_s15 = sadd.s32 1, %s890_s15  }
 0x12b   : > { %p12_p5 = scmp.ge.s32.totalorder %s15_s15, 6  }
 0x12d   :  { %14 = sbr.rel (!%p12_p5) target bundleno = 1 (0x1), region = 82 }

// kernel: bottleneck_forward.5
= control target key start
LH: loop header
LB: loop body
LE: loop exit
PB: predicated region body
PF: predicated region fallthrough
CT: control target
= control target key end

     0   :  { %s5422_s27 = smov 0   ;;  %s5424_s28 = smov 0   ;;  %s6621_s0 = inlined_call_operand.vmem [shape: bf16[2,16,16,128], index: 0, kind: input, shape index: {}, may-alias: {0,1,2}]   ;;  %s6622_s1 = inlined_call_operand.vmem [shape: bf16[2,16,16,128], index: 1, kind: input, shape index: {}, may-alias: {0,1,2}]   ;;  %s6623_s2 = inlined_call_operand.vmem [shape: bf16[2,16,16,128], index: 2, kind: input, shape index: {}, may-alias: {0,1,2}]   ;;  %s6624_s3 = inlined_call_operand.vmem [shape: f32[1,128], index: 3, kind: input, shape index: {}]   ;;  %s6625_s4 = inlined_call_operand.vmem [shape: f32[1,128], index: 4, kind: input, shape index: {}]   ;;  %s6626_s5 = inlined_call_operand.vmem [shape: bf16[1152,128], index: 5, kind: input, shape index: {}]   ;;  %s6627_s6 = inlined_call_operand.vmem [shape: bf16[2,16,16,128], index: 6, kind: output, shape index: {0}]   ;;  %s6628_s7 = inlined_call_operand.vmem [shape: f32[2,2,1,128], index: 7, kind: output, shape index: {1}]   ;;  %s6629_s8 = inlined_call_operand.vmem [shape: f32[2,2,1,128], index: 8, kind: output, shape index: {2}]  }
   0x1   :  { %s5426_s29 = smov 0   ;;  %s5428_s30 = smov 0  }
   0x2   :  { %s5430_s9 = smov 0  }
   0x3 LB: > { %s28_s10 = sadd.s32 1, %s5366_s29  ;;  %s31_s11 = sadd.s32 1, %s5370_s30  ;;  %s5374_s9 = sphi %s5430_s9, %s19_s9   ;;  %s5370_s30 = sphi %s5428_s30, %s6653_s30   ;;  %s5366_s29 = sphi %s5426_s29, %s6652_s29   ;;  %s5362_s28 = sphi %s5424_s28, %s6651_s28   ;;  %s5358_s27 = sphi %s5422_s27, %s6650_s27  }
   0x4   : > { %p29_p0 = scmp.ge.s32.totalorder %s28_s10, 2  ;;  %p4245_p1 = scmp.ge.s32.totalorder %s5374_s9, 1 }
   0x5   : > { %p357_p2 = scmp.lt.s32.totalorder %s5374_s9, 5 }
   0x6   : > { %s6655_s10 = smov (%p29_p0, %s28_s10), 0  ;;  %s6657_s11 = smov (!%p29_p0, %s31_s11), %s5370_s30 }
   0x7   : > { %p358_p3 = pnand %p4245_p1, %p357_p2  ;;  %p33_p4 = scmp.ge.s32.totalorder %s6657_s11, 2 }
   0x9   : > { %s6659_s11 = smov (%p33_p4, %s6657_s11), 0  ;;  %361 = sbr.rel (%p358_p3) target bundleno = 561 (0x231), region = 44 }
  0x10   : > { %s5457_s12 = sshll.u32 %s5358_s27, 3  ;;  %p442_p5 = scmp.lt.s32.totalorder %s5362_s28, 1  ;;  %v5376_v0 = vmov 0   ;;  %v5491_v2 = vld [vmem:[%s6624_s3] ss:$0 sm:$0xff]  ;;  %vm848_vm0 = vcmask 1043456  }
  0x11   : > { %515 = vst [vmem:[#allocation2 + $0xc] sm:$0xf] %v5376_v0  ;;  %512 = vst [vmem:[#allocation2] sm:$0xf] %v5376_v0  ;;  %p444_p6 = scmp.lt.s32.totalorder %s5457_s12, 15  ;;  %s4251_s13 = sadd.s32 4294967295, %s5457_s12 }
  0x12   : > { %513 = vst [vmem:[#allocation2 + $0x4] sm:$0xf] %v5376_v0  ;;  %514 = vst [vmem:[#allocation2 + $0x8] sm:$0x1] %v5376_v0  ;;  %s6661_s28 = smov (!%p442_p5, %s5362_s28), 1  ;;  %p454_p7 = scmp.gt.s32.totalorder %s4251_s13, 0 }
  0x13   : > { %516 = vst [vmem:[#allocation2 + $0x10] sm:$0xf] %v5376_v0  ;;  %517 = vst [vmem:[#allocation2 + $0x14] sm:$0x1] %v5376_v0  ;;  %s445_s14 = scalar_select %p444_p6, %s5457_s12, 15  ;;  %vm855_vm4 = vcmask 1040384  }
  0x14   : > { %518 = vst [vmem:[#allocation2 + $0x18] sm:$0xf] %v5376_v0  ;;  %519 = vst [vmem:[#allocation2 + $0x1c] sm:$0xf] %v5376_v0  ;;  %s5469_s15 = sshll.u32 %s6661_s28, 5  ;;  %p4252_p8 = scmp.lt.s32.totalorder %s4251_s13, 15 }
  0x15   : > { %520 = vst [vmem:[#allocation2 + $0x20] sm:$0x1] %v5376_v0  ;;  %521 = vst [vmem:[#allocation2 + $0x24] sm:$0xf] %v5376_v0  ;;  %s4247_s16 = sshll.u32 %s445_s14, 1  ;;  %s470_s18 = sadd.s32 8, %s5457_s12 }
  0x16   : > { %522 = vst [vmem:[#allocation2 + $0x28] sm:$0xf] %v5376_v0  ;;  %523 = vst [vmem:[#allocation2 + $0x2c] sm:$0x1] %v5376_v0  ;;  %s448_s17 = sadd.s32 %s5469_s15, %s4247_s16  ;;  %p5473_p9 = scmp.lt.s32.totalorder %s470_s18, 15 }
  0x17   : > { %524 = vst [vmem:[#allocation2 + $0x30] sm:$0xf] %v5376_v0  ;;  %525 = vst [vmem:[#allocation2 + $0x34] sm:$0xf] %v5376_v0  ;;  %s4249_s19 = sshll.u32 %s448_s17, 2  ;;  %p499_p10 = scmp.lt.s32.totalorder %s5358_s27, 1 }
  0x18   : > { %526 = vst [vmem:[#allocation2 + $0x38] sm:$0x1] %v5376_v0  ;;  %527 = vst [vmem:[#allocation2 + $0x3c] sm:$0xf] %v5376_v0  ;;  %s5480_s23 = scalar_lea.vmem %s6621_s0, %s4249_s19  ;;  %s5485_s26 = scalar_lea.vmem %s6627_s6, %s4249_s19  ;;  %v5499_v5 = vld [vmem:[%s6625_s4] ss:$0 sm:$0xff] }
  0x19   : > { %528 = vst [vmem:[#allocation2 + $0x40] sm:$0xf] %v5376_v0  ;;  %529 = vst [vmem:[#allocation2 + $0x44] sm:$0x1] %v5376_v0  ;;  %s455_s12 = scalar_select %p454_p7, %s4251_s13, 0  ;;  %v4526_v1 = vld [vmem:[%s5480_s23] sm:$0xff]  }
  0x1a   : > { %530 = vst [vmem:[#allocation2 + $0x48] sm:$0xf] %v5376_v0  ;;  %531 = vst [vmem:[#allocation2 + $0x4c] sm:$0xf] %v5376_v0  ;;  %v4605_v3 = vld [vmem:[%s5480_s23 + $0x8] sm:$0xff]   ;;  %s6663_s18 = smov (!%p5473_p9, %s470_s18), 15  ;;  %v4527_v4 = vunpack.c.l.bf16 %v4526_v1  ;;  %v4528_v6 = vunpack.c.h.bf16 %v4526_v1 }
  0x1b   : > { %532 = vst [vmem:[#allocation2 + $0x50] sm:$0x1] %v5376_v0  ;;  %533 = vst [vmem:[#allocation2 + $0x54] sm:$0xf] %v5376_v0  ;;  %vm849_vm1 = vsmask.f32 7938  ;;  %v4531_v7 = vunpack.c.l.bf16 %v4605_v3  ;;  %v4532_v8 = vunpack.c.h.bf16 %v4605_v3 }
  0x1c   : > { %534 = vst [vmem:[#allocation2 + $0x58] sm:$0xf] %v5376_v0  ;;  %535 = vst [vmem:[#allocation2 + $0x5c] sm:$0x1] %v5376_v0  ;;  %v4606_v9 = vld [vmem:[%s5480_s23 + $0x10] sm:$0xff]   ;;  %s6665_s12 = smov (!%p4252_p8, %s455_s12), 15  ;;  %v581_v13 = vmul.f32 %v4527_v4, %v5491_v2  ;;  %v582_v14 = vmul.f32 %v4528_v6, %v5491_v2 }
  0x1d   : > { %536 = vst [vmem:[#allocation2 + $0x60] sm:$0xf] %v5376_v0  ;;  %537 = vst [vmem:[#allocation2 + $0x64] sm:$0xf] %v5376_v0  ;;  %vm684_vm2 = vsmask.f32 256  ;;  %v4535_v10 = vunpack.c.l.bf16 %v4606_v9  ;;  %v4536_v11 = vunpack.c.h.bf16 %v4606_v9  ;;  %v583_v15 = vmul.f32 %v4531_v7, %v5491_v2 }
  0x1e   : > { %538 = vst [vmem:[#allocation2 + $0x68] sm:$0x1] %v5376_v0  ;;  %539 = vst [vmem:[#allocation2 + $0x6c] sm:$0xf] %v5376_v0  ;;  %vm685_vm3 = vsmask.f32 4368  ;;  %v584_v16 = vmul.f32 %v4532_v8, %v5491_v2  ;;  %v604_v21 = vadd.f32 %v5499_v5, %v581_v13  ;;  %v605_v22 = vadd.f32 %v5499_v5, %v582_v14 }
  0x1f   : > { %540 = vst [vmem:[#allocation2 + $0x70] sm:$0xf] %v5376_v0  ;;  %541 = vst [vmem:[#allocation2 + $0x74] sm:$0x1] %v5376_v0  ;;  %v4607_v12 = vld [vmem:[%s5480_s23 + $0x18] sm:$0xff]   ;;  %s6667_s18 = smov (!%p5473_p9, %s6663_s18), 15  ;;  %v585_v17 = vmul.f32 %v4535_v10, %v5491_v2  ;;  %v586_v18 = vmul.f32 %v4536_v11, %v5491_v2  ;;  %v606_v23 = vadd.f32 %v5499_v5, %v583_v15 }
  0x20   : > { %s4257_s13 = sshll.u32 %s6665_s12, 1  ;;  %v4539_v19 = vunpack.c.l.bf16 %v4607_v12  ;;  %v4540_v20 = vunpack.c.h.bf16 %v4607_v12  ;;  %s4264_s20 = sshll.u32 %s6667_s18, 1  ;;  %v607_v24 = vadd.f32 %v5499_v5, %v584_v16  ;;  %v620_v29 = vmax.f32 %v604_v21, 0.0  ;;  %vm5558_vm5 = vmand %vm848_vm0, %vm849_vm1  ;;  %v851_v55 = vld [vmem:[#allocation2 + $0xc] sm:$0xf] }
  0x21   : > { %s462_s19 = sadd.s32 %s4257_s13, %s5469_s15  ;;  %s479_s24 = sadd.s32 %s4264_s20, %s5469_s15  ;;  %v608_v25 = vadd.f32 %v5499_v5, %v585_v17  ;;  %v609_v26 = vadd.f32 %v5499_v5, %v586_v18  ;;  %v621_v30 = vmax.f32 %v605_v22, 0.0  ;;  %v622_v31 = vmax.f32 %v606_v23, 0.0  ;;  %vm5564_vm6 = vmor %vm684_vm2, %vm685_vm3  ;;  %v857_v61 = vld [vmem:[#allocation2 + $0x14] sm:$0x1]  ;;  %v860_v8 = vld [vmem:[#allocation2 + $0x18] sm:$0xf] }
  0x22   : > { %s4259_s22 = sshll.u32 %s462_s19, 2  ;;  %v587_v27 = vmul.f32 %v4539_v19, %v5491_v2  ;;  %v588_v28 = vmul.f32 %v4540_v20, %v5491_v2  ;;  %s5528_s14 = sshll.u32 %s479_s24, 2  ;;  %v623_v32 = vmax.f32 %v607_v24, 0.0  ;;  %v4489_v37 = vpack.c.bf16 %v620_v29, %v620_v29  ;;  %vm5570_vm7 = vmand %vm855_vm4, %vm684_vm2  ;;  %v864_v9 = vld [vmem:[#allocation2 + $0x20] sm:$0x1] }
  0x23   : > { %s5526_s12 = scalar_lea.vmem %s6622_s1, %s4259_s22  ;;  %s481_s17 = scalar_lea.vmem %s6623_s2, %s5528_s14  ;;  %v624_v33 = vmax.f32 %v608_v25, 0.0  ;;  %v625_v34 = vmax.f32 %v609_v26, 0.0  ;;  %v4490_v38 = vpack.c.bf16 %v621_v30, %v621_v30  ;;  %v4491_v39 = vpack.c.bf16 %v622_v31, %v622_v31  ;;  %v4608_v18 = vld [vmem:[%s5480_s23 + $0x20] sm:$0xff]   ;;  %v871_v26 = vld [vmem:[#allocation2 + $0x2c] sm:$0x1] }
  0x24   : > { %s4271_s21 = sshll.u32 %s6661_s28, 1  ;;  %v5536_v35 = vadd.f32 %v5499_v5, %v587_v27  ;;  %v5539_v36 = vadd.f32 %v5499_v5, %v588_v28  ;;  %v4492_v40 = vpack.c.bf16 %v623_v32, %v623_v32  ;;  %v688_v45 = vshrl.u32 %v4489_v37, 16  ;;  %v867_v22 = vld [vmem:[#allocation2 + $0x24] sm:$0xf]  ;;  %p4291_p11 = scmp.le.s32.totalorder %s5358_s27, 0 }
  0x25   : > { %s500_s13 = scalar_select %p499_p10, %s5358_s27, 1  ;;  %v4493_v41 = vpack.c.bf16 %v624_v33, %v624_v33  ;;  %v4494_v42 = vpack.c.bf16 %v625_v34, %v625_v34  ;;  %v691_v46 = vshll.u32 %v4489_v37, 16  ;;  %v696_v47 = vshrl.u32 %v4490_v38, 16  ;;  %v4609_v33 = vld [vmem:[%s5480_s23 + $0x28] sm:$0xff]  }
  0x26   : > { %v626_v43 = vmax.f32 %v5536_v35, 0.0  ;;  %v627_v44 = vmax.f32 %v5539_v36, 0.0  ;;  %v699_v48 = vshll.u32 %v4490_v38, 16  ;;  %v705_v50 = vshrl.u32 %v4491_v39, 16  ;;  %v4610_v38 = vld [vmem:[%s5480_s23 + $0x30] sm:$0xff]  }
  0x27   : > { %s5546_s28 = sadd.s32 %s4271_s21, %s500_s13  ;;  %v708_v51 = vshll.u32 %v4491_v39, 16  ;;  %v713_v52 = vshrl.u32 %v4492_v40, 16  ;;  %v716_v53 = vshll.u32 %v4492_v40, 16  ;;  %v690_v54 = vrot.slane %v688_v45, 7 }
  0x28   : > { %s503_s22 = scalar_lea.vmem %s6628_s7, %s5546_s28  ;;  %s510_s25 = scalar_lea.vmem %s6629_s8, %s5546_s28  ;;  %v698_v57 = vrot.slane %v696_v47, 7  ;;  %v722_v58 = vshrl.u32 %v4493_v41, 16  ;;  %v725_v59 = vshll.u32 %v4493_v41, 16  ;;  %v707_v62 = vrot.slane %v705_v50, 7  ;;  %v874_v47 = vld [vmem:[#allocation2 + $0x30] sm:$0xf] }
  0x29   : > { %v715_v63 = vrot.slane %v713_v52, 7  ;;  %v730_v0 = vshrl.u32 %v4494_v42, 16  ;;  %v733_v1 = vshll.u32 %v4494_v42, 16  ;;  %v693_v3 = vor.u32 %v691_v46, %v690_v54 }
  0x2a   : > { %v694_v4 = vrot.slane %v690_v54, 4  ;;  %v701_v6 = vor.u32 %v699_v48, %v698_v57  ;;  %v703_v7 = vrot.slane %v698_v57, 4  ;;  %v710_v10 = vor.u32 %v708_v51, %v707_v62  ;;  %v878_v48 = vld [vmem:[#allocation2 + $0x38] sm:$0x1] }
  0x2b   : > { %v711_v11 = vrot.slane %v707_v62, 4  ;;  %v718_v12 = vor.u32 %v716_v53, %v715_v63  ;;  %v720_v13 = vrot.slane %v715_v63, 4  ;;  %v852_v14 = vsel %vm5558_vm5, %v693_v3, %v851_v55 }
  0x2c   : > { %v702_v15 = vsel %vm5564_vm6, %v694_v4, %v701_v6  ;;  %v858_v16 = vsel %vm5570_vm7, %v703_v7, %v857_v61  ;;  %v724_v17 = vrot.slane %v722_v58, 7  ;;  %853 = vst [vmem:[#allocation2 + $0xc] sm:$0xf] %v852_v14  ;;  %v861_v19 = vsel %vm5558_vm5, %v710_v10, %v860_v8 }
  0x2d   : > { %854 = vst [vmem:[#allocation2 + $0x10] sm:$0xf] %v702_v15  ;;  %859 = vst [vmem:[#allocation2 + $0x14] sm:$0x1] %v858_v16  ;;  %v719_v20 = vsel %vm5564_vm6, %v711_v11, %v718_v12  ;;  %v865_v21 = vsel %vm5570_vm7, %v720_v13, %v864_v9  ;;  %v732_v23 = vrot.slane %v730_v0, 7  ;;  %v4495_v27 = vpack.c.bf16 %v626_v43, %v626_v43  ;;  %v5602_v0 = vld [vmem:[%s5480_s23 + $0x38] sm:$0xff]  }
  0x2e   : > { %862 = vst [vmem:[#allocation2 + $0x18] sm:$0xf] %v861_v19  ;;  %863 = vst [vmem:[#allocation2 + $0x1c] sm:$0xf] %v719_v20  ;;  %v727_v24 = vor.u32 %v725_v59, %v724_v17  ;;  %v728_v25 = vrot.slane %v724_v17, 4  ;;  %v4496_v28 = vpack.c.bf16 %v627_v44, %v627_v44  ;;  %v4543_v31 = vunpack.c.l.bf16 %v4608_v18 }
  0x2f   : > { %866 = vst [vmem:[#allocation2 + $0x20] sm:$0x1] %v865_v21  ;;  %v735_v29 = vor.u32 %v733_v1, %v732_v23  ;;  %v737_v30 = vrot.slane %v732_v23, 4  ;;  %v4544_v32 = vunpack.c.h.bf16 %v4608_v18  ;;  %v739_v35 = vshrl.u32 %v4495_v27, 16 }
  0x30   : > { %v868_v34 = vsel %vm5558_vm5, %v727_v24, %v867_v22  ;;  %v742_v36 = vshll.u32 %v4495_v27, 16  ;;  %v747_v37 = vshrl.u32 %v4496_v28, 16  ;;  %v750_v41 = vshll.u32 %v4496_v28, 16  ;;  %v881_v27 = vld [vmem:[#allocation2 + $0x3c] sm:$0xf] }
  0x31   : > { %869 = vst [vmem:[#allocation2 + $0x24] sm:$0xf] %v868_v34  ;;  %v736_v39 = vsel %vm5564_vm6, %v728_v25, %v735_v29  ;;  %v872_v40 = vsel %vm5570_vm7, %v737_v30, %v871_v26  ;;  %v589_v42 = vmul.f32 %v4543_v31, %v5491_v2  ;;  %v741_v43 = vrot.slane %v739_v35, 7 }
  0x32   : > { %870 = vst [vmem:[#allocation2 + $0x28] sm:$0xf] %v736_v39  ;;  %873 = vst [vmem:[#allocation2 + $0x2c] sm:$0x1] %v872_v40  ;;  %v749_v44 = vrot.slane %v747_v37, 7  ;;  %v590_v45 = vmul.f32 %v4544_v32, %v5491_v2  ;;  %v4547_v46 = vunpack.c.l.bf16 %v4609_v33  ;;  %v4548_v51 = vunpack.c.h.bf16 %v4609_v33 }
  0x33   : > { %v612_v50 = vadd.f32 %v5499_v5, %v589_v42  ;;  %v4551_v52 = vunpack.c.l.bf16 %v4610_v38  ;;  %v4552_v53 = vunpack.c.h.bf16 %v4610_v38  ;;  %v744_v54 = vor.u32 %v742_v36, %v741_v43  ;;  %v885_v36 = vld [vmem:[#allocation2 + $0x44] sm:$0x1] }
  0x34   : > { %v745_v55 = vrot.slane %v741_v43, 4  ;;  %v752_v57 = vor.u32 %v750_v41, %v749_v44  ;;  %v754_v58 = vrot.slane %v749_v44, 4  ;;  %v613_v61 = vadd.f32 %v5499_v5, %v590_v45  ;;  %v888_v45 = vld [vmem:[#allocation2 + $0x48] sm:$0xf] }
  0x35   : > { %v628_v59 = vmax.f32 %v612_v50, 0.0  ;;  %v591_v62 = vmul.f32 %v4547_v46, %v5491_v2  ;;  %v592_v63 = vmul.f32 %v4548_v51, %v5491_v2  ;;  %v875_v1 = vsel %vm5558_vm5, %v744_v54, %v874_v47 }
  0x36   : > { %v753_v3 = vsel %vm5564_vm6, %v745_v55, %v752_v57  ;;  %v879_v4 = vsel %vm5570_vm7, %v754_v58, %v878_v48  ;;  %v593_v6 = vmul.f32 %v4551_v52, %v5491_v2  ;;  %876 = vst [vmem:[#allocation2 + $0x30] sm:$0xf] %v875_v1  ;;  %v629_v8 = vmax.f32 %v613_v61, 0.0  ;;  %v892_v55 = vld [vmem:[#allocation2 + $0x50] sm:$0x1] }
  0x37   : > { %877 = vst [vmem:[#allocation2 + $0x34] sm:$0xf] %v753_v3  ;;  %880 = vst [vmem:[#allocation2 + $0x38] sm:$0x1] %v879_v4  ;;  %v4497_v7 = vpack.c.bf16 %v628_v59, %v628_v59  ;;  %v614_v9 = vadd.f32 %v5499_v5, %v591_v62  ;;  %v615_v10 = vadd.f32 %v5499_v5, %v592_v63  ;;  %v4555_v13 = vunpack.c.l.bf16 %v5602_v0  ;;  %v895_v57 = vld [vmem:[#allocation2 + $0x54] sm:$0xf] }
  0x38   : > { %v616_v11 = vadd.f32 %v5499_v5, %v593_v6  ;;  %v594_v12 = vmul.f32 %v4552_v53, %v5491_v2  ;;  %v4556_v14 = vunpack.c.h.bf16 %v5602_v0  ;;  %v4498_v17 = vpack.c.bf16 %v629_v8, %v629_v8 }
  0x39   : > { %v756_v15 = vshrl.u32 %v4497_v7, 16  ;;  %v759_v16 = vshll.u32 %v4497_v7, 16  ;;  %v630_v18 = vmax.f32 %v614_v9, 0.0  ;;  %v631_v19 = vmax.f32 %v615_v10, 0.0 }
  0x3a   : > { %v632_v20 = vmax.f32 %v616_v11, 0.0  ;;  %v617_v21 = vadd.f32 %v5499_v5, %v594_v12  ;;  %v595_v22 = vmul.f32 %v4555_v13, %v5491_v2  ;;  %v764_v24 = vshrl.u32 %v4498_v17, 16  ;;  %v899_v11 = vld [vmem:[#allocation2 + $0x5c] sm:$0x1] }
  0x3b   : > { %v758_v23 = vrot.slane %v756_v15, 7  ;;  %v767_v25 = vshll.u32 %v4498_v17, 16  ;;  %v4499_v26 = vpack.c.bf16 %v630_v18, %v630_v18  ;;  %v4500_v28 = vpack.c.bf16 %v631_v19, %v631_v19 }
  0x3c   : > { %v4501_v29 = vpack.c.bf16 %v632_v20, %v632_v20  ;;  %v633_v30 = vmax.f32 %v617_v21, 0.0  ;;  %v618_v31 = vadd.f32 %v5499_v5, %v595_v22  ;;  %v766_v34 = vrot.slane %v764_v24, 7  ;;  %v902_v20 = vld [vmem:[#allocation2 + $0x60] sm:$0xf] }
  0x3d   : > { %v761_v32 = vor.u32 %v759_v16, %v758_v23  ;;  %v762_v33 = vrot.slane %v758_v23, 4  ;;  %v773_v35 = vshrl.u32 %v4499_v26, 16  ;;  %v776_v37 = vshll.u32 %v4499_v26, 16 }
  0x3e   : > { %v781_v38 = vshrl.u32 %v4500_v28, 16  ;;  %v784_v39 = vshll.u32 %v4500_v28, 16  ;;  %v790_v40 = vshrl.u32 %v4501_v29, 16  ;;  %v769_v42 = vor.u32 %v767_v25, %v766_v34 }
  0x3f   : > { %v882_v41 = vsel %vm5558_vm5, %v761_v32, %v881_v27  ;;  %v771_v43 = vrot.slane %v766_v34, 4  ;;  %v775_v44 = vrot.slane %v773_v35, 7  ;;  %v793_v48 = vshll.u32 %v4501_v29, 16  ;;  %v906_v27 = vld [vmem:[#allocation2 + $0x68] sm:$0x1]  ;;  %v4558_v32 = vld [vmem:[%s5526_s12] sm:$0xff] (!%p4291_p11)  }
  0x40   : > { %883 = vst [vmem:[#allocation2 + $0x3c] sm:$0xf] %v882_v41  ;;  %v783_v46 = vrot.slane %v781_v38, 7  ;;  %v792_v47 = vrot.slane %v790_v40, 7  ;;  %v4502_v50 = vpack.c.bf16 %v633_v30, %v633_v30  ;;  %v770_v51 = vsel %vm5564_vm6, %v762_v33, %v769_v42  ;;  %v4292_v33 = vld [vmem:[%s6624_s3] ss:$0 sm:$0xff] (!%p4291_p11) }
  0x41   : > { %v886_v52 = vsel %vm5570_vm7, %v771_v43, %v885_v36  ;;  %v778_v53 = vor.u32 %v776_v37, %v775_v44  ;;  %v779_v54 = vrot.slane %v775_v44, 4  ;;  %884 = vst [vmem:[#allocation2 + $0x40] sm:$0xf] %v770_v51  ;;  %v634_v1 = vmax.f32 %v618_v31, 0.0  ;;  %v4293_v36 = vld [vmem:[%s6625_s4] ss:$0 sm:$0xff] (!%p4291_p11) }
  0x42   : > { %887 = vst [vmem:[#allocation2 + $0x44] sm:$0x1] %v886_v52  ;;  %v786_v58 = vor.u32 %v784_v39, %v783_v46  ;;  %v788_v59 = vrot.slane %v783_v46, 4  ;;  %v795_v61 = vor.u32 %v793_v48, %v792_v47  ;;  %v798_v63 = vshrl.u32 %v4502_v50, 16  ;;  %v963_v52 = vld [vmem:[#allocation2] sm:$0xf] (!%p4291_p11) }
  0x43   : > { %v889_v62 = vsel %vm5558_vm5, %v778_v53, %v888_v45  ;;  %v801_v0 = vshll.u32 %v4502_v50, 16  ;;  %v596_v7 = vmul.f32 %v4556_v14, %v5491_v2  ;;  %v796_v8 = vrot.slane %v792_v47, 4  ;;  %v967_v53 = vld [vmem:[#allocation2 + $0x8] sm:$0x1] (!%p4291_p11) }
  0x44   : > { %890 = vst [vmem:[#allocation2 + $0x48] sm:$0xf] %v889_v62  ;;  %v787_v3 = vsel %vm5564_vm6, %v779_v54, %v786_v58  ;;  %v893_v4 = vsel %vm5570_vm7, %v788_v59, %v892_v55  ;;  %v896_v6 = vsel %vm5558_vm5, %v795_v61, %v895_v57  ;;  %v800_v9 = vrot.slane %v798_v63, 7 }
  0x45   : > { %891 = vst [vmem:[#allocation2 + $0x4c] sm:$0xf] %v787_v3  ;;  %894 = vst [vmem:[#allocation2 + $0x50] sm:$0x1] %v893_v4  ;;  %v4503_v10 = vpack.c.bf16 %v634_v1, %v634_v1  ;;  %v619_v12 = vadd.f32 %v5499_v5, %v596_v7  ;;  %v4559_v34 = vunpack.c.l.bf16 (!%p4291_p11), %v4558_v32  ;;  %v4560_v35 = vunpack.c.h.bf16 (!%p4291_p11), %v4558_v32 }
  0x46   : > { %897 = vst [vmem:[#allocation2 + $0x54] sm:$0xf] %v896_v6  ;;  %v803_v13 = vor.u32 %v801_v0, %v800_v9  ;;  %v805_v15 = vrot.slane %v800_v9, 4 }
  0x47   : > { %v807_v16 = vshrl.u32 %v4503_v10, 16  ;;  %v810_v17 = vshll.u32 %v4503_v10, 16  ;;  %v635_v18 = vmax.f32 %v619_v12, 0.0  ;;  %v924_v37 = vmul.f32 (!%p4291_p11), %v4559_v34, %v4292_v33 }
  0x48   : > { %v804_v19 = vsel %vm5564_vm6, %v796_v8, %v803_v13  ;;  %v900_v2 = vsel %vm5570_vm7, %v805_v15, %v899_v11  ;;  %v925_v38 = vmul.f32 (!%p4291_p11), %v4560_v35, %v4292_v33 }
  0x49   : > { %v809_v14 = vrot.slane %v807_v16, 7  ;;  %898 = vst [vmem:[#allocation2 + $0x58] sm:$0xf] %v804_v19  ;;  %901 = vst [vmem:[#allocation2 + $0x5c] sm:$0x1] %v900_v2  ;;  %v4504_v21 = vpack.c.bf16 %v635_v18, %v635_v18  ;;  %v933_v39 = vadd.f32 (!%p4291_p11), %v4293_v36, %v924_v37 }
  0x4a   : > { %v934_v40 = vadd.f32 (!%p4291_p11), %v4293_v36, %v925_v38 }
  0x4b   : > { %v812_v22 = vor.u32 %v810_v17, %v809_v14  ;;  %v815_v23 = vshrl.u32 %v4504_v21, 16  ;;  %v818_v24 = vshll.u32 %v4504_v21, 16  ;;  %v813_v25 = vrot.slane %v809_v14, 4 }
  0x4c   : > { %912 = sbr.rel (%p4291_p11) target bundleno = 89 (0x59), region = 48  ;;  %v935_v41 = vmax.f32 (!%p4291_p11), %v933_v39, 0.0  ;;  %v936_v42 = vmax.f32 (!%p4291_p11), %v934_v40, 0.0 }
  0x4d   : > { %v903_v5 = vsel %vm5558_vm5, %v812_v22, %v902_v20  ;;  %v817_v26 = vrot.slane %v815_v23, 7 }
  0x4e   : > { %904 = vst [vmem:[#allocation2 + $0x60] sm:$0xf] %v903_v5  ;;  %v4505_v43 = vpack.c.bf16 (!%p4291_p11), %v935_v41, %v935_v41  ;;  %v4506_v44 = vpack.c.bf16 (!%p4291_p11), %v936_v42, %v936_v42 }
  0x4f   : > { %v820_v28 = vor.u32 %v818_v24, %v817_v26  ;;  %v822_v29 = vrot.slane %v817_v26, 4 }
  0x50   : > { %v944_v45 = vshrl.u32 (!%p4291_p11), %v4505_v43, 16  ;;  %v947_v46 = vshll.u32 (!%p4291_p11), %v4505_v43, 16  ;;  %v952_v47 = vshrl.u32 (!%p4291_p11), %v4506_v44, 16  ;;  %v955_v48 = vshll.u32 (!%p4291_p11), %v4506_v44, 16 }
  0x51   : > { %v821_v30 = vsel %vm5564_vm6, %v813_v25, %v820_v28  ;;  %v907_v31 = vsel %vm5570_vm7, %v822_v29, %v906_v27 }
  0x52   : > { %905 = vst [vmem:[#allocation2 + $0x64] sm:$0xf] %v821_v30  ;;  %908 = vst [vmem:[#allocation2 + $0x68] sm:$0x1] %v907_v31  ;;  %v946_v50 = vrot.slane (!%p4291_p11), %v944_v45, 7  ;;  %v954_v51 = vrot.slane (!%p4291_p11), %v952_v47, 7 }
  0x54   : > { %v949_v54 = vor.u32 %v947_v46, %v946_v50  ;;  %v950_v55 = vrot.slane %v946_v50, 4  ;;  %v957_v57 = vor.u32 %v955_v48, %v954_v51  ;;  %v959_v58 = vrot.slane %v954_v51, 4 }
  0x56   : > { %v964_v59 = vsel %vm5558_vm5, %v949_v54, %v963_v52  ;;  %v958_v61 = vsel %vm5564_vm6, %v950_v55, %v957_v57  ;;  %v968_v62 = vsel %vm5570_vm7, %v959_v58, %v967_v53 }
  0x57   : > { %965 = vst [vmem:[#allocation2] sm:$0xf] %v964_v59  ;;  %966 = vst [vmem:[#allocation2 + $0x4] sm:$0xf] %v958_v61 }
  0x58   : > { %969 = vst [vmem:[#allocation2 + $0x8] sm:$0x1] %v968_v62 }
  0x59 PF: > { %p4296_p12 = scmp.ge.s32.totalorder %s5358_s27, 1 }
  0x5a   : > { %v4562_v63 = vld [vmem:[%s481_s17] sm:$0xff] (!%p4296_p12)   ;;  %v1025_v14 = vld [vmem:[#allocation2 + $0x6c] sm:$0xf] (!%p4296_p12)  ;;  %v1029_v20 = vld [vmem:[#allocation2 + $0x74] sm:$0x1] (!%p4296_p12) }
  0x5b   : > { %973 = sbr.rel (%p4296_p12) target bundleno = 110 (0x6e), region = 52  ;;  %v4297_v0 = vld [vmem:[%s6624_s3] ss:$0 sm:$0xff] (!%p4296_p12)  ;;  %v4563_v1 = vunpack.c.l.bf16 (!%p4296_p12), %v4562_v63  ;;  %v4564_v3 = vunpack.c.h.bf16 (!%p4296_p12), %v4562_v63 }
  0x5c   : > { %v4298_v4 = vld [vmem:[%s6625_s4] ss:$0 sm:$0xff] (!%p4296_p12) }
  0x5d   : > { %v985_v6 = vmul.f32 (!%p4296_p12), %v4563_v1, %v4297_v0  ;;  %v986_v7 = vmul.f32 (!%p4296_p12), %v4564_v3, %v4297_v0 }
  0x5f   : > { %v994_v8 = vadd.f32 (!%p4296_p12), %v4298_v4, %v985_v6  ;;  %v995_v9 = vadd.f32 (!%p4296_p12), %v4298_v4, %v986_v7 }
  0x61   : > { %v996_v10 = vmax.f32 (!%p4296_p12), %v994_v8, 0.0  ;;  %v997_v11 = vmax.f32 (!%p4296_p12), %v995_v9, 0.0 }
  0x63   : > { %v4507_v12 = vpack.c.bf16 %v996_v10, %v996_v10  ;;  %v4508_v13 = vpack.c.bf16 %v997_v11, %v997_v11 }
  0x65   : > { %v1005_v15 = vshrl.u32 %v4507_v12, 16  ;;  %v1008_v16 = vshll.u32 %v4507_v12, 16  ;;  %v1013_v17 = vshrl.u32 %v4508_v13, 16  ;;  %v1016_v18 = vshll.u32 %v4508_v13, 16 }
  0x67   : > { %v1007_v19 = vrot.slane %v1005_v15, 7  ;;  %v1015_v2 = vrot.slane %v1013_v17, 7 }
  0x69   : > { %v1010_v21 = vor.u32 %v1008_v16, %v1007_v19  ;;  %v1011_v22 = vrot.slane %v1007_v19, 4  ;;  %v1018_v23 = vor.u32 %v1016_v18, %v1015_v2  ;;  %v1020_v24 = vrot.slane %v1015_v2, 4 }
  0x6b   : > { %v1026_v5 = vsel %vm5558_vm5, %v1010_v21, %v1025_v14  ;;  %v1019_v25 = vsel %vm5564_vm6, %v1011_v22, %v1018_v23  ;;  %v1030_v26 = vsel %vm5570_vm7, %v1020_v24, %v1029_v20 }
  0x6c   : > { %1027 = vst [vmem:[#allocation2 + $0x6c] sm:$0xf] %v1026_v5  ;;  %1028 = vst [vmem:[#allocation2 + $0x70] sm:$0xf] %v1019_v25 }
  0x6d   : > { %1031 = vst [vmem:[#allocation2 + $0x74] sm:$0x1] %v1030_v26 }
  0x6e PF: > { %v5236_v27 = vld [vmem:[%s6626_s5 + $0x40] sm:$0xff]   ;;  %v5238_v49 = vld [vmem:[%s6626_s5 + $0x48] sm:$0xff]   ;;  %v5240_v60 = vld [vmem:[%s6626_s5 + $0x50] sm:$0xff]   ;;  %vm1072_vm8 = vsmask.f32 3328  ;;  %vm1677_vm11 = vcmask 1042432  }
  0x6f   : > { %v5237_v28 = vld [vmem:[%s6626_s5 + $0x100] sm:$0xff]   ;;  %4763 = vmatprep.subr.bf16.mxu1 %v5236_v27  ;;  %v5239_v56 = vld [vmem:[%s6626_s5 + $0x108] sm:$0xff]   ;;  %v5241_v29 = vld [vmem:[%s6626_s5 + $0x110] sm:$0xff]   ;;  %vm1073_vm9 = vsmask.f32 7440  ;;  %vm1678_vm12 = vcmask 1046532  }
  0x70   : > { %4891 = vmatprep.subr.bf16.mxu0 %v5237_v28  ;;  %4764 = vmatpush3.bf16.msra.mxu1 %v5236_v27  ;;  %v5242_v30 = vld [vmem:[%s6626_s5 + $0x58] sm:$0xff]   ;;  %v5244_v32 = vld [vmem:[%s6626_s5 + $0x60] sm:$0xff]   ;;  %v5246_v34 = vld [vmem:[%s6626_s5 + $0x68] sm:$0xff]  }
  0x71   : > { %4892 = vmatpush3.bf16.msra.mxu0 %v5237_v28  ;;  %4765 = vmatprep.subr.bf16.mxu1 %v5238_v49  ;;  %v5243_v31 = vld [vmem:[%s6626_s5 + $0x118] sm:$0xff]   ;;  %v5245_v33 = vld [vmem:[%s6626_s5 + $0x120] sm:$0xff]   ;;  %v5247_v35 = vld [vmem:[%s6626_s5 + $0x128] sm:$0xff]  }
  0x72   : > { %4893 = vmatprep.subr.bf16.mxu0 %v5239_v56  ;;  %v5714_v36 = vld [vmem:[#allocation2] sm:$0xf]  ;;  %v5716_v37 = vld [vmem:[#allocation2 + $0x4] sm:$0xf]  ;;  %v5718_v38 = vld [vmem:[#allocation2 + $0x8] sm:$0x1] }
  0x73   : > { %v1076_v39 = vshrl.u32 %v5714_v36, 16  ;;  %v1079_v40 = vshll.u32 %v5714_v36, 16  ;;  %v1085_v41 = vshll.u32 %v5716_v37, 16  ;;  %v1089_v42 = vshrl.u32 %v5716_v37, 16  ;;  %v2186_v44 = vld [vmem:[#allocation2 + $0xc] sm:$0xf]  ;;  %vm5744_vm10 = vmor %vm1072_vm8, %vm1073_vm9 }
  0x74   : > { %4766 = vmatpush3.bf16.msra.mxu1 %v5238_v49  ;;  %v1095_v43 = vshll.u32 %v5718_v38, 16  ;;  %v5725_v47 = vld [vmem:[#allocation2 + $0x10] sm:$0xf]  ;;  %v5727_v48 = vld [vmem:[#allocation2 + $0x14] sm:$0x1]  ;;  %v2211_v53 = vshrl.u32 %v2186_v44, 16  ;;  %vm5999_vm13 = vmor %vm1677_vm11, %vm1678_vm12 }
  0x75   : > { %4894 = vmatpush3.bf16.msra.mxu0 %v5239_v56  ;;  %4767 = vmatprep.subr.bf16.mxu1 %v5240_v60  ;;  %v1078_v45 = vrot.slane %v1076_v39, 4  ;;  %v1081_v46 = vrot.slane %v1079_v40, 5  ;;  %v5248_v50 = vld [vmem:[%s6626_s5 + $0x70] sm:$0xff]   ;;  %v1087_v51 = vrot.slane %v1085_v41, 5  ;;  %v1091_v52 = vrot.slane %v1089_v42, 4  ;;  %v5250_v62 = vld [vmem:[%s6626_s5 + $0x78] sm:$0xff]  }
  0x76   : > { %4895 = vmatprep.subr.bf16.mxu0 %v5241_v29  ;;  %v5249_v54 = vld [vmem:[%s6626_s5 + $0x130] sm:$0xff]   ;;  %v2214_v57 = vshll.u32 %v2186_v44, 16  ;;  %v2220_v58 = vshll.u32 %v5725_v47, 16  ;;  %v2224_v59 = vshrl.u32 %v5725_v47, 16  ;;  %v5737_v61 = vld [vmem:[#allocation2 + $0xc] sm:$0xf] }
  0x77   : > { %v1082_v55 = vor.u32 %v1081_v46, %v1078_v45  ;;  %v1092_v0 = vor.u32 %v1091_v52, %v1087_v51  ;;  %v1097_v1 = vrot.slane %v1095_v43, 5  ;;  %v2213_v3 = vrot.slane %v2211_v53, 4  ;;  %v5749_v6 = vld [vmem:[#allocation2 + $0x10] sm:$0xf]  ;;  %v5251_v16 = vld [vmem:[%s6626_s5 + $0x138] sm:$0xff]   ;;  %v5252_v49 = vld [vmem:[%s6626_s5] sm:$0xff]  }
  0x78   : > { %4768 = vmatpush3.bf16.msra.mxu1 %v5240_v60  ;;  %v2230_v4 = vshll.u32 %v5727_v48, 16  ;;  %v2216_v8 = vrot.slane %v2214_v57, 5  ;;  %v2222_v9 = vrot.slane %v2220_v58, 5  ;;  %v2226_v10 = vrot.slane %v2224_v59, 4  ;;  %v5758_v2 = vld [vmem:[#allocation2 + $0x14] sm:$0x1] }
  0x79   : > { %4896 = vmatpush3.bf16.msra.mxu0 %v5241_v29  ;;  %4769 = vmatprep.subr.bf16.mxu1 %v5242_v30  ;;  %v1083_v7 = vrot.slane %v1082_v55, 4  ;;  %v1093_v11 = vrot.slane %v1092_v0, 4  ;;  %v1100_v13 = vshrl.u32 %v5737_v61, 16  ;;  %v1103_v15 = vshll.u32 %v5737_v61, 16  ;;  %v2189_v20 = vld [vmem:[#allocation2 + $0x18] sm:$0xf] }
  0x7a   : > { %4897 = vmatprep.subr.bf16.mxu0 %v5243_v31  ;;  %v2232_v12 = vrot.slane %v2230_v4, 5  ;;  %v2217_v18 = vor.u32 %v2216_v8, %v2213_v3  ;;  %v2227_v19 = vor.u32 %v2226_v10, %v2222_v9  ;;  %v1109_v14 = vshll.u32 %v5749_v6, 16  ;;  %v5764_v5 = vld [vmem:[#allocation2 + $0x1c] sm:$0xf]  ;;  %v5772_v56 = vld [vmem:[%s6626_s5 + $0x140] sm:$0xff]  }
  0x7b   : > { %v1088_v17 = vsel %vm5744_vm10, %v1083_v7, %v1087_v51  ;;  %v1098_v21 = vsel %vm5744_vm10, %v1093_v11, %v1097_v1  ;;  %v1102_v22 = vrot.slane %v1100_v13, 4  ;;  %v1105_v23 = vrot.slane %v1103_v15, 5  ;;  %v5790_v59 = vld [vmem:[#allocation2 + $0x1c] sm:$0xf]  ;;  %v2192_v7 = vld [vmem:[#allocation2 + $0x24] sm:$0xf] }
  0x7c   : > { %4770 = vmatpush3.bf16.msra.mxu1 %v5242_v30  ;;  %v1113_v24 = vshrl.u32 %v5749_v6, 16  ;;  %v4301_v25 = vcombine.low %v1088_v17, %v1098_v21  ;;  %v2218_v26 = vrot.slane %v2217_v18, 4  ;;  %v2228_v27 = vrot.slane %v2227_v19, 4  ;;  %v5254_v11 = vld [vmem:[%s6626_s5 + $0x8] sm:$0xff]  }
  0x7d   : > { %4898 = vmatpush3.bf16.msra.mxu0 %v5243_v31  ;;  %4771 = vmatprep.subr.bf16.mxu1 %v5244_v32  ;;  %v1111_v28 = vrot.slane %v1109_v14, 5  ;;  %v1106_v60 = vor.u32 %v1105_v23, %v1102_v22  ;;  %v1119_v30 = vshll.u32 %v5758_v2, 16  ;;  %v5775_v31 = vld [vmem:[#allocation2 + $0x20] sm:$0x1]  ;;  %v2244_v45 = vshll.u32 %v5764_v5, 16  ;;  %v5256_v23 = vld [vmem:[%s6626_s5 + $0x10] sm:$0xff]  }
  0x7e   : > { %4899 = vmatprep.subr.bf16.mxu0 %v5245_v33  ;;  %v1115_v29 = vrot.slane %v1113_v24, 4  ;;  %4779 = vmatprep.mubr.bf16.mxu1 %v4301_v25  ;;  %v2248_v46 = vshrl.u32 %v5764_v5, 16  ;;  %v1133_v15 = vshll.u32 %v5790_v59, 16  ;;  %v5802_v18 = vld [vmem:[#allocation2 + $0x28] sm:$0xf]  ;;  %v2259_v22 = vshrl.u32 %v2192_v7, 16 }
  0x7f   : > { %v1107_v40 = vrot.slane %v1106_v60, 4  ;;  %v1121_v42 = vrot.slane %v1119_v30, 5  ;;  %v2246_v57 = vrot.slane %v2244_v45, 5  ;;  %v5806_v21 = vld [vmem:[#allocation2 + $0x2c] sm:$0x1] }
  0x80   : > { %4772 = vmatpush3.bf16.msra.mxu1 %v5244_v32  ;;  %v2223_v32 = vsel %vm5744_vm10, %v2218_v26, %v2222_v9  ;;  %v1116_v41 = vor.u32 %v1115_v29, %v1111_v28  ;;  %v2250_v58 = vrot.slane %v2248_v46, 4  ;;  %v5255_v24 = vld [vmem:[%s6626_s5 + $0x148] sm:$0xff]   ;;  %v1135_v25 = vrot.slane %v1133_v15, 5  ;;  %v5814_v60 = vld [vmem:[#allocation2 + $0x24] sm:$0xf] }
  0x81   : > { %4900 = vmatpush3.bf16.msra.mxu0 %v5245_v33  ;;  %4773 = vmatprep.subr.bf16.mxu1 %v5246_v34  ;;  %v2233_v33 = vsel %vm5744_vm10, %v2228_v27, %v2232_v12  ;;  %v1112_v52 = vsel %vm5744_vm10, %v1107_v40, %v1111_v28  ;;  %v2262_v28 = vshll.u32 %v2192_v7, 16  ;;  %v5820_v40 = vld [vmem:[#allocation2 + $0x28] sm:$0xf]  ;;  %v1148_v45 = vshrl.u32 %v5814_v60, 16  ;;  %v2195_v46 = vld [vmem:[#allocation2 + $0x30] sm:$0xf] }
  0x82   : > { %4901 = vmatprep.subr.bf16.mxu0 %v5247_v35  ;;  %v4373_v39 = vcombine.low %v2223_v32, %v2233_v33  ;;  %v1117_v53 = vrot.slane %v1116_v41, 4  ;;  %v2251_v10 = vor.u32 %v2250_v58, %v2246_v57  ;;  %v2261_v32 = vrot.slane %v2259_v22, 4  ;;  %v5822_v41 = vld [vmem:[#allocation2 + $0x2c] sm:$0x1]  ;;  %v5257_v58 = vld [vmem:[%s6626_s5 + $0x150] sm:$0xff]   ;;  %v5258_v7 = vld [vmem:[%s6626_s5 + $0x18] sm:$0xff]  }
  0x83   : > { %v2268_v33 = vshll.u32 %v5802_v18, 16  ;;  %v1167_v15 = vshll.u32 %v5822_v41, 16  ;;  %v5259_v22 = vld [vmem:[%s6626_s5 + $0x158] sm:$0xff]  }
  0x84   : > { %4774 = vmatpush3.bf16.msra.mxu1 %v5246_v34  ;;  %v2235_v34 = vshrl.u32 %v2189_v20, 16  ;;  %4907 = vmatprep.mubr.bf16.mxu0 %v4373_v39  ;;  %v1122_v0 = vsel %vm5744_vm10, %v1117_v53, %v1121_v42  ;;  %v2252_v14 = vrot.slane %v2251_v10, 4  ;;  %v2272_v39 = vshrl.u32 %v5802_v18, 16 }
  0x85   : > { %4902 = vmatpush3.bf16.msra.mxu0 %v5247_v35  ;;  %4775 = vmatprep.subr.bf16.mxu1 %v5248_v50  ;;  %v2238_v35 = vshll.u32 %v2189_v20, 16  ;;  %v4302_v8 = vcombine.low %v1112_v52, %v1122_v0 }
  0x86   : > { %4903 = vmatprep.subr.bf16.mxu0 %v5249_v54  ;;  %v2237_v43 = vrot.slane %v2235_v34, 4 }
  0x87   : > { %v2240_v44 = vrot.slane %v2238_v35, 5  ;;  %v2264_v35 = vrot.slane %v2262_v28, 5 }
  0x88   : > { %4776 = vmatpush3.bf16.msra.mxu1 %v5248_v50  ;;  %v5783_v50 = vld [vmem:[#allocation2 + $0x18] sm:$0xf] }
  0x89   : > { %4904 = vmatpush3.bf16.msra.mxu0 %v5249_v54  ;;  %4777 = vmatprep.subr.bf16.mxu1 %v5250_v62  ;;  %v2254_v54 = vshll.u32 %v5775_v31, 16  ;;  %v2241_v55 = vor.u32 %v2240_v44, %v2237_v43  ;;  %v1124_v4 = vshrl.u32 %v5783_v50, 16  ;;  %v1127_v12 = vshll.u32 %v5783_v50, 16 }
  0x8a   : > { %4905 = vmatprep.subr.bf16.mxu0 %v5251_v16  ;;  %v2270_v43 = vrot.slane %v2268_v33, 5  ;;  %v2278_v44 = vshll.u32 %v5806_v21, 16  ;;  %v2265_v53 = vor.u32 %v2264_v35, %v2261_v32 }
  0x8b   : > { %v2256_v1 = vrot.slane %v2254_v54, 5  ;;  %v2242_v9 = vrot.slane %v2241_v55, 4  ;;  %v1126_v13 = vrot.slane %v1124_v4, 4  ;;  %v1129_v20 = vrot.slane %v1127_v12, 5 }
  0x8c   : > { %4778 = vmatpush3.bf16.msra.mxu1 %v5250_v62  ;;  %v1066_v62 = vld [vmem:[#allocation2 + $0x20] sm:$0x1]  ;;  %v2274_v54 = vrot.slane %v2272_v39, 4  ;;  %v1151_v55 = vshll.u32 %v5814_v60, 16  ;;  %v2280_v0 = vrot.slane %v2278_v44, 5  ;;  %v1157_v4 = vshll.u32 %v5820_v40, 16 }
  0x8d   : > { %4906 = vmatpush3.bf16.msra.mxu0 %v5251_v16  ;;  %4795 = vmatprep.subr.bf16.mxu1 %v5252_v49  ;;  %v1137_v16 = vshrl.u32 %v5790_v59, 16  ;;  %v1143_v17 = vshll.u32 %v1066_v62, 16  ;;  %v2247_v19 = vsel %vm5744_vm10, %v2242_v9, %v2246_v57  ;;  %v2257_v29 = vsel %vm5744_vm10, %v2252_v14, %v2256_v1  ;;  %v5827_v57 = vld [vmem:[#allocation2 + $0x34] sm:$0xf]  ;;  %v5845_v14 = vld [vmem:[#allocation2 + $0x38] sm:$0x1] }
  0x8e   : > { %4923 = vmatprep.subr.bf16.mxu0 %v5772_v56  ;;  %v1130_v30 = vor.u32 %v1129_v20, %v1126_v13  ;;  %v4374_v34 = vcombine.low %v2247_v19, %v2257_v29  ;;  %v1150_v1 = vrot.slane %v1148_v45, 4  ;;  %v2266_v9 = vrot.slane %v2265_v53, 4  ;;  %v5851_v29 = vld [vmem:[#allocation2 + $0x30] sm:$0xf] }
  0x8f   : > { %4780 = vmatmul.mubr.bf16.vlgmr.msra.gmra.mrb[0].mxu1 %v4302_v8  ;;  %v1139_v26 = vrot.slane %v1137_v16, 4  ;;  %v1145_v27 = vrot.slane %v1143_v17, 5  ;;  %v2275_v10 = vor.u32 %v2274_v54, %v2270_v43  ;;  %v1159_v12 = vrot.slane %v1157_v4, 5  ;;  %v5865_v54 = vld [vmem:[#allocation2 + $0x38] sm:$0x1] }
  0x90   : > { %4796 = vmatpush3.bf16.msra.mxu1 %v5252_v49  ;;  %v1131_v42 = vrot.slane %v1130_v30, 4  ;;  %4908 = vmatmul.mubr.bf16.vlgmr.msra.gmra.mrb[0].mxu0 %v4374_v34  ;;  %v1161_v13 = vshrl.u32 %v5820_v40, 16  ;;  %v2271_v16 = vsel %vm5744_vm10, %v2266_v9, %v2270_v43  ;;  %v2283_v20 = vshrl.u32 %v2195_v46, 16  ;;  %v5856_v34 = vld [vmem:[#allocation2 + $0x34] sm:$0xf] }
  0x91   : > { %4797 = vmatprep.subr.bf16.mxu1 %v5254_v11  ;;  %v1140_v49 = vor.u32 %v1139_v26, %v1135_v25  ;;  %4924 = vmatpush3.bf16.msra.mxu0 %v5772_v56  ;;  %v2276_v17 = vrot.slane %v2275_v10, 4  ;;  %v1169_v26 = vrot.slane %v1167_v15, 5  ;;  %v2292_v28 = vshll.u32 %v5827_v57, 16  ;;  %v2198_v9 = vld [vmem:[#allocation2 + $0x3c] sm:$0xf] }
  0x92   : > { %v1136_v62 = vsel %vm5744_vm10, %v1131_v42, %v1135_v25  ;;  %4925 = vmatprep.subr.bf16.mxu0 %v5255_v24  ;;  %v1163_v25 = vrot.slane %v1161_v13, 4  ;;  %v2285_v33 = vrot.slane %v2283_v20, 4  ;;  %v2302_v45 = vshll.u32 %v5845_v14, 16  ;;  %v5878_v13 = vld [vmem:[#allocation2 + $0x40] sm:$0xf]  ;;  %v5264_v20 = vld [vmem:[%s6626_s5 + $0x30] sm:$0xff]  }
  0x93   : > { %v1141_v52 = vrot.slane %v1140_v49, 4  ;;  %v2281_v30 = vsel %vm5744_vm10, %v2276_v17, %v2280_v0  ;;  %v2294_v42 = vrot.slane %v2292_v28, 5  ;;  %v5262_v0 = vld [vmem:[%s6626_s5 + $0x28] sm:$0xff]   ;;  %v2307_v28 = vshrl.u32 %v2198_v9, 16 }
  0x94   : > { %4798 = vmatpush3.bf16.msra.mxu1 %v5254_v11  ;;  %v1153_v11 = vrot.slane %v1151_v55, 5  ;;  %v4375_v49 = vcombine.low %v2271_v16, %v2281_v30  ;;  %v1164_v35 = vor.u32 %v1163_v25, %v1159_v12  ;;  %v1175_v55 = vshll.u32 %v5851_v29, 16 }
  0x95   : > { %4799 = vmatprep.subr.bf16.mxu1 %v5256_v23  ;;  %v1146_v8 = vsel %vm5744_vm10, %v1141_v52, %v1145_v27  ;;  %4926 = vmatpush3.bf16.msra.mxu0 %v5255_v24  ;;  %v2286_v27 = vshll.u32 %v2195_v46, 16  ;;  %v5260_v24 = vld [vmem:[%s6626_s5 + $0x20] sm:$0xff]   ;;  %v1172_v46 = vshrl.u32 %v5851_v29, 16  ;;  %v2304_v4 = vrot.slane %v2302_v45, 5 }
  0x96   : > { %v4303_v56 = vcombine.low %v1136_v62, %v1146_v8  ;;  %v1154_v19 = vor.u32 %v1153_v11, %v1150_v1  ;;  %4927 = vmatprep.subr.bf16.mxu0 %v5257_v58  ;;  %4911 = vmatprep.mubr.bf16.mxu0 %v4375_v49  ;;  %v1165_v52 = vrot.slane %v1164_v35, 4  ;;  %v1181_v62 = vshll.u32 %v5856_v34, 16  ;;  %v5894_v35 = vld [vmem:[#allocation2 + $0x3c] sm:$0xf]  ;;  %v5898_v45 = vld [vmem:[#allocation2 + $0x44] sm:$0x1] }
  0x97   : > { %v2288_v39 = vrot.slane %v2286_v27, 5  ;;  %v1185_v8 = vshrl.u32 %v5856_v34, 16  ;;  %v5886_v27 = vld [vmem:[#allocation2 + $0x44] sm:$0x1]  ;;  %v2310_v30 = vshll.u32 %v2198_v9, 16  ;;  %v2316_v49 = vshll.u32 %v5878_v13, 16 }
  0x98   : > { %4800 = vmatpush3.bf16.msra.mxu1 %v5256_v23  ;;  %4783 = vmatprep.mubr.bf16.mxu1 %v4303_v56  ;;  %v1155_v32 = vrot.slane %v1154_v19, 4  ;;  %v2296_v23 = vshrl.u32 %v5827_v57, 16  ;;  %v1170_v10 = vsel %vm5744_vm10, %v1165_v52, %v1169_v26  ;;  %v1177_v56 = vrot.slane %v1175_v55, 5  ;;  %6641 = vst [vmem:[#allocation3_spill] sm:$0xff] %v5898_v45 }
  0x99   : > { %4801 = vmatprep.subr.bf16.mxu1 %v5258_v7  ;;  %v2289_v53 = vor.u32 %v2288_v39, %v2285_v33  ;;  %4928 = vmatpush3.bf16.msra.mxu0 %v5257_v58  ;;  %v5261_v58 = vld [vmem:[%s6626_s5 + $0x160] sm:$0xff]   ;;  %v1187_v17 = vrot.slane %v1185_v8, 4  ;;  %v1191_v19 = vshll.u32 %v5865_v54, 16  ;;  %v2320_v55 = vshrl.u32 %v5878_v13, 16 }
  0x9a   : > { %v1160_v43 = vsel %vm5744_vm10, %v1155_v32, %v1159_v12  ;;  %v2298_v44 = vrot.slane %v2296_v23, 4  ;;  %4929 = vmatprep.subr.bf16.mxu0 %v5259_v22  ;;  %v1183_v12 = vrot.slane %v1181_v62, 5  ;;  %v5263_v32 = vld [vmem:[%s6626_s5 + $0x168] sm:$0xff]   ;;  %v2326_v62 = vshll.u32 %v5886_v27, 16 }
  0x9b   : > { %v2290_v11 = vrot.slane %v2289_v53, 4  ;;  %v4304_v15 = vcombine.low %v1160_v43, %v1170_v10  ;;  %v2309_v43 = vrot.slane %v2307_v28, 4  ;;  %v2318_v53 = vrot.slane %v2316_v49, 5  ;;  %v5909_v10 = vld [vmem:[#allocation2 + $0x4c] sm:$0xf] }
  0x9c   : > { %4802 = vmatpush3.bf16.msra.mxu1 %v5258_v7  ;;  %v2299_v1 = vor.u32 %v2298_v44, %v2294_v42  ;;  %v1174_v7 = vrot.slane %v1172_v46, 4  ;;  %v1188_v23 = vor.u32 %v1187_v17, %v1183_v12  ;;  %v2312_v44 = vrot.slane %v2310_v30, 5  ;;  %v5266_v46 = vld [vmem:[%s6626_s5 + $0x38] sm:$0xff]  }
  0x9d   : > { %4803 = vmatprep.subr.bf16.mxu1 %v5260_v24  ;;  %v2295_v25 = vsel %vm5744_vm10, %v2290_v11, %v2294_v42  ;;  %4930 = vmatpush3.bf16.msra.mxu0 %v5259_v22  ;;  %v5896_v22 = vld [vmem:[#allocation2 + $0x40] sm:$0xf]  ;;  %v1196_v8 = vshrl.u32 %v5894_v35, 16  ;;  %v1199_v9 = vshll.u32 %v5894_v35, 16 }
  0x9e   : > { %v2300_v16 = vrot.slane %v2299_v1, 4  ;;  %v1178_v26 = vor.u32 %v1177_v56, %v1174_v7  ;;  %4784 = vmatmul.mubr.bf16.gmra.mrb[4].mxu1 %v4304_v15  ;;  %4931 = vmatprep.subr.bf16.mxu0 %v5261_v58  ;;  %v1189_v52 = vrot.slane %v1188_v23, 4  ;;  %v2201_v1 = vld [vmem:[#allocation2 + $0x48] sm:$0xf]  ;;  %v2313_v7 = vor.u32 %v2312_v44, %v2309_v43 }
  0x9f   : > { %v2322_v56 = vrot.slane %v2320_v55, 4  ;;  %v2328_v15 = vrot.slane %v2326_v62, 5  ;;  %v1209_v30 = vshrl.u32 %v5896_v22, 16  ;;  %v2331_v49 = vshrl.u32 %v2201_v1, 16 }
  0xa0   : > { %4804 = vmatpush3.bf16.msra.mxu1 %v5260_v24  ;;  %v2305_v33 = vsel %vm5744_vm10, %v2300_v16, %v2304_v4  ;;  %v1193_v24 = vrot.slane %v1191_v19, 5  ;;  %v1179_v42 = vrot.slane %v1178_v26, 4  ;;  %v1205_v16 = vshll.u32 %v5896_v22, 16 }
  0xa1   : > { %4805 = vmatprep.subr.bf16.mxu1 %v5262_v0  ;;  %v4376_v39 = vcombine.low %v2295_v25, %v2305_v33  ;;  %4932 = vmatpush3.bf16.msra.mxu0 %v5261_v58  ;;  %v2314_v17 = vrot.slane %v2313_v7, 4  ;;  %v1198_v19 = vrot.slane %v1196_v8, 4  ;;  %v5265_v25 = vld [vmem:[%s6626_s5 + $0x170] sm:$0xff]   ;;  %v2323_v26 = vor.u32 %v2322_v56, %v2318_v53  ;;  %v5933_v7 = vld [vmem:[#allocation2 + $0x48] sm:$0xf] }
  0xa2   : > { %v1184_v4 = vsel %vm5744_vm10, %v1179_v42, %v1183_v12  ;;  %v1194_v11 = vsel %vm5744_vm10, %v1189_v52, %v1193_v24  ;;  %v1201_v12 = vrot.slane %v1199_v9, 5  ;;  %4933 = vmatprep.subr.bf16.mxu0 %v5263_v32  ;;  %v1207_v28 = vrot.slane %v1205_v16, 5  ;;  %v5921_v24 = vld [vmem:[#allocation2 + $0x50] sm:$0x1]  ;;  %v5926_v42 = vld [vmem:[%s6626_s5 + $0x80] sm:$0xff]  }
  0xa3   : > { %4912 = vmatmul.mubr.bf16.gmra.mrb[4].mxu0 %v4376_v39  ;;  %v1215_v33 = vshll.u32 %v5898_v45, 16  ;;  %v2319_v58 = vsel %vm5744_vm10, %v2314_v17, %v2318_v53  ;;  %v2334_v39 = vshll.u32 %v2201_v1, 16  ;;  %v2324_v43 = vrot.slane %v2323_v26, 4  ;;  %v5267_v53 = vld [vmem:[%s6626_s5 + $0x178] sm:$0xff]   ;;  %v2204_v26 = vld [vmem:[#allocation2 + $0x54] sm:$0xf] }
  0xa4   : > { %4806 = vmatpush3.bf16.msra.mxu1 %v5262_v0  ;;  %v4305_v0 = vcombine.low %v1184_v4, %v1194_v11  ;;  %v1202_v23 = vor.u32 %v1201_v12, %v1198_v19  ;;  %v1211_v44 = vrot.slane %v1209_v30, 4  ;;  %v2333_v62 = vrot.slane %v2331_v49, 4  ;;  %v5942_v12 = vld [vmem:[#allocation2 + $0x50] sm:$0x1] }
  0xa5   : > { %4807 = vmatprep.subr.bf16.mxu1 %v5264_v20  ;;  %v1217_v52 = vrot.slane %v1215_v33, 5  ;;  %4934 = vmatpush3.bf16.msra.mxu0 %v5263_v32  ;;  %v2336_v4 = vrot.slane %v2334_v39, 5  ;;  %v2344_v1 = vshrl.u32 %v5909_v10, 16  ;;  %v2329_v8 = vsel %vm5744_vm10, %v2324_v43, %v2328_v15  ;;  %v5938_v32 = vld [vmem:[#allocation2 + $0x4c] sm:$0xf]  ;;  %6642 = vst [vmem:[#allocation4_spill] sm:$0xff] %v5942_v12 }
  0xa6   : > { %4787 = vmatprep.mubr.bf16.mxu1 %v4305_v0  ;;  %v1203_v55 = vrot.slane %v1202_v23, 4  ;;  %4935 = vmatprep.subr.bf16.mxu0 %v5265_v25  ;;  %v1212_v9 = vor.u32 %v1211_v44, %v1207_v28  ;;  %v2350_v56 = vshll.u32 %v5921_v24, 16  ;;  %v4377_v16 = vcombine.low %v2319_v58, %v2329_v8  ;;  %v5952_v39 = vld [vmem:[%s6626_s5 + $0x180] sm:$0xff]  }
  0xa7   : > { %v2337_v17 = vor.u32 %v2336_v4, %v2333_v62  ;;  %v2346_v19 = vrot.slane %v2344_v1, 4  ;;  %v1220_v33 = vshrl.u32 %v5933_v7, 16  ;;  %v1223_v23 = vshll.u32 %v5933_v7, 16 }
  0xa8   : > { %4808 = vmatpush3.bf16.msra.mxu1 %v5264_v20  ;;  %v2340_v20 = vshll.u32 %v5909_v10, 16  ;;  %v1208_v0 = vsel %vm5744_vm10, %v1203_v55, %v1207_v28  ;;  %v1213_v30 = vrot.slane %v1212_v9, 4  ;;  %v2352_v15 = vrot.slane %v2350_v56, 5  ;;  %4915 = vmatprep.mubr.bf16.mxu0 %v4377_v16  ;;  %v5957_v55 = vld [vmem:[#allocation2 + $0x58] sm:$0xf] }
  0xa9   : > { %4809 = vmatprep.subr.bf16.mxu1 %v5266_v46  ;;  %4936 = vmatpush3.bf16.msra.mxu0 %v5265_v25  ;;  %v1229_v49 = vshll.u32 %v5938_v32, 16  ;;  %v1233_v28 = vshrl.u32 %v5938_v32, 16  ;;  %v1222_v44 = vrot.slane %v1220_v33, 4  ;;  %v1239_v25 = vshll.u32 %v5942_v12, 16  ;;  %v5961_v9 = vld [vmem:[#allocation2 + $0x5c] sm:$0x1] }
  0xaa   : > { %v2342_v11 = vrot.slane %v2340_v20, 5  ;;  %4937 = vmatprep.subr.bf16.mxu0 %v5267_v53  ;;  %v1218_v43 = vsel %vm5744_vm10, %v1213_v30, %v1217_v52  ;;  %v1225_v20 = vrot.slane %v1223_v23, 5  ;;  %v5963_v56 = vld [vmem:[#allocation2 + $0x54] sm:$0xf]  ;;  %v2355_v52 = vshrl.u32 %v2204_v26, 16 }
  0xab   : > { %v4306_v62 = vcombine.low %v1208_v0, %v1218_v43  ;;  %v1231_v8 = vrot.slane %v1229_v49, 5  ;;  %v5965_v30 = vld [vmem:[#allocation2 + $0x58] sm:$0xf]  ;;  %v2358_v33 = vshll.u32 %v2204_v26, 16  ;;  %v2368_v23 = vshrl.u32 %v5957_v55, 16 }
  0xac   : > { %4810 = vmatpush3.bf16.msra.mxu1 %v5266_v46  ;;  %v2338_v46 = vrot.slane %v2337_v17, 4  ;;  %v2347_v58 = vor.u32 %v2346_v19, %v2342_v11  ;;  %v1226_v16 = vor.u32 %v1225_v20, %v1222_v44  ;;  %v1235_v17 = vrot.slane %v1233_v28, 4  ;;  %v2207_v26 = vld [vmem:[#allocation2 + $0x60] sm:$0xf]  ;;  %v5985_v12 = vld [vmem:[#allocation2 + $0x68] sm:$0x1] }
  0xad   : > { %4827 = vmatprep.subr.bf16.mxu1 %v5926_v42  ;;  %v1241_v19 = vrot.slane %v1239_v25, 5  ;;  %4938 = vmatpush3.bf16.msra.mxu0 %v5267_v53  ;;  %v2357_v28 = vrot.slane %v2355_v52, 4  ;;  %v2360_v43 = vrot.slane %v2358_v33, 5  ;;  %v2370_v53 = vrot.slane %v2368_v23, 4  ;;  %v5973_v25 = vld [vmem:[#allocation2 + $0x5c] sm:$0x1] }
  0xae   : > { %v2343_v4 = vsel %vm5744_vm10, %v2338_v46, %v2342_v11  ;;  %v2348_v1 = vrot.slane %v2347_v58, 4  ;;  %4788 = vmatmul.mubr.bf16.gmra.mrb[8].mxu1 %v4306_v62  ;;  %v2364_v11 = vshll.u32 %v5957_v55, 16  ;;  %4955 = vmatprep.subr.bf16.mxu0 %v5952_v39  ;;  %v1227_v58 = vrot.slane %v1226_v16, 4  ;;  %v5980_v33 = vld [vmem:[#allocation2 + $0x64] sm:$0xf] }
  0xaf   : > { %v1236_v49 = vor.u32 %v1235_v17, %v1231_v8  ;;  %v2374_v20 = vshll.u32 %v5961_v9, 16  ;;  %v2361_v16 = vor.u32 %v2360_v43, %v2357_v28  ;;  %v1257_v51 = vshrl.u32 %v5965_v30, 16  ;;  %v2611_v28 = vld [vmem:[#allocation2 + $0xc] sm:$0xe] }
  0xb0   : > { %v2353_v0 = vsel %vm5744_vm10, %v2348_v1, %v2352_v15  ;;  %v2366_v44 = vrot.slane %v2364_v11, 5  ;;  %v1232_v15 = vsel %vm5744_vm10, %v1227_v58, %v1231_v8  ;;  %v1247_v1 = vshll.u32 %v5963_v56, 16 }
  0xb1   : > { %v4378_v46 = vcombine.low %v2343_v4, %v2353_v0  ;;  %v1237_v62 = vrot.slane %v1236_v49, 4  ;;  %v1244_v4 = vshrl.u32 %v5963_v56, 16  ;;  %v2376_v52 = vrot.slane %v2374_v20, 5 }
  0xb2   : > { %v2371_v17 = vor.u32 %v2370_v53, %v2366_v44  ;;  %v1253_v0 = vshll.u32 %v5965_v30, 16  ;;  %v2362_v58 = vrot.slane %v2361_v16, 4  ;;  %v1259_v53 = vrot.slane %v1257_v51, 4 }
  0xb3   : > { %4916 = vmatmul.mubr.bf16.gmra.mrb[8].mxu0 %v4378_v46  ;;  %v1242_v11 = vsel %vm5744_vm10, %v1237_v62, %v1241_v19  ;;  %v1246_v23 = vrot.slane %v1244_v4, 4  ;;  %v1249_v46 = vrot.slane %v1247_v1, 5  ;;  %v1263_v20 = vshll.u32 %v5973_v25, 16 }
  0xb4   : > { %v4307_v8 = vcombine.low %v1232_v15, %v1242_v11  ;;  %v2372_v49 = vrot.slane %v2371_v17, 4  ;;  %v1255_v3 = vrot.slane %v1253_v0, 5  ;;  %v2379_v45 = vshrl.u32 %v2207_v26, 16 }
  0xb5   : > { %v1250_v43 = vor.u32 %v1249_v46, %v1246_v23  ;;  %v2367_v19 = vsel %vm5744_vm10, %v2362_v58, %v2366_v44  ;;  %v2382_v4 = vshll.u32 %v2207_v26, 16  ;;  %v2388_v15 = vshll.u32 %v5980_v33, 16 }
  0xb6   : > { %4791 = vmatprep.mubr.bf16.mxu1 %v4307_v8  ;;  %v2377_v62 = vsel %vm5744_vm10, %v2372_v49, %v2376_v52  ;;  %v1260_v17 = vor.u32 %v1259_v53, %v1255_v3  ;;  %v1265_v0 = vrot.slane %v1263_v20, 5  ;;  %v2381_v11 = vrot.slane %v2379_v45, 4  ;;  %v2612_v20 = vld [vmem:[#allocation2 + $0x18] sm:$0xe] }
  0xb7   : > { %v4379_v1 = vcombine.low %v2367_v19, %v2377_v62  ;;  %v1251_v16 = vrot.slane %v1250_v43, 4  ;;  %v2384_v23 = vrot.slane %v2382_v4, 5  ;;  %v2390_v51 = vrot.slane %v2388_v15, 5  ;;  %v2613_v19 = vld [vmem:[#allocation2 + $0x24] sm:$0xe] }
  0xb8   : > { %v2392_v46 = vshrl.u32 %v5980_v33, 16  ;;  %v1261_v44 = vrot.slane %v1260_v17, 4  ;;  %v2398_v58 = vshll.u32 %v5985_v12, 16  ;;  %v4389_v52 = vrot.slane %v2611_v28, 9 }
  0xb9   : > { %4919 = vmatprep.mubr.bf16.mxu0 %v4379_v1  ;;  %v1256_v8 = vsel %vm5744_vm10, %v1251_v16, %v1255_v3  ;;  %v2385_v26 = vor.u32 %v2384_v23, %v2381_v11  ;;  %v2645_v45 = vrot.slane %v5725_v47, 5  ;;  %v4317_v3 = vcombine.low %v5714_v36, %v5716_v37 }
  0xba   : > { %v2394_v49 = vrot.slane %v2392_v46, 4  ;;  %v1266_v53 = vsel %vm5744_vm10, %v1261_v44, %v1265_v0  ;;  %v2400_v15 = vrot.slane %v2398_v58, 5  ;;  %v2659_v0 = vrot.slane %v5802_v18, 5 }
  0xbb   : > { %v4308_v62 = vcombine.low %v1256_v8, %v1266_v53  ;;  %v2386_v28 = vrot.slane %v2385_v26, 4  ;;  %v2646_v1 = vsel %vm5999_vm13, %v4389_v52, %v2645_v45  ;;  %v2647_v16 = vrot.slane %v2645_v45, 4  ;;  %v2614_v52 = vld [vmem:[#allocation2 + $0x30] sm:$0xe] }
  0xbc   : > { %v2395_v4 = vor.u32 %v2394_v49, %v2390_v51  ;;  %v6645_v11 = vrot.slane %v5764_v5, 5  ;;  %v2655_v37 = vrot.slane %v5775_v31, 5  ;;  %v6646_v23 = vrot.slane %v5727_v48, 5 }
  0xbd   : > { %4792 = vmatmul.mubr.bf16.gmra.mrb[12].mxu1 %v4308_v62  ;;  %v2391_v47 = vsel %vm5744_vm10, %v2386_v28, %v2390_v51  ;;  %v4390_v58 = vrot.slane %v2612_v20, 9  ;;  %v4391_v51 = vrot.slane %v2613_v19, 9  ;;  %v2661_v18 = vrot.slane %v2659_v0, 4  ;;  %v2615_v20 = vld [vmem:[#allocation2 + $0x3c] sm:$0xe]  ;;  %v5272_v62 = vld [vmem:[%s6626_s5 + $0x88] sm:$0xff]  }
  0xbe   : > { %v2396_v17 = vrot.slane %v2395_v4, 4  ;;  %v2654_v36 = vrot.slane %v6645_v11, 4  ;;  %4811 = vmatprep.mubr.bf16.mxu1 %v4317_v3  ;;  %v2649_v46 = vsel %vm5999_vm13, %v2647_v16, %v6646_v23  ;;  %v2662_v49 = vrot.slane %v5806_v21, 5 }
  0xbf   : > { %v4397_v44 = vcombine.low %v2646_v1, %v2649_v46  ;;  %v1685_v45 = vrot.slane %v5718_v38, 5  ;;  %v1692_v31 = vrot.slane %v5758_v2, 5  ;;  %v4318_v48 = vcombine.low %v5737_v61, %v5749_v6  ;;  %v5278_v46 = vld [vmem:[%s6626_s5 + $0x98] sm:$0xff]  }
  0xc0   : > { %v2401_v8 = vsel %vm5744_vm10, %v2396_v17, %v2400_v15  ;;  %v2656_v53 = vsel %vm5999_vm13, %v2654_v36, %v2655_v37  ;;  %v4319_v3 = vcombine.low %v5783_v50, %v5790_v59  ;;  %v6647_v19 = vmov %v6645_v11  ;;  %v6044_v59 = vld [vmem:[#allocation2 + $0x48] sm:$0xe] }
  0xc1   : > { %v4380_v26 = vcombine.low %v2391_v47, %v2401_v8  ;;  %v2653_v21 = vsel %vm5999_vm13, %v4390_v58, %v6647_v19  ;;  %v4392_v28 = vrot.slane %v2614_v52, 9  ;;  %v2666_v61 = vrot.slane %v5827_v57, 5  ;;  %v5273_v57 = vld [vmem:[%s6626_s5 + $0x188] sm:$0xff]  }
  0xc2   : > { %v2673_v6 = vrot.slane %v5878_v13, 5  ;;  %v2660_v4 = vsel %vm5999_vm13, %v4391_v51, %v2659_v0  ;;  %v2663_v50 = vsel %vm5999_vm13, %v2661_v18, %v2662_v49  ;;  %v2669_v5 = vrot.slane %v5845_v14, 5  ;;  %v6053_v13 = vld [vmem:[#allocation2 + $0x54] sm:$0xe]  ;;  %v6055_v14 = vld [vmem:[#allocation2 + $0x60] sm:$0xe] }
  0xc3   : > { %4920 = vmatmul.mubr.bf16.gmra.mrb[12].mxu0 %v4380_v26  ;;  %v4393_v15 = vrot.slane %v2615_v20, 9  ;;  %v2676_v1 = vrot.slane %v5886_v27, 5  ;;  %v2680_v16 = vrot.slane %v5909_v10, 5  ;;  %v4398_v47 = vcombine.low %v2653_v21, %v2656_v53  ;;  %v6081_v18 = vld [vmem:[#allocation2 + $0x4] sm:$0xf] }
  0xc4   : > { %4939 = vmatprep.mubr.bf16.mxu0 %v4397_v44  ;;  %v4399_v17 = vcombine.low %v2660_v4, %v2663_v50  ;;  %v2668_v0 = vrot.slane %v2666_v61, 4  ;;  %v2675_v11 = vrot.slane %v2673_v6, 4  ;;  %v4320_v27 = vcombine.low %v5814_v60, %v5820_v40  ;;  %v5282_v20 = vld [vmem:[%s6626_s5 + $0xa0] sm:$0xff]  }
  0xc5   : > { %4812 = vmatmul.mubr.bf16.vlgmr.msra.gmra.mrb[0].mxu1 %v4318_v48  ;;  %v2667_v36 = vsel %vm5999_vm13, %v4392_v28, %v2666_v61  ;;  %v4321_v37 = vcombine.low %v5851_v29, %v5856_v34  ;;  %v4394_v23 = vrot.slane %v6044_v59, 9  ;;  %v2682_v8 = vrot.slane %v2680_v16, 4  ;;  %v5277_v29 = vld [vmem:[%s6626_s5 + $0x190] sm:$0xff]   ;;  %v1653_v48 = vld [vmem:[#allocation2] sm:$0xe] }
  0xc6   : > { %4828 = vmatpush3.bf16.msra.mxu1 %v5926_v42  ;;  %4815 = vmatprep.mubr.bf16.mxu1 %v4319_v3  ;;  %v5276_v42 = vld [vmem:[%s6626_s5 + $0x90] sm:$0xff]   ;;  %v2683_v60 = vrot.slane %v5921_v24, 5  ;;  %v4395_v44 = vrot.slane %v6053_v13, 9  ;;  %v2687_v58 = vrot.slane %v5957_v55, 5  ;;  %v2690_v51 = vrot.slane %v5961_v9, 5 }
  0xc7   : > { %4829 = vmatprep.subr.bf16.mxu1 %v5272_v62  ;;  %v4396_v52 = vrot.slane %v6055_v14, 9  ;;  %v2694_v26 = vrot.slane %v5980_v33, 5  ;;  %v1682_v24 = vrot.slane %v6081_v18, 5  ;;  %v2670_v55 = vsel %vm5999_vm13, %v2668_v0, %v2669_v5  ;;  %v6102_v61 = vld [vmem:[#allocation2 + $0x10] sm:$0xf] }
  0xc8   : > { %v2674_v49 = vsel %vm5999_vm13, %v4393_v15, %v2673_v6  ;;  %v2677_v9 = vsel %vm5999_vm13, %v2675_v11, %v2676_v1  ;;  %v4400_v53 = vcombine.low %v2667_v36, %v2670_v55  ;;  %v2689_v19 = vrot.slane %v2687_v58, 4  ;;  %v1656_v59 = vld [vmem:[#allocation2 + $0x24] sm:$0xe]  ;;  %v5284_v1 = vld [vmem:[%s6626_s5 + $0xa8] sm:$0xff]   ;;  %v6131_v11 = vld [vmem:[#allocation2 + $0x18] sm:$0xe] }
  0xc9   : > { %v4401_v3 = vcombine.low %v2674_v49, %v2677_v9  ;;  %v2697_v21 = vrot.slane %v5985_v12, 5  ;;  %v4333_v28 = vrot.slane %v1653_v48, 9  ;;  %v1689_v6 = vrot.slane %v6102_v61, 5  ;;  %v5334_v55 = vld [vmem:[#allocation2 + $0x1c] sm:$0xf]  ;;  %v5289_v12 = vld [vmem:[%s6626_s5 + $0x1b0] sm:$0xff]  }
  0xca   : > { %4830 = vmatpush3.bf16.msra.mxu1 %v5272_v62  ;;  %v6100_v62 = vrot.slane %v2694_v26, 4  ;;  %v1703_v4 = vrot.slane %v5820_v40, 5  ;;  %v1684_v50 = vrot.slane %v1682_v24, 4  ;;  %v1706_v5 = vrot.slane %v5822_v41, 5  ;;  %v1658_v9 = vld [vmem:[#allocation2 + $0x3c] sm:$0xe] }
  0xcb   : > { %4940 = vmatmul.mubr.bf16.vlgmr.msra.gmra.mrb[0].mxu0 %v4398_v47  ;;  %4831 = vmatprep.subr.bf16.mxu1 %v5276_v42  ;;  %v4322_v15 = vcombine.low %v5894_v35, %v5896_v22  ;;  %v4323_v47 = vcombine.low %v5933_v7, %v5938_v32  ;;  %v4336_v40 = vrot.slane %v1656_v59, 9  ;;  %v2681_v41 = vsel %vm5999_vm13, %v4394_v23, %v2680_v16  ;;  %v6648_v48 = vld [vmem:[#allocation3_spill] sm:$0xff]  ;;  %v1660_v61 = vld [vmem:[#allocation2 + $0x54] sm:$0xe] }
  0xcc   : > { %4956 = vmatpush3.bf16.msra.mxu0 %v5952_v39  ;;  %4943 = vmatprep.mubr.bf16.mxu0 %v4399_v17  ;;  %v5279_v39 = vld [vmem:[%s6626_s5 + $0x198] sm:$0xff]   ;;  %v1705_v13 = vrot.slane %v1703_v4, 4  ;;  %v2684_v35 = vsel %vm5999_vm13, %v2682_v8, %v2683_v60  ;;  %v5283_v17 = vld [vmem:[%s6626_s5 + $0x1a0] sm:$0xff]   ;;  %v2688_v7 = vsel %vm5999_vm13, %v4395_v44, %v2687_v58  ;;  %v2691_v0 = vsel %vm5999_vm13, %v2689_v19, %v2690_v51  ;;  %v1657_v8 = vld [vmem:[#allocation2 + $0x30] sm:$0xe] }
  0xcd   : > { %4957 = vmatprep.subr.bf16.mxu0 %v5273_v57  ;;  %4816 = vmatmul.mubr.bf16.gmra.mrb[4].mxu1 %v4320_v27  ;;  %v6135_v10 = vsel %vm5999_vm13, %v4336_v40, %v1703_v4  ;;  %v1710_v36 = vrot.slane %v5856_v34, 5  ;;  %v4324_v23 = vcombine.low %v5963_v56, %v5965_v30  ;;  %v1713_v60 = vrot.slane %v5865_v54, 5  ;;  %v5285_v44 = vld [vmem:[%s6626_s5 + $0x1a8] sm:$0xff]   ;;  %v5288_v54 = vld [vmem:[%s6626_s5 + $0xb0] sm:$0xff]   ;;  %v5291_v40 = vld [vmem:[%s6626_s5 + $0x1b8] sm:$0xff]  }
  0xce   : > { %4832 = vmatpush3.bf16.msra.mxu1 %v5276_v42  ;;  %4819 = vmatprep.mubr.bf16.mxu1 %v4321_v37  ;;  %v6139_v16 = vsel %vm5999_vm13, %v1705_v13, %v1706_v5  ;;  %v4402_v37 = vcombine.low %v2681_v41, %v2684_v35  ;;  %v4403_v58 = vcombine.low %v2688_v7, %v2691_v0  ;;  %v1696_v49 = vrot.slane %v5334_v55, 5  ;;  %v6649_v5 = vld [vmem:[#allocation4_spill] sm:$0xff] }
  0xcf   : > { %4833 = vmatprep.subr.bf16.mxu1 %v5278_v46  ;;  %v4344_v42 = vcombine.low %v6135_v10, %v6139_v16  ;;  %v1683_v34 = vsel %vm5999_vm13, %v4333_v28, %v1682_v24  ;;  %v1712_v56 = vrot.slane %v1710_v36, 4  ;;  %v1686_v51 = vsel %vm5999_vm13, %v1684_v50, %v1685_v45  ;;  %v5290_v45 = vld [vmem:[%s6626_s5 + $0xb8] sm:$0xff]   ;;  %v5304_v10 = vld [vmem:[#allocation2 + $0x48] sm:$0xff]   ;;  %v5305_v16 = vld [vmem:[%s6626_s5 + $0xe0] sm:$0xff]  }
  0xd0   : > { %4958 = vmatpush3.bf16.msra.mxu0 %v5273_v57  ;;  %v6116_v57 = vld [vmem:[#allocation2 + $0xc] sm:$0xe]  ;;  %v1717_v18 = vrot.slane %v5896_v22, 5  ;;  %v1720_v24 = vrot.slane %v6648_v48, 5  ;;  %v2695_v22 = vsel %vm5999_vm13, %v4396_v52, %v2694_v26  ;;  %v2698_v33 = vsel %vm5999_vm13, %v6100_v62, %v2697_v21  ;;  %v1659_v62 = vld [vmem:[#allocation2 + $0x48] sm:$0xe] }
  0xd1   : > { %4959 = vmatprep.subr.bf16.mxu0 %v5277_v29  ;;  %v4334_v27 = vrot.slane %v6116_v57, 9  ;;  %v6173_v38 = vsel %vm5999_vm13, %v1712_v56, %v1713_v60  ;;  %v4341_v14 = vcombine.low %v1683_v34, %v1686_v51  ;;  %v1698_v26 = vrot.slane %v1696_v49, 4  ;;  %v5295_v60 = vld [vmem:[%s6626_s5 + $0x1c0] sm:$0xff]  }
  0xd2   : > { %4834 = vmatpush3.bf16.msra.mxu1 %v5278_v46  ;;  %v1691_v46 = vrot.slane %v1689_v6, 4  ;;  %v1719_v4 = vrot.slane %v1717_v18, 4  ;;  %v1724_v59 = vrot.slane %v5938_v32, 5  ;;  %v4339_v32 = vrot.slane %v1659_v62, 9  ;;  %v5294_v56 = vld [vmem:[#allocation2 + $0x24] sm:$0xff]   ;;  %v5300_v62 = vld [vmem:[#allocation2 + $0x3c] sm:$0xff]  }
  0xd3   : > { %4944 = vmatmul.mubr.bf16.gmra.mrb[4].mxu0 %v4400_v53  ;;  %4835 = vmatprep.subr.bf16.mxu1 %v5282_v20  ;;  %v4335_v53 = vrot.slane %v6131_v11, 9  ;;  %v1731_v35 = vrot.slane %v5965_v30, 5  ;;  %v4340_v0 = vrot.slane %v1660_v61, 9  ;;  %v5293_v30 = vld [vmem:[%s6626_s5 + $0xc0] sm:$0xff]  }
  0xd4   : > { %4960 = vmatpush3.bf16.msra.mxu0 %v5277_v29  ;;  %4947 = vmatprep.mubr.bf16.mxu0 %v4401_v3  ;;  %v4337_v29 = vrot.slane %v1657_v8, 9  ;;  %v4338_v3 = vrot.slane %v1658_v9, 9  ;;  %v6197_v50 = vsel %vm5999_vm13, %v1719_v4, %v1720_v24  ;;  %v1726_v57 = vrot.slane %v1724_v59, 4  ;;  %v6254_v51 = vld [vmem:[#allocation2 + $0x20] sm:$0x1]  ;;  %v5297_v9 = vld [vmem:[%s6626_s5 + $0x1c8] sm:$0xff]  }
  0xd5   : > { %4961 = vmatprep.subr.bf16.mxu0 %v5279_v39  ;;  %4820 = vmatmul.mubr.bf16.gmra.mrb[8].mxu1 %v4322_v15  ;;  %v1727_v15 = vrot.slane %v6649_v5, 5  ;;  %v1693_v13 = vsel %vm5999_vm13, %v1691_v46, %v1692_v31  ;;  %v1697_v41 = vsel %vm5999_vm13, %v4335_v53, %v1696_v49  ;;  %v6225_v2 = vsel %vm5999_vm13, %v4339_v32, %v1724_v59  ;;  %v5296_v46 = vld [vmem:[%s6626_s5 + $0xc8] sm:$0xff]   ;;  %v3153_v53 = vld [vmem:[#allocation2 + $0x24] sm:$0xf]  ;;  %v5303_v5 = vld [vmem:[%s6626_s5 + $0x1d8] sm:$0xff]  }
  0xd6   : > { %4836 = vmatpush3.bf16.msra.mxu1 %v5282_v20  ;;  %4823 = vmatprep.mubr.bf16.mxu1 %v4323_v47  ;;  %v5335_v20 = vld [vmem:[#allocation2 + $0x20] sm:$0x1]  ;;  %v6193_v52 = vsel %vm5999_vm13, %v4338_v3, %v1717_v18  ;;  %v1690_v47 = vsel %vm5999_vm13, %v4334_v27, %v1689_v6  ;;  %v1734_v6 = vrot.slane %v5973_v25, 5  ;;  %v1733_v11 = vrot.slane %v1731_v35, 4  ;;  %v5299_v18 = vld [vmem:[%s6626_s5 + $0xd0] sm:$0xff]  }
  0xd7   : > { %4837 = vmatprep.subr.bf16.mxu1 %v5284_v1  ;;  %v1699_v19 = vrot.slane %v5335_v20, 5  ;;  %v4346_v21 = vcombine.low %v6193_v52, %v6197_v50  ;;  %v6229_v31 = vsel %vm5999_vm13, %v1726_v57, %v1727_v15  ;;  %v4342_v27 = vcombine.low %v1690_v47, %v1693_v13  ;;  %v5301_v3 = vld [vmem:[%s6626_s5 + $0x1d0] sm:$0xff]   ;;  %v6273_v4 = vld [vmem:[#allocation2 + $0x28] sm:$0xf] }
  0xd8   : > { %4962 = vmatpush3.bf16.msra.mxu0 %v5279_v39  ;;  %v6169_v39 = vsel %vm5999_vm13, %v4337_v29, %v1710_v36  ;;  %v4347_v25 = vcombine.low %v6225_v2, %v6229_v31  ;;  %v6238_v36 = vsel %vm5999_vm13, %v4340_v0, %v1731_v35  ;;  %v3208_v15 = vshll.u32 %v6273_v4, 16  ;;  %v6288_v47 = vld [vmem:[#allocation2 + $0x34] sm:$0xf]  ;;  %v6309_v0 = vld [vmem:[#allocation2 + $0x38] sm:$0x1] }
  0xd9   : > { %4963 = vmatprep.subr.bf16.mxu0 %v5283_v17  ;;  %v4345_v28 = vcombine.low %v6169_v39, %v6173_v38  ;;  %v1700_v7 = vsel %vm5999_vm13, %v1698_v26, %v1699_v19  ;;  %v3202_v26 = vshll.u32 %v3153_v53, 16  ;;  %v3232_v61 = vshll.u32 %v6288_v47, 16  ;;  %v5311_v2 = vld [vmem:[%s6626_s5 + $0xf0] sm:$0xff]  }
  0xda   : > { %4838 = vmatpush3.bf16.msra.mxu1 %v5284_v1  ;;  %v4404_v1 = vcombine.low %v2695_v22, %v2698_v33  ;;  %v5302_v22 = vld [vmem:[%s6626_s5 + $0xd8] sm:$0xff]   ;;  %v6275_v33 = vld [vmem:[#allocation2 + $0x2c] sm:$0x1]  ;;  %v3236_v35 = vshrl.u32 %v6288_v47, 16  ;;  %v3623_v63 = vrot.slane %v6288_v47, 5 }
  0xdb   : > { %4948 = vmatmul.mubr.bf16.gmra.mrb[8].mxu0 %v4402_v37  ;;  %4839 = vmatprep.subr.bf16.mxu1 %v5288_v54  ;;  %v4343_v37 = vcombine.low %v1697_v41, %v1700_v7  ;;  %v3204_v38 = vrot.slane %v3202_v26, 5  ;;  %v5316_v26 = vld [vmem:[#allocation2 + $0xc] sm:$0xff]   ;;  %v3619_v47 = vrot.slane %v6275_v33, 5 }
  0xdc   : > { %4964 = vmatpush3.bf16.msra.mxu0 %v5283_v17  ;;  %4951 = vmatprep.mubr.bf16.mxu0 %v4403_v58  ;;  %v5292_v17 = vld [vmem:[#allocation2 + $0x18] sm:$0xff]  }
  0xdd   : > { %4965 = vmatprep.subr.bf16.mxu0 %v5285_v44  ;;  %4824 = vmatmul.mubr.bf16.gmra.mrb[12].mxu1 %v4324_v23  ;;  %v6242_v23 = vsel %vm5999_vm13, %v1733_v11, %v1734_v6  ;;  %v6252_v58 = vld [vmem:[#allocation2 + $0x1c] sm:$0xf]  ;;  %v5307_v6 = vld [vmem:[%s6626_s5 + $0x1e0] sm:$0xff]  }
  0xde   : > { %4840 = vmatpush3.bf16.msra.mxu1 %v5288_v54  ;;  %4843 = vmatprep.mubr.bf16.mxu1 %v4341_v14  ;;  %v4348_v8 = vcombine.low %v6238_v36, %v6242_v23  ;;  %v5298_v54 = vld [vmem:[#allocation2 + $0x30] sm:$0xff]   ;;  %v3184_v55 = vshll.u32 %v6252_v58, 16  ;;  %v3188_v49 = vshrl.u32 %v6252_v58, 16  ;;  %v3199_v14 = vshrl.u32 %v3153_v53, 16 }
  0xdf   : > { %4841 = vmatprep.subr.bf16.mxu1 %v5290_v45 }
  0xe0   : > { %4966 = vmatpush3.bf16.msra.mxu0 %v5285_v44  ;;  %v3150_v44 = vld [vmem:[#allocation2 + $0x18] sm:$0xf]  ;;  %v6271_v20 = vrot.slane %v3184_v55, 5  ;;  %v3190_v19 = vrot.slane %v3188_v49, 4  ;;  %v3201_v39 = vrot.slane %v3199_v14, 4 }
  0xe1   : > { %4967 = vmatprep.subr.bf16.mxu0 %v5289_v12  ;;  %v3175_v34 = vshrl.u32 %v3150_v44, 16  ;;  %v3178_v29 = vshll.u32 %v3150_v44, 16  ;;  %v5310_v44 = vld [vmem:[#allocation2 + $0x60] sm:$0xff]   ;;  %v5314_v14 = vld [vmem:[%s6626_s5 + $0xf8] sm:$0xff]  }
  0xe2   : > { %4842 = vmatpush3.bf16.msra.mxu1 %v5290_v45  ;;  %v3194_v45 = vshll.u32 %v6254_v51, 16 }
  0xe3   : > { %4952 = vmatmul.mubr.bf16.gmra.mrb[12].mxu0 %v4404_v1  ;;  %4859 = vmatprep.subr.bf16.mxu1 %v5293_v30  ;;  %v3177_v48 = vrot.slane %v3175_v34, 4  ;;  %v3180_v24 = vrot.slane %v3178_v29, 5  ;;  %v3212_v1 = vshrl.u32 %v6273_v4, 16  ;;  %v6320_v29 = vrot.slane %v3232_v61, 5 }
  0xe4   : > { %4968 = vmatpush3.bf16.msra.mxu0 %v5289_v12  ;;  %4971 = vmatprep.mubr.bf16.mxu0 %v5292_v17  ;;  %v3156_v12 = vld [vmem:[#allocation2 + $0x30] sm:$0xf]  ;;  %v6294_v57 = vrot.slane %v3194_v45, 5  ;;  %v6307_v17 = vrot.slane %v3208_v15, 5  ;;  %v6363_v15 = vld [vmem:[#allocation2 + $0x44] sm:$0x1] }
  0xe5   : > { %4969 = vmatprep.subr.bf16.mxu0 %v5291_v40  ;;  %4844 = vmatmul.mubr.bf16.vlgmr.msra.gmra.mrb[0].mxu1 %v4342_v27  ;;  %v3181_v59 = vor.u32 %v3180_v24, %v3177_v48  ;;  %v3223_v32 = vshrl.u32 %v3156_v12, 16  ;;  %v3226_v41 = vshll.u32 %v3156_v12, 16  ;;  %v3214_v7 = vrot.slane %v3212_v1, 4  ;;  %v3159_v27 = vld [vmem:[#allocation2 + $0x3c] sm:$0xf]  ;;  %v5309_v48 = vld [vmem:[%s6626_s5 + $0x1e8] sm:$0xff]  }
  0xe6   : > { %4860 = vmatpush3.bf16.msra.mxu1 %v5293_v30  ;;  %4847 = vmatprep.mubr.bf16.mxu1 %v4343_v37  ;;  %v3205_v37 = vor.u32 %v3204_v38, %v3201_v39  ;;  %v3247_v49 = vshrl.u32 %v3159_v27, 16 }
  0xe7   : > { %4861 = vmatprep.subr.bf16.mxu1 %v5296_v46  ;;  %v6300_v13 = vrot.slane %v3181_v59, 4  ;;  %v6313_v11 = vrot.slane %v3223_v32, 4  ;;  %v3228_v34 = vrot.slane %v3226_v41, 5  ;;  %v3215_v55 = vor.u32 %v3214_v7, %v6307_v17  ;;  %v5312_v32 = vld [vmem:[#allocation2 + $0x6c] sm:$0xff]  }
  0xe8   : > { %4970 = vmatpush3.bf16.msra.mxu0 %v5291_v40  ;;  %v5308_v40 = vld [vmem:[%s6626_s5 + $0xe8] sm:$0xff]   ;;  %v6345_v24 = vrot.slane %v3205_v37, 4  ;;  %v3249_v1 = vrot.slane %v3247_v49, 4  ;;  %v6394_v49 = vld [vmem:[#allocation2 + $0x64] sm:$0xf] }
  0xe9   : > { %4987 = vmatprep.subr.bf16.mxu0 %v5295_v60  ;;  %v3187_v31 = vsel %vm5744_vm10, %v6300_v13, %v6271_v20  ;;  %v6357_v59 = vrot.slane %v3215_v55, 4  ;;  %v3229_v12 = vor.u32 %v3228_v34, %v6313_v11  ;;  %v5315_v13 = vld [vmem:[%s6626_s5 + $0x1f8] sm:$0xff]   ;;  %v3168_v55 = vld [vmem:[#allocation2 + $0x60] sm:$0xf] }
  0xea   : > { %4862 = vmatpush3.bf16.msra.mxu1 %v5296_v46  ;;  %v6315_v46 = vld [vmem:[#allocation2 + $0x40] sm:$0xf]  ;;  %v5317_v11 = vld [vmem:[#allocation2 + $0x18] sm:$0xff]  }
  0xeb   : > { %4972 = vmatmul.mubr.bf16.vlgmr.msra.gmra.mrb[0].mxu0 %v5294_v56  ;;  %4863 = vmatprep.subr.bf16.mxu1 %v5299_v18  ;;  %v3238_v56 = vrot.slane %v3236_v35, 4  ;;  %v3256_v52 = vshll.u32 %v6315_v46, 16  ;;  %v3260_v50 = vshrl.u32 %v6315_v46, 16  ;;  %v3230_v61 = vrot.slane %v3229_v12, 4  ;;  %v6420_v12 = vld [vmem:[#allocation2 + $0x5c] sm:$0x1] }
  0xec   : > { %4988 = vmatpush3.bf16.msra.mxu0 %v5295_v60  ;;  %4975 = vmatprep.mubr.bf16.mxu0 %v5298_v54  ;;  %v5306_v60 = vld [vmem:[#allocation2 + $0x54] sm:$0xff]   ;;  %v3242_v54 = vshll.u32 %v6309_v0, 16  ;;  %v3266_v35 = vshll.u32 %v6363_v15, 16 }
  0xed   : > { %4989 = vmatprep.subr.bf16.mxu0 %v5297_v9  ;;  %4848 = vmatmul.mubr.bf16.gmra.mrb[4].mxu1 %v4344_v42  ;;  %v3191_v42 = vor.u32 %v3190_v19, %v6271_v20  ;;  %v5313_v20 = vld [vmem:[%s6626_s5 + $0x1f0] sm:$0xff]  }
  0xee   : > { %4864 = vmatpush3.bf16.msra.mxu1 %v5299_v18  ;;  %4851 = vmatprep.mubr.bf16.mxu1 %v4345_v28  ;;  %v3218_v28 = vshll.u32 %v6275_v33, 16  ;;  %v6329_v18 = vld [vmem:[#allocation2 + $0x4c] sm:$0xf] }
  0xef   : > { %4865 = vmatprep.subr.bf16.mxu1 %v5302_v22  ;;  %v6311_v30 = vrot.slane %v3191_v42, 4  ;;  %v3280_v45 = vshll.u32 %v6329_v18, 16  ;;  %v3284_v19 = vshrl.u32 %v6329_v18, 16  ;;  %v3262_v42 = vrot.slane %v3260_v50, 4 }
  0xf0   : > { %4990 = vmatpush3.bf16.msra.mxu0 %v5297_v9  ;;  %v3250_v9 = vshll.u32 %v3159_v27, 16  ;;  %v6347_v53 = vrot.slane %v3218_v28, 5  ;;  %v3211_v27 = vsel %vm5744_vm10, %v6345_v24, %v6307_v17  ;;  %v5320_v17 = vld [vmem:[#allocation2 + $0x24] sm:$0xff]   ;;  %v3319_v24 = vshrl.u32 %v3168_v55, 16 }
  0xf1   : > { %4991 = vmatprep.subr.bf16.mxu0 %v5301_v3  ;;  %v6372_v28 = vrot.slane %v3280_v45, 5 }
  0xf2   : > { %4866 = vmatpush3.bf16.msra.mxu1 %v5302_v22  ;;  %v3221_v37 = vsel %vm5744_vm10, %v6357_v59, %v6347_v53  ;;  %v3322_v53 = vshll.u32 %v3168_v55, 16  ;;  %v6418_v59 = vld [vmem:[%s6626_s5 + $0x210] sm:$0xff]  }
  0xf3   : > { %4976 = vmatmul.mubr.bf16.gmra.mrb[4].mxu0 %v5300_v62  ;;  %4867 = vmatprep.subr.bf16.mxu1 %v5305_v16  ;;  %v3239_v62 = vor.u32 %v3238_v56, %v6320_v29 }
  0xf4   : > { %4992 = vmatpush3.bf16.msra.mxu0 %v5301_v3  ;;  %4979 = vmatprep.mubr.bf16.mxu0 %v5304_v10  ;;  %v3252_v10 = vrot.slane %v3250_v9, 5  ;;  %v3235_v9 = vsel %vm5744_vm10, %v3230_v61, %v6320_v29 }
  0xf5   : > { %4993 = vmatprep.subr.bf16.mxu0 %v5303_v5  ;;  %4852 = vmatmul.mubr.bf16.gmra.mrb[8].mxu1 %v4346_v21  ;;  %v3162_v21 = vld [vmem:[#allocation2 + $0x48] sm:$0xf]  ;;  %v3240_v36 = vrot.slane %v3239_v62, 4 }
  0xf6   : > { %4868 = vmatpush3.bf16.msra.mxu1 %v5305_v16  ;;  %4855 = vmatprep.mubr.bf16.mxu1 %v4347_v25  ;;  %v3197_v25 = vsel %vm5744_vm10, %v6311_v30, %v6294_v57  ;;  %v3271_v3 = vshrl.u32 %v3162_v21, 16  ;;  %v3274_v22 = vshll.u32 %v3162_v21, 16  ;;  %v6365_v16 = vrot.slane %v3256_v52, 5  ;;  %v6367_v57 = vld [vmem:[#allocation2 + $0x50] sm:$0x1] }
  0xf7   : > { %4869 = vmatprep.subr.bf16.mxu1 %v5308_v40  ;;  %v4429_v41 = vcombine.low %v3187_v31, %v3197_v25  ;;  %v3253_v23 = vor.u32 %v3252_v10, %v3249_v1  ;;  %v3290_v7 = vshll.u32 %v6367_v57, 16  ;;  %v6380_v30 = vld [vmem:[#allocation2 + $0x58] sm:$0xf]  ;;  %v6399_v52 = vrot.slane %v3266_v35, 5  ;;  %v3171_v10 = vld [vmem:[#allocation2 + $0x6c] sm:$0xf] }
  0xf8   : > { %4994 = vmatpush3.bf16.msra.mxu0 %v5303_v5  ;;  %v6361_v5 = vrot.slane %v3242_v54, 5  ;;  %v3273_v39 = vrot.slane %v3271_v3, 4  ;;  %v3276_v38 = vrot.slane %v3274_v22, 5  ;;  %v3304_v50 = vshll.u32 %v6380_v30, 16 }
  0xf9   : > { %4995 = vmatprep.subr.bf16.mxu0 %v5307_v6  ;;  %v3308_v21 = vshrl.u32 %v6380_v30, 16  ;;  %v3254_v31 = vrot.slane %v3253_v23, 4  ;;  %v6411_v29 = vrot.slane %v3290_v7, 5  ;;  %v3328_v3 = vshll.u32 %v6394_v49, 16 }
  0xfa   : > { %4870 = vmatpush3.bf16.msra.mxu1 %v5308_v40  ;;  %v3286_v40 = vrot.slane %v3284_v19, 4  ;;  %v3332_v22 = vshrl.u32 %v6394_v49, 16  ;;  %v6422_v62 = vrot.slane %v3304_v50, 5  ;;  %v3343_v23 = vshrl.u32 %v3171_v10, 16 }
  0xfb   : > { %4980 = vmatmul.mubr.bf16.gmra.mrb[8].mxu0 %v5306_v60  ;;  %4871 = vmatprep.subr.bf16.mxu1 %v5311_v2  ;;  %v5318_v60 = vld [vmem:[%s6626_s5 + $0x200] sm:$0xff]   ;;  %v3259_v61 = vsel %vm5744_vm10, %v3254_v31, %v6365_v16 }
  0xfc   : > { %4996 = vmatpush3.bf16.msra.mxu0 %v5307_v6  ;;  %4983 = vmatprep.mubr.bf16.mxu0 %v5310_v44  ;;  %v3165_v6 = vld [vmem:[#allocation2 + $0x54] sm:$0xf]  ;;  %v3277_v44 = vor.u32 %v3276_v38, %v3273_v39  ;;  %v3287_v34 = vor.u32 %v3286_v40, %v6372_v28  ;;  %v3324_v39 = vrot.slane %v3322_v53, 5  ;;  %v6427_v38 = vrot.slane %v3328_v3, 5 }
  0xfd   : > { %4997 = vmatprep.subr.bf16.mxu0 %v5309_v48  ;;  %4856 = vmatmul.mubr.bf16.gmra.mrb[12].mxu1 %v4348_v8  ;;  %v3263_v8 = vor.u32 %v3262_v42, %v6365_v16  ;;  %v3295_v56 = vshrl.u32 %v3165_v6, 16  ;;  %v3298_v54 = vshll.u32 %v3165_v6, 16  ;;  %v6425_v42 = vld [vmem:[#allocation2 + $0x70] sm:$0xf]  ;;  %v3334_v40 = vrot.slane %v3332_v22, 4  ;;  %v6443_v16 = vld [vmem:[%s6626_s5 + $0x218] sm:$0xff]  }
  0xfe   : > { %4872 = vmatpush3.bf16.msra.mxu1 %v5311_v2  ;;  %4875 = vmatprep.mubr.bf16.mxu1 %v5316_v26  ;;  %v3245_v2 = vsel %vm5744_vm10, %v3240_v36, %v6361_v5  ;;  %v3278_v45 = vrot.slane %v3277_v44, 4  ;;  %v3288_v19 = vrot.slane %v3287_v34, 4  ;;  %v4430_v26 = vcombine.low %v3211_v27, %v3221_v37  ;;  %v6435_v6 = vld [vmem:[#allocation2 + $0x68] sm:$0x1]  ;;  %v5324_v36 = vld [vmem:[#allocation2 + $0x3c] sm:$0xff]  }
  0xff   : > { %4873 = vmatprep.subr.bf16.mxu1 %v5314_v14  ;;  %v3264_v25 = vrot.slane %v3263_v8, 4  ;;  %v3310_v5 = vrot.slane %v3308_v21, 4  ;;  %v4431_v1 = vcombine.low %v3235_v9, %v3245_v2  ;;  %v3346_v8 = vshll.u32 %v3171_v10, 16  ;;  %v5327_v10 = vld [vmem:[%s6626_s5 + $0x228] sm:$0xff]  }
 0x100   : > { %4998 = vmatpush3.bf16.msra.mxu0 %v5309_v48  ;;  %v6406_v48 = vld [vmem:[%s6626_s5 + $0x208] sm:$0xff]   ;;  %v3352_v7 = vshll.u32 %v6425_v42, 16  ;;  %v3283_v27 = vsel %vm5744_vm10, %v3278_v45, %v6372_v28  ;;  %v3314_v44 = vshll.u32 %v6420_v12, 16 }
 0x101   : > { %4999 = vmatprep.subr.bf16.mxu0 %v5313_v20  ;;  %v3311_v37 = vor.u32 %v3310_v5, %v6422_v62  ;;  %v3348_v9 = vrot.slane %v3346_v8, 5  ;;  %v3579_v45 = vld [vmem:[#allocation2 + $0x48] sm:$0xe] }
 0x102   : > { %4874 = vmatpush3.bf16.msra.mxu1 %v5314_v14  ;;  %v3300_v14 = vrot.slane %v3298_v54, 5  ;;  %v3338_v54 = vshll.u32 %v6435_v6, 16  ;;  %v3316_v31 = vrot.slane %v3314_v44, 5 }
 0x103   : > { %4984 = vmatmul.mubr.bf16.gmra.mrb[12].mxu0 %v5312_v32  ;;  %5051 = vmatprep.subr.bf16.mxu1 %v5318_v60  ;;  %v3321_v32 = vrot.slane %v3319_v24, 4  ;;  %v3312_v2 = vrot.slane %v3311_v37, 4  ;;  %v5326_v24 = vld [vmem:[%s6626_s5 + $0x220] sm:$0xff]  }
 0x104   : > { %5000 = vmatpush3.bf16.msra.mxu0 %v5313_v20  ;;  %5003 = vmatprep.mubr.bf16.mxu0 %v4429_v41  ;;  %v3297_v20 = vrot.slane %v3295_v56, 4  ;;  %v5321_v41 = vld [vmem:[#allocation2 + $0x30] sm:$0xff]   ;;  %v3335_v56 = vor.u32 %v3334_v40, %v6427_v38  ;;  %v3340_v22 = vrot.slane %v3338_v54, 5  ;;  %v3581_v37 = vld [vmem:[#allocation2 + $0x60] sm:$0xe] }
 0x105   : > { %5001 = vmatprep.subr.bf16.mxu0 %v5315_v13  ;;  %4876 = vmatmul.mubr.bf16.vlgmr.msra.gmra.mrb[0].mxu1 %v5317_v11  ;;  %v3356_v11 = vshrl.u32 %v6425_v42, 16  ;;  %v3325_v34 = vor.u32 %v3324_v39, %v3321_v32  ;;  %v4449_v32 = vrot.slane %v3579_v45, 9 }
 0x106   : > { %5059 = vmatpush3.bf16.msra.mxu1 %v5318_v60  ;;  %4879 = vmatprep.mubr.bf16.mxu1 %v5320_v17  ;;  %v3301_v35 = vor.u32 %v3300_v14, %v3297_v20  ;;  %v3345_v17 = vrot.slane %v3343_v23, 4  ;;  %v3336_v3 = vrot.slane %v3335_v56, 4  ;;  %v5328_v20 = vld [vmem:[#allocation2 + $0x54] sm:$0xff]  }
 0x107   : > { %5052 = vmatprep.subr.bf16.mxu1 %v6406_v48  ;;  %v3358_v50 = vrot.slane %v3356_v11, 4  ;;  %v3326_v53 = vrot.slane %v3325_v34, 4  ;;  %v3580_v11 = vld [vmem:[#allocation2 + $0x54] sm:$0xe] }
 0x108   : > { %5002 = vmatpush3.bf16.msra.mxu0 %v5315_v13  ;;  %v3269_v13 = vsel %vm5744_vm10, %v3264_v25, %v6399_v52  ;;  %v3302_v28 = vrot.slane %v3301_v35, 4  ;;  %v6458_v52 = vrot.slane %v3352_v7, 5  ;;  %v6462_v25 = vld [vmem:[#allocation2 + $0x74] sm:$0x1]  ;;  %v3349_v14 = vor.u32 %v3348_v9, %v3345_v17 }
 0x109   : > { %5019 = vmatprep.subr.bf16.mxu0 %v5318_v60  ;;  %v4432_v55 = vcombine.low %v3259_v61, %v3269_v13  ;;  %v3362_v5 = vshll.u32 %v6462_v25, 16  ;;  %v3331_v40 = vsel %vm5744_vm10, %v3326_v53, %v6427_v38  ;;  %v3612_v35 = vrot.slane %v6254_v51, 5  ;;  %v5330_v51 = vld [vmem:[%s6626_s5 + $0x230] sm:$0xff]  }
 0x10a   : > { %5060 = vmatpush3.bf16.msra.mxu1 %v6406_v48  ;;  %v4450_v17 = vrot.slane %v3580_v11, 9  ;;  %v3616_v9 = vrot.slane %v6273_v4, 5  ;;  %v3661_v33 = vrot.slane %v6462_v25, 5 }
 0x10b   : > { %5004 = vmatmul.mubr.bf16.vlgmr.msra.gmra.mrb[0].mxu0 %v4430_v26  ;;  %5053 = vmatprep.subr.bf16.mxu1 %v6418_v59  ;;  %v3359_v26 = vor.u32 %v3358_v50, %v6458_v52  ;;  %v3364_v8 = vrot.slane %v3362_v5, 5  ;;  %v4451_v50 = vrot.slane %v3581_v37, 9 }
 0x10c   : > { %5020 = vmatpush3.bf16.msra.mxu0 %v5318_v60  ;;  %5007 = vmatprep.mubr.bf16.mxu0 %v4431_v1  ;;  %v3293_v60 = vsel %vm5744_vm10, %v3288_v19, %v6411_v29  ;;  %v3637_v29 = vrot.slane %v6329_v18, 5  ;;  %v3609_v19 = vrot.slane %v6252_v58, 5  ;;  %v3307_v18 = vsel %vm5744_vm10, %v3302_v28, %v6422_v62  ;;  %v3575_v1 = vld [vmem:[#allocation2 + $0x18] sm:$0xe]  ;;  %v3576_v28 = vld [vmem:[#allocation2 + $0x24] sm:$0xe] }
 0x10d   : > { %5021 = vmatprep.subr.bf16.mxu0 %v6406_v48  ;;  %4880 = vmatmul.mubr.bf16.gmra.mrb[4].mxu1 %v5321_v41  ;;  %v4433_v21 = vcombine.low %v3283_v27, %v3293_v60  ;;  %v3317_v58 = vsel %vm5744_vm10, %v3312_v2, %v3316_v31  ;;  %v3640_v62 = vrot.slane %v6367_v57, 5  ;;  %v3644_v41 = vrot.slane %v6380_v30, 5  ;;  %v5329_v60 = vld [vmem:[#allocation2 + $0x60] sm:$0xff]  }
 0x10e   : > { %5061 = vmatpush3.bf16.msra.mxu1 %v6418_v59  ;;  %4883 = vmatprep.mubr.bf16.mxu1 %v5324_v36  ;;  %v3639_v39 = vrot.slane %v3637_v29, 4  ;;  %v4445_v61 = vrot.slane %v3575_v1, 9  ;;  %v3611_v13 = vrot.slane %v3609_v19, 4  ;;  %v4434_v36 = vcombine.low %v3307_v18, %v3317_v58 }
 0x10f   : > { %5054 = vmatprep.subr.bf16.mxu1 %v6443_v16  ;;  %v3350_v57 = vrot.slane %v3349_v14, 4  ;;  %v3360_v23 = vrot.slane %v3359_v26, 4  ;;  %v3638_v7 = vsel %vm5999_vm13, %v4449_v32, %v3637_v29  ;;  %v3651_v27 = vrot.slane %v6394_v49, 5  ;;  %v3577_v29 = vld [vmem:[#allocation2 + $0x30] sm:$0xe] }
 0x110   : > { %5022 = vmatpush3.bf16.msra.mxu0 %v6406_v48  ;;  %v5325_v48 = vld [vmem:[#allocation2 + $0x48] sm:$0xff]   ;;  %v3641_v30 = vsel %vm5999_vm13, %v3639_v39, %v3640_v62  ;;  %v3646_v44 = vrot.slane %v3644_v41, 4  ;;  %v3610_v34 = vsel %vm5999_vm13, %v4445_v61, %v3609_v19  ;;  %v3613_v56 = vsel %vm5999_vm13, %v3611_v13, %v3612_v35  ;;  %v3578_v39 = vld [vmem:[#allocation2 + $0x3c] sm:$0xe] }
 0x111   : > { %5023 = vmatprep.subr.bf16.mxu0 %v6418_v59  ;;  %v3355_v49 = vsel %vm5744_vm10, %v3350_v57, %v6458_v52  ;;  %v3365_v54 = vsel %vm5744_vm10, %v3360_v23, %v3364_v8  ;;  %v3654_v2 = vrot.slane %v6435_v6, 5  ;;  %v4446_v52 = vrot.slane %v3576_v28, 9 }
 0x112   : > { %5062 = vmatpush3.bf16.msra.mxu1 %v6443_v16  ;;  %v4453_v53 = vcombine.low %v3610_v34, %v3613_v56  ;;  %v3645_v4 = vsel %vm5999_vm13, %v4450_v17, %v3644_v41  ;;  %v3618_v6 = vrot.slane %v3616_v9, 4  ;;  %v4447_v19 = vrot.slane %v3577_v29, 9 }
 0x113   : > { %5008 = vmatmul.mubr.bf16.gmra.mrb[4].mxu0 %v4432_v55  ;;  %5055 = vmatprep.subr.bf16.mxu1 %v5326_v24  ;;  %v4457_v55 = vcombine.low %v3638_v7, %v3641_v30  ;;  %v3625_v18 = vrot.slane %v3623_v63, 4  ;;  %v3617_v1 = vsel %vm5999_vm13, %v4446_v52, %v3616_v9  ;;  %v3633_v61 = vrot.slane %v6363_v15, 5 }
 0x114   : > { %5024 = vmatpush3.bf16.msra.mxu0 %v6418_v59  ;;  %5011 = vmatprep.mubr.bf16.mxu0 %v4433_v21  ;;  %v3341_v59 = vsel %vm5744_vm10, %v3336_v3, %v3340_v22  ;;  %v3653_v21 = vrot.slane %v3651_v27, 4  ;;  %v3658_v3 = vrot.slane %v6425_v42, 5  ;;  %v3652_v22 = vsel %vm5999_vm13, %v4451_v50, %v3651_v27 }
 0x115   : > { %5025 = vmatprep.subr.bf16.mxu0 %v6443_v16  ;;  %4884 = vmatmul.mubr.bf16.gmra.mrb[8].mxu1 %v5325_v48  ;;  %v4435_v38 = vcombine.low %v3331_v40, %v3341_v59  ;;  %v3582_v48 = vld [vmem:[#allocation2 + $0x6c] sm:$0xe]  ;;  %v3620_v58 = vsel %vm5999_vm13, %v3618_v6, %v3619_v47 }
 0x116   : > { %5063 = vmatpush3.bf16.msra.mxu1 %v5326_v24  ;;  %4887 = vmatprep.mubr.bf16.mxu1 %v5328_v20  ;;  %v3655_v45 = vsel %vm5999_vm13, %v3653_v21, %v3654_v2  ;;  %v3626_v20 = vrot.slane %v6309_v0, 5  ;;  %v4452_v26 = vrot.slane %v3582_v48, 9  ;;  %v3660_v5 = vrot.slane %v3658_v3, 4 }
 0x117   : > { %5056 = vmatprep.subr.bf16.mxu1 %v5327_v10  ;;  %v4459_v42 = vcombine.low %v3652_v22, %v3655_v45  ;;  %v3624_v0 = vsel %vm5999_vm13, %v4447_v19, %v3623_v63  ;;  %v4454_v25 = vcombine.low %v3617_v1, %v3620_v58 }
 0x118   : > { %5026 = vmatpush3.bf16.msra.mxu0 %v6443_v16  ;;  %v3647_v16 = vrot.slane %v6420_v12, 5  ;;  %v5331_v12 = vld [vmem:[%s6626_s5 + $0x238] sm:$0xff]   ;;  %v3627_v32 = vsel %vm5999_vm13, %v3625_v18, %v3626_v20  ;;  %v3659_v62 = vsel %vm5999_vm13, %v4452_v26, %v3658_v3  ;;  %v3662_v40 = vsel %vm5999_vm13, %v3660_v5, %v3661_v33 }
 0x119   : > { %5027 = vmatprep.subr.bf16.mxu0 %v5326_v24  ;;  %v4455_v59 = vcombine.low %v3624_v0, %v3627_v32  ;;  %v4460_v13 = vcombine.low %v3659_v62, %v3662_v40 }
 0x11a   : > { %5064 = vmatpush3.bf16.msra.mxu1 %v5327_v10  ;;  %v3648_v31 = vsel %vm5999_vm13, %v3646_v44, %v3647_v16 }
 0x11b   : > { %5012 = vmatmul.mubr.bf16.gmra.mrb[8].mxu0 %v4434_v36  ;;  %5057 = vmatprep.subr.bf16.mxu1 %v5330_v51  ;;  %v4458_v14 = vcombine.low %v3645_v4, %v3648_v31 }
 0x11c   : > { %5028 = vmatpush3.bf16.msra.mxu0 %v5326_v24  ;;  %5015 = vmatprep.mubr.bf16.mxu0 %v4435_v38  ;;  %v4436_v24 = vcombine.low %v3355_v49, %v3365_v54 }
 0x11d   : > { %5029 = vmatprep.subr.bf16.mxu0 %v5327_v10  ;;  %4888 = vmatmul.mubr.bf16.gmra.mrb[12].mxu1 %v5329_v60 }
 0x11e   : > { %5065 = vmatpush3.bf16.msra.mxu1 %v5330_v51  ;;  %5043 = vmatprep.mubr.bf16.mxu1 %v4457_v55 }
 0x11f   : > { %5058 = vmatprep.subr.bf16.mxu1 %v5331_v12 }
 0x120   : > { %5030 = vmatpush3.bf16.msra.mxu0 %v5327_v10  ;;  %v3630_v10 = vrot.slane %v6315_v46, 5  ;;  %v4448_v46 = vrot.slane %v3578_v39, 9 }
 0x121   : > { %5031 = vmatprep.subr.bf16.mxu0 %v5330_v51 }
 0x122   : > { %5066 = vmatpush3.bf16.msra.mxu1 %v5331_v12  ;;  %v3632_v41 = vrot.slane %v3630_v10, 4  ;;  %v3631_v35 = vsel %vm5999_vm13, %v4448_v46, %v3630_v10 }
 0x123   : > { %5016 = vmatmul.mubr.bf16.gmra.mrb[12].mxu0 %v4436_v24 }
 0x124   : > { %5032 = vmatpush3.bf16.msra.mxu0 %v5330_v51  ;;  %5035 = vmatprep.mubr.bf16.mxu0 %v4453_v53  ;;  %v3634_v36 = vsel %vm5999_vm13, %v3632_v41, %v3633_v61 }
 0x125   : > { %5033 = vmatprep.subr.bf16.mxu0 %v5331_v12  ;;  %5044 = vmatmul.mubr.bf16.vlgmr.msra.gmra.mrb[16].mxu1 %v4458_v14  ;;  %v4456_v57 = vcombine.low %v3631_v35, %v3634_v36 }
 0x126   : > { %5047 = vmatprep.mubr.bf16.mxu1 %v4459_v42 }
 0x128   : > { %5034 = vmatpush3.bf16.msra.mxu0 %v5331_v12 }
 0x12b   : > { %5036 = vmatmul.mubr.bf16.vlgmr.msra.gmra.mrb[0].mxu0 %v4454_v25 }
 0x12c   : > { %5039 = vmatprep.mubr.bf16.mxu0 %v4455_v59 }
 0x12d   : > { %5048 = vmatmul.mubr.bf16.gmra.mrb[20].mxu1 %v4460_v13 }
 0x133   : > { %5040 = vmatmul.mubr.bf16.gmra.mrb[4].mxu0 %v4456_v57 }
 0x1d8   : > { %v4877_v23 = vpop.f32.mrb[0].mxu1 }
 0x1d9   : > { %v2107_v8 = vpop.f32.mrb[1].mxu1 }
 0x1da   : > { %v4878_v38 = vpop.f32.mrb[2].mxu1 }
 0x1db   : > { %v2110_v7 = vpop.f32.mrb[3].mxu1 }
 0x1e0   : > { %v6546_v30 = vpop.f32.mrb[4].mxu1 }
 0x1e1   : > { %v6548_v11 = vpop.f32.mrb[5].mxu1 }
 0x1e2   : > { %v6550_v15 = vpop.f32.mrb[6].mxu1 }
 0x1e3   : > { %v6552_v27 = vpop.f32.mrb[7].mxu1 }
 0x1e8   : > { %v4885_v51 = vpop.f32.mrb[8].mxu1 }
 0x1e9   : > { %v2139_v37 = vpop.f32.mrb[9].mxu1 }
 0x1ea   : > { %v4886_v44 = vpop.f32.mrb[10].mxu1 }
 0x1eb   : > { %v2142_v43 = vpop.f32.mrb[11].mxu1 }
 0x1ee   : > { %v5013_v16 = vpop.f32.mrb[8].mxu0 }
 0x1ef   : > { %v5075_v60 = vadd.f32 %v5013_v16, %v4885_v51  ;;  %v3528_v34 = vpop.f32.mrb[9].mxu0 }
 0x1f0   : > { %v5077_v56 = vadd.f32 %v3528_v34, %v2139_v37  ;;  %v5014_v49 = vpop.f32.mrb[10].mxu0  ;;  %v4889_v28 = vpop.f32.mrb[12].mxu1 }
 0x1f1   : > { %v5079_v54 = vadd.f32 %v5014_v49, %v4886_v44  ;;  %v3531_v55 = vpop.f32.mrb[11].mxu0  ;;  %v2155_v12 = vpop.f32.mrb[13].mxu1 }
 0x1f2   : > { %v5081_v17 = vadd.f32 %v3531_v55, %v2142_v43  ;;  %v4890_v9 = vpop.f32.mrb[14].mxu1 }
 0x1f3   : > { %v2158_v50 = vpop.f32.mrb[15].mxu1 }
 0x1f6   : > { %v5017_v21 = vpop.f32.mrb[12].mxu0 }
 0x1f7   : > { %v5083_v2 = vadd.f32 %v5017_v21, %v4889_v28  ;;  %v3544_v63 = vpop.f32.mrb[13].mxu0 }
 0x1f8   : > { %v5085_v52 = vadd.f32 %v3544_v63, %v2155_v12  ;;  %v5018_v31 = vpop.f32.mrb[14].mxu0  ;;  %v5045_v53 = vpop.f32.mrb[16].mxu1 }
 0x1f9   : > { %v5087_v29 = vadd.f32 %v5018_v31, %v4890_v9  ;;  %v3547_v24 = vpop.f32.mrb[15].mxu0  ;;  %v6554_v3 = vadd.f32 %v5075_v60, %v5045_v53  ;;  %v3825_v6 = vpop.f32.mrb[17].mxu1 }
 0x1fa   : > { %v5089_v4 = vadd.f32 %v3547_v24, %v2158_v50  ;;  %v6556_v47 = vadd.f32 %v5077_v56, %v3825_v6  ;;  %v5046_v22 = vpop.f32.mrb[18].mxu1 }
 0x1fb   : > { %v6558_v45 = vadd.f32 %v5079_v54, %v5046_v22  ;;  %v3828_v48 = vpop.f32.mrb[19].mxu1 }
 0x1fc   : > { %v6560_v19 = vadd.f32 %v5081_v17, %v3828_v48  ;;  %v3982_v24 = vmul.f32 %v6556_v47, %v6556_v47  ;;  %v3984_v48 = vmul.f32 %v6554_v3, %v6554_v3 }
 0x1fd   : > { %v4593_v20 = vpack.c.bf16 %v6558_v45, %v6554_v3 }
 0x1fe   : > { %v5037_v18 = vpop.f32.mrb[0].mxu0  ;;  %v4588_v26 = vpack.c.bf16 %v6560_v19, %v6556_v47 }
 0x1ff   : > { %v5067_v14 = vadd.f32 %v5037_v18, %v4877_v23  ;;  %v3793_v42 = vpop.f32.mrb[1].mxu0  ;;  %4616 = vst [vmem:[%s5485_s26 + $0x28] sm:$0xff] %v4593_v20  }
 0x200   : > { %v5068_v5 = vadd.f32 %v3793_v42, %v2107_v8  ;;  %v5038_v33 = vpop.f32.mrb[2].mxu0  ;;  %4615 = vst [vmem:[%s5485_s26 + $0x20] sm:$0xff] %v4588_v26   ;;  %v5049_v10 = vpop.f32.mrb[20].mxu1 }
 0x201   : > { %v5069_v1 = vadd.f32 %v5038_v33, %v4878_v38  ;;  %v3796_v58 = vpop.f32.mrb[3].mxu0  ;;  %v6568_v32 = vadd.f32 %v5083_v2, %v5049_v10  ;;  %v3841_v39 = vpop.f32.mrb[21].mxu1  ;;  %v3976_v57 = vmul.f32 %v5067_v14, %v5067_v14 }
 0x202   : > { %v5070_v0 = vadd.f32 %v3796_v58, %v2110_v7  ;;  %v5086_v62 = vadd.f32 %v5085_v52, %v3841_v39  ;;  %v5050_v40 = vpop.f32.mrb[22].mxu1  ;;  %v3974_v59 = vmul.f32 %v5068_v5, %v5068_v5 }
 0x203   : > { %v4573_v25 = vpack.c.bf16 %v5069_v1, %v5067_v14  ;;  %v3844_v13 = vpop.f32.mrb[23].mxu1  ;;  %v5088_v35 = vadd.f32 %v5087_v29, %v5050_v40  ;;  %v3977_v43 = vmul.f32 %v5069_v1, %v5069_v1 }
 0x204   : > { %v4568_v46 = vpack.c.bf16 %v5070_v0, %v5068_v5  ;;  %v3952_v41 = vadd.f32 %v5070_v0, %v5068_v5  ;;  %v3975_v61 = vmul.f32 %v5070_v0, %v5070_v0  ;;  %v5090_v36 = vadd.f32 %v5089_v4, %v3844_v13 }
 0x205   : > { %4612 = vst [vmem:[%s5485_s26 + $0x8] sm:$0xff] %v4573_v25   ;;  %v4603_v37 = vpack.c.bf16 %v5088_v35, %v6568_v32 }
 0x206   : > { %4569 = vst [vmem:[%s5485_s26] sm:$0xff] %v4568_v46   ;;  %v3953_v23 = vadd.f32 %v5067_v14, %v3952_v41  ;;  %v3990_v8 = vadd.f32 %v3975_v61, %v3974_v59  ;;  %v5041_v38 = vpop.f32.mrb[4].mxu0  ;;  %v4598_v44 = vpack.c.bf16 %v5090_v36, %v5086_v62  ;;  %v3985_v14 = vmul.f32 %v6558_v45, %v6558_v45 }
 0x207   : > { %v5071_v7 = vadd.f32 %v5041_v38, %v6546_v30  ;;  %v3809_v51 = vpop.f32.mrb[5].mxu0  ;;  %4618 = vst [vmem:[%s5485_s26 + $0x38] sm:$0xff] %v4603_v37   ;;  %v3987_v58 = vmul.f32 %v5090_v36, %v5090_v36 }
 0x208   : > { %v3991_v16 = vadd.f32 %v3990_v8, %v3976_v57  ;;  %v5072_v60 = vadd.f32 %v3809_v51, %v6548_v11  ;;  %v3954_v34 = vadd.f32 %v5069_v1, %v3953_v23  ;;  %v5042_v56 = vpop.f32.mrb[6].mxu0  ;;  %4617 = vst [vmem:[%s5485_s26 + $0x30] sm:$0xff] %v4598_v44  }
 0x209   : > { %v5073_v49 = vadd.f32 %v5042_v56, %v6550_v15  ;;  %v3812_v54 = vpop.f32.mrb[7].mxu0  ;;  %v3980_v11 = vmul.f32 %v5071_v7, %v5071_v7 }
 0x20a   : > { %v3955_v55 = vadd.f32 %v5072_v60, %v3954_v34  ;;  %v3978_v28 = vmul.f32 %v5072_v60, %v5072_v60  ;;  %v3992_v30 = vadd.f32 %v3991_v16, %v3977_v43  ;;  %v5074_v17 = vadd.f32 %v3812_v54, %v6552_v27 }
 0x20b   : > { %v4583_v12 = vpack.c.bf16 %v5073_v49, %v5071_v7  ;;  %v3981_v31 = vmul.f32 %v5073_v49, %v5073_v49  ;;  %v3983_v27 = vmul.f32 %v6560_v19, %v6560_v19 }
 0x20c   : > { %v3993_v9 = vadd.f32 %v3992_v30, %v3978_v28  ;;  %v4578_v50 = vpack.c.bf16 %v5074_v17, %v5072_v60  ;;  %v3956_v21 = vadd.f32 %v5074_v17, %v3955_v55  ;;  %v3979_v2 = vmul.f32 %v5074_v17, %v5074_v17 }
 0x20d   : > { %4614 = vst [vmem:[%s5485_s26 + $0x18] sm:$0xff] %v4583_v12  }
 0x20e   : > { %4613 = vst [vmem:[%s5485_s26 + $0x10] sm:$0xff] %v4578_v50   ;;  %v3957_v63 = vadd.f32 %v5071_v7, %v3956_v21  ;;  %v3994_v52 = vadd.f32 %v3993_v9, %v3979_v2 }
 0x210   : > { %v3958_v15 = vadd.f32 %v5073_v49, %v3957_v63  ;;  %v3995_v29 = vadd.f32 %v3994_v52, %v3980_v11 }
 0x212   : > { %v3959_v53 = vadd.f32 %v6556_v47, %v3958_v15  ;;  %v3996_v4 = vadd.f32 %v3995_v29, %v3981_v31  ;;  %v3986_v47 = vmul.f32 %v5086_v62, %v5086_v62 }
 0x214   : > { %v3997_v6 = vadd.f32 %v3996_v4, %v3982_v24  ;;  %v3960_v22 = vadd.f32 %v6560_v19, %v3959_v53  ;;  %v3988_v19 = vmul.f32 %v6568_v32, %v6568_v32 }
 0x216   : > { %v3961_v18 = vadd.f32 %v6554_v3, %v3960_v22  ;;  %v3998_v20 = vadd.f32 %v3997_v6, %v3983_v27  ;;  %v3989_v3 = vmul.f32 %v5088_v35, %v5088_v35 }
 0x218   : > { %v3962_v42 = vadd.f32 %v6558_v45, %v3961_v18  ;;  %v3999_v26 = vadd.f32 %v3998_v20, %v3984_v48 }
 0x21a   : > { %v3963_v5 = vadd.f32 %v5086_v62, %v3962_v42  ;;  %v4000_v33 = vadd.f32 %v3999_v26, %v3985_v14 }
 0x21c   : > { %v3964_v1 = vadd.f32 %v5090_v36, %v3963_v5  ;;  %v4001_v10 = vadd.f32 %v4000_v33, %v3986_v47 }
 0x21e   : > { %v3965_v0 = vadd.f32 %v6568_v32, %v3964_v1  ;;  %v4002_v39 = vadd.f32 %v4001_v10, %v3987_v58 }
 0x220   : > { %v3966_v25 = vadd.f32 %v5088_v35, %v3965_v0  ;;  %v4003_v40 = vadd.f32 %v4002_v39, %v3988_v19 }
 0x222   : > { %v3967_v59 = vrot.slane %v3966_v25, 4  ;;  %v4004_v45 = vadd.f32 %v4003_v40, %v3989_v3 }
 0x224   : > { %v3968_v46 = vadd.f32 %v3967_v59, %v3966_v25  ;;  %v4005_v41 = vrot.slane %v4004_v45, 4 }
 0x226   : > { %v3969_v62 = vrot.slane %v3968_v46, 2  ;;  %v4006_v61 = vadd.f32 %v4005_v41, %v4004_v45 }
 0x228   : > { %v3970_v13 = vadd.f32 %v3969_v62, %v3968_v46  ;;  %v4007_v36 = vrot.slane %v4006_v61, 2 }
 0x22a   : > { %v3971_v57 = vrot.slane %v3970_v13, 1  ;;  %v4008_v23 = vadd.f32 %v4007_v36, %v4006_v61 }
 0x22c   : > { %v3972_v8 = vadd.f32 %v3971_v57, %v3970_v13  ;;  %v4009_v38 = vrot.slane %v4008_v23, 1 }
 0x22e   : > { %3973 = vst [vmem:[%s503_s22] sm:$0x1] %v3972_v8  ;;  %v4010_v32 = vadd.f32 %v4009_v38, %v4008_v23 }
 0x230   : > { %4011 = vst [vmem:[%s510_s25] sm:$0x1] %v4010_v32 }
 0x231 PF: > { %s19_s9 = sadd.s32 1, %s5374_s9   ;;  %s6650_s27 = smov %s5366_s29 }
 0x232   : > { %p16_p13 = scmp.ge.s32.totalorder %s19_s9, 6   ;;  %s6651_s28 = smov %s5370_s30 }
 0x233   : > { %s6652_s29 = smov %s6655_s10  ;;  %s6653_s30 = smov %s6659_s11 }
 0x234   :  { %18 = sbr.rel (!%p16_p13) target bundleno = 3 (0x3), region = 115 }

</bundles_post_ra>
